<compile_context>
chip_gen: v7x
topology: tpu7x:2x2x1
jax: 0.10.0
libtpu: 0.0.40
codegen_flags: <defaults>
</compile_context>

<pallas_src>
import jax
import jax.numpy as jnp
from jax.experimental import pallas as pl
from jax.experimental.pallas import tpu as pltpu

EPS = 1e-5


def _down_kernel(x_ref,
                 w1_ref, b1_ref, g1_ref, be1_ref,
                 w2_ref, b2_ref, g2_ref, be2_ref,
                 o_ref, pad1, pad2):
    N, H, W, Cin = x_ref.shape
    Cout = o_ref.shape[-1]
    Hh, Wh = H // 2, W // 2
    M = N * Hh * Wh
    inv_m = jnp.float32(1.0 / M)

    # ---- MaxPool2d(2): strided reads along W, leading-dim reshape along H ----
    x_even = x_ref[:, :, pl.ds(0, Wh, 2), :]              # (N, H, Wh, Cin)
    x_odd = x_ref[:, :, pl.ds(1, Wh, 2), :]
    xw = jnp.maximum(x_even, x_odd)                       # pooled along W
    xw = xw.reshape(N, Hh, 2, Wh, Cin)                    # leading-dim split (free)
    pooled = jnp.maximum(xw[:, :, 0, :, :], xw[:, :, 1, :, :])   # (N, Hh, Wh, Cin)

    def zero_halo(pad, C):
        # zero only the 1-pixel border ring; interior is overwritten below
        pad[:, pl.ds(0, 1), :, :] = jnp.zeros((N, 1, Wh + 2, C), jnp.float32)
        pad[:, pl.ds(Hh + 1, 1), :, :] = jnp.zeros((N, 1, Wh + 2, C), jnp.float32)
        pad[:, pl.ds(1, Hh), pl.ds(0, 1), :] = jnp.zeros((N, Hh, 1, C), jnp.float32)
        pad[:, pl.ds(1, Hh), pl.ds(Wh + 1, 1), :] = jnp.zeros((N, Hh, 1, C), jnp.float32)

    def conv3x3(pad, w_ref, b_ref, C):
        # im2col: single (M, 9*C) x (9*C, Cout) matmul, bf16 operands, f32 acc
        cols = [pad[:, pl.ds(dy, Hh), pl.ds(dx, Wh), :]
                for dy in range(3) for dx in range(3)]
        patches = jnp.concatenate(cols, axis=-1).reshape(M, 9 * C)
        return jnp.dot(patches.astype(jnp.bfloat16), w_ref[...],
                       preferred_element_type=jnp.float32) + b_ref[...]

    def relu_bn(acc, g_ref, be_ref):
        t = jnp.maximum(acc, 0.0)                          # ReLU, f32
        mean = jnp.sum(t, axis=0, keepdims=True) * inv_m   # fused single-pass stats
        msq = jnp.sum(t * t, axis=0, keepdims=True) * inv_m
        var = jnp.maximum(msq - mean * mean, 0.0)          # biased variance
        scale = g_ref[...] * jax.lax.rsqrt(var + EPS)
        return t * scale + (be_ref[...] - mean * scale)

    # ---- conv1 -> ReLU -> BN, written straight into conv2's padded input ----
    zero_halo(pad1, Cin)
    pad1[:, pl.ds(1, Hh), pl.ds(1, Wh), :] = pooled
    y1 = relu_bn(conv3x3(pad1, w1_ref, b1_ref, Cin), g1_ref, be1_ref)

    zero_halo(pad2, Cout)
    pad2[:, pl.ds(1, Hh), pl.ds(1, Wh), :] = y1.reshape(N, Hh, Wh, Cout)

    # ---- conv2 -> ReLU -> BN -> output ----
    y2 = relu_bn(conv3x3(pad2, w2_ref, b2_ref, Cout), g2_ref, be2_ref)
    o_ref[...] = y2.reshape(N, Hh, Wh, Cout).astype(o_ref.dtype)


def down_forward(x_nchw, params):
    """Pallas implementation of `down.forward`. Input/output are NCHW."""
    w1, b1, g1, be1, w2, b2, g2, be2 = params
    N, Cin, H, W = x_nchw.shape
    Cout = w1.shape[0]
    Hh, Wh = H // 2, W // 2

    x = jnp.transpose(x_nchw, (0, 2, 3, 1)).astype(jnp.float32)      # NHWC

    # PyTorch conv weight (O, I, kh, kw) -> im2col layout (9*I, O), bf16
    w1_t = jnp.transpose(w1, (2, 3, 1, 0)).reshape(9 * Cin, Cout).astype(jnp.bfloat16)
    w2_t = jnp.transpose(w2, (2, 3, 1, 0)).reshape(9 * Cout, Cout).astype(jnp.bfloat16)
    row = lambda p: p.reshape(1, Cout).astype(jnp.float32)

    out_nhwc = pl.pallas_call(
        _down_kernel,
        out_shape=jax.ShapeDtypeStruct((N, Hh, Wh, Cout), jnp.float32),
        in_specs=[pl.BlockSpec(memory_space=pltpu.MemorySpace.VMEM)] * 9,
        out_specs=pl.BlockSpec(memory_space=pltpu.MemorySpace.VMEM),
        scratch_shapes=[
            pltpu.VMEM((N, Hh + 2, Wh + 2, Cin), jnp.float32),   # padded conv1 input
            pltpu.VMEM((N, Hh + 2, Wh + 2, Cout), jnp.float32),  # padded conv2 input
        ],
        compiler_params=pltpu.CompilerParams(
            vmem_limit_bytes=48 * 1024 * 1024),
    )(x, w1_t, row(b1), row(g1), row(be1), w2_t, row(b2), row(g2), row(be2))

    return jnp.transpose(out_nhwc, (0, 3, 1, 2))                     # back to NCHW


def down_reference(x_nchw, params, matmul_dtype=jnp.float32):
    """Pure-JAX reference. matmul_dtype=bfloat16 emulates the kernel's
    mixed-precision matmuls (bf16 operands, f32 accumulation)."""
    w1, b1, g1, be1, w2, b2, g2, be2 = params
    x = jnp.transpose(x_nchw, (0, 2, 3, 1)).astype(jnp.float32)
    N, H, W, C = x.shape
    y = x.reshape(N, H // 2, 2, W // 2, 2, C).max(axis=(2, 4))       # MaxPool2d(2)

    def conv_relu_bn(y, w, b, g, be):
        out = jax.lax.conv_general_dilated(
            y.astype(matmul_dtype),
            jnp.transpose(w, (2, 3, 1, 0)).astype(matmul_dtype),
            (1, 1), 'SAME',
            dimension_numbers=('NHWC', 'HWIO', 'NHWC'),
            preferred_element_type=jnp.float32) + b
        out = jnp.maximum(out, 0.0)
        m = out.mean(axis=(0, 1, 2), keepdims=True)
        v = ((out - m) ** 2).mean(axis=(0, 1, 2), keepdims=True)
        return (out - m) * jax.lax.rsqrt(v + EPS) * g + be

    y = conv_relu_bn(y, w1, b1, g1, be1)
    y = conv_relu_bn(y, w2, b2, g2, be2)
    return jnp.transpose(y, (0, 3, 1, 2))


if __name__ == "__main__":
    key = jax.random.PRNGKey(0)
    N, Cin, Cout, H, W = 2, 4, 8, 16, 16
    k = jax.random.split(key, 5)

    x = jax.random.normal(k[0], (N, Cin, H, W), jnp.float32)
    # deterministic synthetic parameters (PyTorch __init__ shapes)
    w1 = jax.random.normal(k[1], (Cout, Cin, 3, 3), jnp.float32) * 0.1
    b1 = jax.random.normal(k[2], (Cout,), jnp.float32) * 0.1
    w2 = jax.random.normal(k[3], (Cout, Cout, 3, 3), jnp.float32) * 0.1
    b2 = jax.random.normal(k[4], (Cout,), jnp.float32) * 0.1
    g1 = jnp.ones((Cout,), jnp.float32)
    be1 = jnp.zeros((Cout,), jnp.float32)
    g2 = jnp.ones((Cout,), jnp.float32)
    be2 = jnp.zeros((Cout,), jnp.float32)
    params = (w1, b1, g1, be1, w2, b2, g2, be2)

    out = jax.block_until_ready(down_forward(x, params))
    assert out.shape == (N, Cout, H // 2, W // 2), out.shape

    # Tight check against a reference with matched matmul-operand precision
    # (bf16 operands, f32 accumulation) — validates the kernel's math.
    ref_bf16 = down_reference(x, params, matmul_dtype=jnp.bfloat16)
    assert jnp.allclose(out, ref_bf16, rtol=2e-3, atol=2e-3), \
        float(jnp.max(jnp.abs(out - ref_bf16)))

    # Looser check against the pure-f32 PyTorch-equivalent reference; the gap
    # is only the bf16 rounding of the matmul operands.
    ref_f32 = down_reference(x, params, matmul_dtype=jnp.float32)
    assert jnp.allclose(out, ref_f32, rtol=5e-2, atol=5e-2), \
        float(jnp.max(jnp.abs(out - ref_f32)))

    print("KERNEL_OK")
</pallas_src>

<mosaic_0001>
module attributes {stable_mosaic.version = 11 : i64} {
  func.func @_down_kernel(%arg0: memref<2x16x16x4xf32, #tpu.memory_space<vmem>>, %arg1: memref<36x8xbf16, #tpu.memory_space<vmem>>, %arg2: memref<1x8xf32, #tpu.memory_space<vmem>>, %arg3: memref<1x8xf32, #tpu.memory_space<vmem>>, %arg4: memref<1x8xf32, #tpu.memory_space<vmem>>, %arg5: memref<72x8xbf16, #tpu.memory_space<vmem>>, %arg6: memref<1x8xf32, #tpu.memory_space<vmem>>, %arg7: memref<1x8xf32, #tpu.memory_space<vmem>>, %arg8: memref<1x8xf32, #tpu.memory_space<vmem>>, %arg9: memref<2x8x8x8xf32, #tpu.memory_space<vmem>>, %arg10: memref<2x10x10x4xf32, #tpu.memory_space<vmem>>, %arg11: memref<2x10x10x8xf32, #tpu.memory_space<vmem>>) attributes {dimension_semantics = [], scalar_prefetch = 0 : i64, scratch_operands = 2 : i64, tpu.core_type = #tpu.core_type<tc>} {
    %c0 = arith.constant 0 : index
    %c0_0 = arith.constant 0 : index
    %c0_1 = arith.constant 0 : index
    %c0_2 = arith.constant 0 : index
    %0 = tpu.strided_load %arg0[%c0, %c0_0, %c0_1, %c0_2] {strides = array<i32: 1, 1, 2, 1>} : memref<2x16x16x4xf32, #tpu.memory_space<vmem>>, vector<2x16x8x4xf32>
    %c0_3 = arith.constant 0 : index
    %c0_4 = arith.constant 0 : index
    %c1 = arith.constant 1 : index
    %c0_5 = arith.constant 0 : index
    %1 = tpu.strided_load %arg0[%c0_3, %c0_4, %c1, %c0_5] {strides = array<i32: 1, 1, 2, 1>} : memref<2x16x16x4xf32, #tpu.memory_space<vmem>>, vector<2x16x8x4xf32>
    %2 = arith.maximumf %0, %1 : vector<2x16x8x4xf32>
    %3 = vector.shape_cast %2 : vector<2x16x8x4xf32> to vector<2x8x2x8x4xf32>
    %4 = vector.extract_strided_slice %3 {offsets = [0, 0, 0, 0, 0], sizes = [2, 8, 1, 8, 4], strides = [1, 1, 1, 1, 1]} : vector<2x8x2x8x4xf32> to vector<2x8x1x8x4xf32>
    %5 = vector.shape_cast %4 : vector<2x8x1x8x4xf32> to vector<2x8x8x4xf32>
    %6 = vector.extract_strided_slice %3 {offsets = [0, 0, 1, 0, 0], sizes = [2, 8, 1, 8, 4], strides = [1, 1, 1, 1, 1]} : vector<2x8x2x8x4xf32> to vector<2x8x1x8x4xf32>
    %7 = vector.shape_cast %6 : vector<2x8x1x8x4xf32> to vector<2x8x8x4xf32>
    %8 = arith.maximumf %5, %7 : vector<2x8x8x4xf32>
    %cst = arith.constant 0.000000e+00 : f32
    %9 = vector.broadcast %cst : f32 to vector<2x1x10x4xf32>
    %c0_6 = arith.constant 0 : index
    %c0_7 = arith.constant 0 : index
    %c0_8 = arith.constant 0 : index
    %c0_9 = arith.constant 0 : index
    %10 = vector.load %arg10[%c0_6, %c0_7, %c0_8, %c0_9] : memref<2x10x10x4xf32, #tpu.memory_space<vmem>>, vector<2x1x10x4xf32>
    tpu.vector_store %arg10[%c0_6, %c0_7, %c0_8, %c0_9], %9 {strides = array<i32>} : memref<2x10x10x4xf32, #tpu.memory_space<vmem>>, vector<2x1x10x4xf32>,
    %cst_10 = arith.constant 0.000000e+00 : f32
    %11 = vector.broadcast %cst_10 : f32 to vector<2x1x10x4xf32>
    %c0_11 = arith.constant 0 : index
    %c9 = arith.constant 9 : index
    %c0_12 = arith.constant 0 : index
    %c0_13 = arith.constant 0 : index
    %12 = vector.load %arg10[%c0_11, %c9, %c0_12, %c0_13] : memref<2x10x10x4xf32, #tpu.memory_space<vmem>>, vector<2x1x10x4xf32>
    tpu.vector_store %arg10[%c0_11, %c9, %c0_12, %c0_13], %11 {strides = array<i32>} : memref<2x10x10x4xf32, #tpu.memory_space<vmem>>, vector<2x1x10x4xf32>,
    %cst_14 = arith.constant 0.000000e+00 : f32
    %13 = vector.broadcast %cst_14 : f32 to vector<2x8x1x4xf32>
    %c0_15 = arith.constant 0 : index
    %c1_16 = arith.constant 1 : index
    %c0_17 = arith.constant 0 : index
    %c0_18 = arith.constant 0 : index
    %14 = vector.load %arg10[%c0_15, %c1_16, %c0_17, %c0_18] : memref<2x10x10x4xf32, #tpu.memory_space<vmem>>, vector<2x8x1x4xf32>
    tpu.vector_store %arg10[%c0_15, %c1_16, %c0_17, %c0_18], %13 {strides = array<i32>} : memref<2x10x10x4xf32, #tpu.memory_space<vmem>>, vector<2x8x1x4xf32>,
    %cst_19 = arith.constant 0.000000e+00 : f32
    %15 = vector.broadcast %cst_19 : f32 to vector<2x8x1x4xf32>
    %c0_20 = arith.constant 0 : index
    %c1_21 = arith.constant 1 : index
    %c9_22 = arith.constant 9 : index
    %c0_23 = arith.constant 0 : index
    %16 = vector.load %arg10[%c0_20, %c1_21, %c9_22, %c0_23] : memref<2x10x10x4xf32, #tpu.memory_space<vmem>>, vector<2x8x1x4xf32>
    tpu.vector_store %arg10[%c0_20, %c1_21, %c9_22, %c0_23], %15 {strides = array<i32>} : memref<2x10x10x4xf32, #tpu.memory_space<vmem>>, vector<2x8x1x4xf32>,
    %c0_24 = arith.constant 0 : index
    %c1_25 = arith.constant 1 : index
    %c1_26 = arith.constant 1 : index
    %c0_27 = arith.constant 0 : index
    %17 = vector.load %arg10[%c0_24, %c1_25, %c1_26, %c0_27] : memref<2x10x10x4xf32, #tpu.memory_space<vmem>>, vector<2x8x8x4xf32>
    tpu.vector_store %arg10[%c0_24, %c1_25, %c1_26, %c0_27], %8 {strides = array<i32>} : memref<2x10x10x4xf32, #tpu.memory_space<vmem>>, vector<2x8x8x4xf32>,
    %c0_28 = arith.constant 0 : index
    %c0_29 = arith.constant 0 : index
    %c0_30 = arith.constant 0 : index
    %c0_31 = arith.constant 0 : index
    %18 = vector.load %arg10[%c0_28, %c0_29, %c0_30, %c0_31] : memref<2x10x10x4xf32, #tpu.memory_space<vmem>>, vector<2x8x8x4xf32>
    %c0_32 = arith.constant 0 : index
    %c0_33 = arith.constant 0 : index
    %c1_34 = arith.constant 1 : index
    %c0_35 = arith.constant 0 : index
    %19 = vector.load %arg10[%c0_32, %c0_33, %c1_34, %c0_35] : memref<2x10x10x4xf32, #tpu.memory_space<vmem>>, vector<2x8x8x4xf32>
    %c0_36 = arith.constant 0 : index
    %c0_37 = arith.constant 0 : index
    %c2 = arith.constant 2 : index
    %c0_38 = arith.constant 0 : index
    %20 = vector.load %arg10[%c0_36, %c0_37, %c2, %c0_38] : memref<2x10x10x4xf32, #tpu.memory_space<vmem>>, vector<2x8x8x4xf32>
    %c0_39 = arith.constant 0 : index
    %c1_40 = arith.constant 1 : index
    %c0_41 = arith.constant 0 : index
    %c0_42 = arith.constant 0 : index
    %21 = vector.load %arg10[%c0_39, %c1_40, %c0_41, %c0_42] : memref<2x10x10x4xf32, #tpu.memory_space<vmem>>, vector<2x8x8x4xf32>
    %c0_43 = arith.constant 0 : index
    %c1_44 = arith.constant 1 : index
    %c1_45 = arith.constant 1 : index
    %c0_46 = arith.constant 0 : index
    %22 = vector.load %arg10[%c0_43, %c1_44, %c1_45, %c0_46] : memref<2x10x10x4xf32, #tpu.memory_space<vmem>>, vector<2x8x8x4xf32>
    %c0_47 = arith.constant 0 : index
    %c1_48 = arith.constant 1 : index
    %c2_49 = arith.constant 2 : index
    %c0_50 = arith.constant 0 : index
    %23 = vector.load %arg10[%c0_47, %c1_48, %c2_49, %c0_50] : memref<2x10x10x4xf32, #tpu.memory_space<vmem>>, vector<2x8x8x4xf32>
    %c0_51 = arith.constant 0 : index
    %c2_52 = arith.constant 2 : index
    %c0_53 = arith.constant 0 : index
    %c0_54 = arith.constant 0 : index
    %24 = vector.load %arg10[%c0_51, %c2_52, %c0_53, %c0_54] : memref<2x10x10x4xf32, #tpu.memory_space<vmem>>, vector<2x8x8x4xf32>
    %c0_55 = arith.constant 0 : index
    %c2_56 = arith.constant 2 : index
    %c1_57 = arith.constant 1 : index
    %c0_58 = arith.constant 0 : index
    %25 = vector.load %arg10[%c0_55, %c2_56, %c1_57, %c0_58] : memref<2x10x10x4xf32, #tpu.memory_space<vmem>>, vector<2x8x8x4xf32>
    %c0_59 = arith.constant 0 : index
    %c2_60 = arith.constant 2 : index
    %c2_61 = arith.constant 2 : index
    %c0_62 = arith.constant 0 : index
    %26 = vector.load %arg10[%c0_59, %c2_60, %c2_61, %c0_62] : memref<2x10x10x4xf32, #tpu.memory_space<vmem>>, vector<2x8x8x4xf32>
    %27 = tpu.concatenate %18, %19, %20, %21, %22, %23, %24, %25, %26 in 3 : vector<2x8x8x4xf32>, vector<2x8x8x4xf32>, vector<2x8x8x4xf32>, vector<2x8x8x4xf32>, vector<2x8x8x4xf32>, vector<2x8x8x4xf32>, vector<2x8x8x4xf32>, vector<2x8x8x4xf32>, vector<2x8x8x4xf32> -> vector<2x8x8x36xf32>
    %28 = vector.shape_cast %27 : vector<2x8x8x36xf32> to vector<128x36xf32>
    %29 = arith.truncf %28 : vector<128x36xf32> to vector<128x36xbf16>
    %c0_63 = arith.constant 0 : index
    %c0_64 = arith.constant 0 : index
    %30 = vector.load %arg1[%c0_63, %c0_64] : memref<36x8xbf16, #tpu.memory_space<vmem>>, vector<36x8xbf16>
    %cst_65 = arith.constant dense<0.000000e+00> : vector<128x8xf32>
    %31 = tpu.matmul %29, %30, %cst_65 {dimension_numbers = #tpu.dot_dimension_numbers<[1], [0], [0], [1], [0, 0, 1, 1], [], []>} : vector<128x36xbf16>, vector<36x8xbf16>, vector<128x8xf32> -> vector<128x8xf32>
    %c0_66 = arith.constant 0 : index
    %c0_67 = arith.constant 0 : index
    %32 = vector.load %arg2[%c0_66, %c0_67] : memref<1x8xf32, #tpu.memory_space<vmem>>, vector<1x8xf32>
    %33 = vector.broadcast %32 : vector<1x8xf32> to vector<128x8xf32>
    %34 = arith.addf %31, %33 : vector<128x8xf32>
    %cst_68 = arith.constant 0.000000e+00 : f32
    %35 = vector.broadcast %cst_68 : f32 to vector<128x8xf32>
    %36 = arith.maximumf %34, %35 : vector<128x8xf32>
    %cst_69 = arith.constant dense<0.000000e+00> : vector<8xf32>
    %37 = vector.multi_reduction <add>, %36, %cst_69 [0] : vector<128x8xf32> to vector<8xf32>
    %38 = vector.shape_cast %37 : vector<8xf32> to vector<1x8xf32>
    %cst_70 = arith.constant 7.812500e-03 : f32
    %39 = vector.broadcast %cst_70 : f32 to vector<1x8xf32>
    %40 = arith.mulf %38, %39 : vector<1x8xf32>
    %41 = arith.mulf %36, %36 : vector<128x8xf32>
    %cst_71 = arith.constant dense<0.000000e+00> : vector<8xf32>
    %42 = vector.multi_reduction <add>, %41, %cst_71 [0] : vector<128x8xf32> to vector<8xf32>
    %43 = vector.shape_cast %42 : vector<8xf32> to vector<1x8xf32>
    %cst_72 = arith.constant 7.812500e-03 : f32
    %44 = vector.broadcast %cst_72 : f32 to vector<1x8xf32>
    %45 = arith.mulf %43, %44 : vector<1x8xf32>
    %46 = arith.mulf %40, %40 : vector<1x8xf32>
    %47 = arith.subf %45, %46 : vector<1x8xf32>
    %cst_73 = arith.constant 0.000000e+00 : f32
    %48 = vector.broadcast %cst_73 : f32 to vector<1x8xf32>
    %49 = arith.maximumf %47, %48 : vector<1x8xf32>
    %c0_74 = arith.constant 0 : index
    %c0_75 = arith.constant 0 : index
    %50 = vector.load %arg3[%c0_74, %c0_75] : memref<1x8xf32, #tpu.memory_space<vmem>>, vector<1x8xf32>
    %cst_76 = arith.constant 9.99999974E-6 : f32
    %51 = vector.broadcast %cst_76 : f32 to vector<1x8xf32>
    %52 = arith.addf %49, %51 : vector<1x8xf32>
    %53 = math.rsqrt %52 : vector<1x8xf32>
    %54 = arith.mulf %50, %53 : vector<1x8xf32>
    %55 = vector.broadcast %54 : vector<1x8xf32> to vector<128x8xf32>
    %56 = arith.mulf %36, %55 : vector<128x8xf32>
    %c0_77 = arith.constant 0 : index
    %c0_78 = arith.constant 0 : index
    %57 = vector.load %arg4[%c0_77, %c0_78] : memref<1x8xf32, #tpu.memory_space<vmem>>, vector<1x8xf32>
    %58 = arith.mulf %40, %54 : vector<1x8xf32>
    %59 = arith.subf %57, %58 : vector<1x8xf32>
    %60 = vector.broadcast %59 : vector<1x8xf32> to vector<128x8xf32>
    %61 = arith.addf %56, %60 : vector<128x8xf32>
    %cst_79 = arith.constant 0.000000e+00 : f32
    %62 = vector.broadcast %cst_79 : f32 to vector<2x1x10x8xf32>
    %c0_80 = arith.constant 0 : index
    %c0_81 = arith.constant 0 : index
    %c0_82 = arith.constant 0 : index
    %c0_83 = arith.constant 0 : index
    %63 = vector.load %arg11[%c0_80, %c0_81, %c0_82, %c0_83] : memref<2x10x10x8xf32, #tpu.memory_space<vmem>>, vector<2x1x10x8xf32>
    tpu.vector_store %arg11[%c0_80, %c0_81, %c0_82, %c0_83], %62 {strides = array<i32>} : memref<2x10x10x8xf32, #tpu.memory_space<vmem>>, vector<2x1x10x8xf32>,
    %cst_84 = arith.constant 0.000000e+00 : f32
    %64 = vector.broadcast %cst_84 : f32 to vector<2x1x10x8xf32>
    %c0_85 = arith.constant 0 : index
    %c9_86 = arith.constant 9 : index
    %c0_87 = arith.constant 0 : index
    %c0_88 = arith.constant 0 : index
    %65 = vector.load %arg11[%c0_85, %c9_86, %c0_87, %c0_88] : memref<2x10x10x8xf32, #tpu.memory_space<vmem>>, vector<2x1x10x8xf32>
    tpu.vector_store %arg11[%c0_85, %c9_86, %c0_87, %c0_88], %64 {strides = array<i32>} : memref<2x10x10x8xf32, #tpu.memory_space<vmem>>, vector<2x1x10x8xf32>,
    %cst_89 = arith.constant 0.000000e+00 : f32
    %66 = vector.broadcast %cst_89 : f32 to vector<2x8x1x8xf32>
    %c0_90 = arith.constant 0 : index
    %c1_91 = arith.constant 1 : index
    %c0_92 = arith.constant 0 : index
    %c0_93 = arith.constant 0 : index
    %67 = vector.load %arg11[%c0_90, %c1_91, %c0_92, %c0_93] : memref<2x10x10x8xf32, #tpu.memory_space<vmem>>, vector<2x8x1x8xf32>
    tpu.vector_store %arg11[%c0_90, %c1_91, %c0_92, %c0_93], %66 {strides = array<i32>} : memref<2x10x10x8xf32, #tpu.memory_space<vmem>>, vector<2x8x1x8xf32>,
    %cst_94 = arith.constant 0.000000e+00 : f32
    %68 = vector.broadcast %cst_94 : f32 to vector<2x8x1x8xf32>
    %c0_95 = arith.constant 0 : index
    %c1_96 = arith.constant 1 : index
    %c9_97 = arith.constant 9 : index
    %c0_98 = arith.constant 0 : index
    %69 = vector.load %arg11[%c0_95, %c1_96, %c9_97, %c0_98] : memref<2x10x10x8xf32, #tpu.memory_space<vmem>>, vector<2x8x1x8xf32>
    tpu.vector_store %arg11[%c0_95, %c1_96, %c9_97, %c0_98], %68 {strides = array<i32>} : memref<2x10x10x8xf32, #tpu.memory_space<vmem>>, vector<2x8x1x8xf32>,
    %70 = vector.shape_cast %61 : vector<128x8xf32> to vector<2x8x8x8xf32>
    %c0_99 = arith.constant 0 : index
    %c1_100 = arith.constant 1 : index
    %c1_101 = arith.constant 1 : index
    %c0_102 = arith.constant 0 : index
    %71 = vector.load %arg11[%c0_99, %c1_100, %c1_101, %c0_102] : memref<2x10x10x8xf32, #tpu.memory_space<vmem>>, vector<2x8x8x8xf32>
    tpu.vector_store %arg11[%c0_99, %c1_100, %c1_101, %c0_102], %70 {strides = array<i32>} : memref<2x10x10x8xf32, #tpu.memory_space<vmem>>, vector<2x8x8x8xf32>,
    %c0_103 = arith.constant 0 : index
    %c0_104 = arith.constant 0 : index
    %c0_105 = arith.constant 0 : index
    %c0_106 = arith.constant 0 : index
    %72 = vector.load %arg11[%c0_103, %c0_104, %c0_105, %c0_106] : memref<2x10x10x8xf32, #tpu.memory_space<vmem>>, vector<2x8x8x8xf32>
    %c0_107 = arith.constant 0 : index
    %c0_108 = arith.constant 0 : index
    %c1_109 = arith.constant 1 : index
    %c0_110 = arith.constant 0 : index
    %73 = vector.load %arg11[%c0_107, %c0_108, %c1_109, %c0_110] : memref<2x10x10x8xf32, #tpu.memory_space<vmem>>, vector<2x8x8x8xf32>
    %c0_111 = arith.constant 0 : index
    %c0_112 = arith.constant 0 : index
    %c2_113 = arith.constant 2 : index
    %c0_114 = arith.constant 0 : index
    %74 = vector.load %arg11[%c0_111, %c0_112, %c2_113, %c0_114] : memref<2x10x10x8xf32, #tpu.memory_space<vmem>>, vector<2x8x8x8xf32>
    %c0_115 = arith.constant 0 : index
    %c1_116 = arith.constant 1 : index
    %c0_117 = arith.constant 0 : index
    %c0_118 = arith.constant 0 : index
    %75 = vector.load %arg11[%c0_115, %c1_116, %c0_117, %c0_118] : memref<2x10x10x8xf32, #tpu.memory_space<vmem>>, vector<2x8x8x8xf32>
    %c0_119 = arith.constant 0 : index
    %c1_120 = arith.constant 1 : index
    %c1_121 = arith.constant 1 : index
    %c0_122 = arith.constant 0 : index
    %76 = vector.load %arg11[%c0_119, %c1_120, %c1_121, %c0_122] : memref<2x10x10x8xf32, #tpu.memory_space<vmem>>, vector<2x8x8x8xf32>
    %c0_123 = arith.constant 0 : index
    %c1_124 = arith.constant 1 : index
    %c2_125 = arith.constant 2 : index
    %c0_126 = arith.constant 0 : index
    %77 = vector.load %arg11[%c0_123, %c1_124, %c2_125, %c0_126] : memref<2x10x10x8xf32, #tpu.memory_space<vmem>>, vector<2x8x8x8xf32>
    %c0_127 = arith.constant 0 : index
    %c2_128 = arith.constant 2 : index
    %c0_129 = arith.constant 0 : index
    %c0_130 = arith.constant 0 : index
    %78 = vector.load %arg11[%c0_127, %c2_128, %c0_129, %c0_130] : memref<2x10x10x8xf32, #tpu.memory_space<vmem>>, vector<2x8x8x8xf32>
    %c0_131 = arith.constant 0 : index
    %c2_132 = arith.constant 2 : index
    %c1_133 = arith.constant 1 : index
    %c0_134 = arith.constant 0 : index
    %79 = vector.load %arg11[%c0_131, %c2_132, %c1_133, %c0_134] : memref<2x10x10x8xf32, #tpu.memory_space<vmem>>, vector<2x8x8x8xf32>
    %c0_135 = arith.constant 0 : index
    %c2_136 = arith.constant 2 : index
    %c2_137 = arith.constant 2 : index
    %c0_138 = arith.constant 0 : index
    %80 = vector.load %arg11[%c0_135, %c2_136, %c2_137, %c0_138] : memref<2x10x10x8xf32, #tpu.memory_space<vmem>>, vector<2x8x8x8xf32>
    %81 = tpu.concatenate %72, %73, %74, %75, %76, %77, %78, %79, %80 in 3 : vector<2x8x8x8xf32>, vector<2x8x8x8xf32>, vector<2x8x8x8xf32>, vector<2x8x8x8xf32>, vector<2x8x8x8xf32>, vector<2x8x8x8xf32>, vector<2x8x8x8xf32>, vector<2x8x8x8xf32>, vector<2x8x8x8xf32> -> vector<2x8x8x72xf32>
    %82 = vector.shape_cast %81 : vector<2x8x8x72xf32> to vector<128x72xf32>
    %83 = arith.truncf %82 : vector<128x72xf32> to vector<128x72xbf16>
    %c0_139 = arith.constant 0 : index
    %c0_140 = arith.constant 0 : index
    %84 = vector.load %arg5[%c0_139, %c0_140] : memref<72x8xbf16, #tpu.memory_space<vmem>>, vector<72x8xbf16>
    %cst_141 = arith.constant dense<0.000000e+00> : vector<128x8xf32>
    %85 = tpu.matmul %83, %84, %cst_141 {dimension_numbers = #tpu.dot_dimension_numbers<[1], [0], [0], [1], [0, 0, 1, 1], [], []>} : vector<128x72xbf16>, vector<72x8xbf16>, vector<128x8xf32> -> vector<128x8xf32>
    %c0_142 = arith.constant 0 : index
    %c0_143 = arith.constant 0 : index
    %86 = vector.load %arg6[%c0_142, %c0_143] : memref<1x8xf32, #tpu.memory_space<vmem>>, vector<1x8xf32>
    %87 = vector.broadcast %86 : vector<1x8xf32> to vector<128x8xf32>
    %88 = arith.addf %85, %87 : vector<128x8xf32>
    %cst_144 = arith.constant 0.000000e+00 : f32
    %89 = vector.broadcast %cst_144 : f32 to vector<128x8xf32>
    %90 = arith.maximumf %88, %89 : vector<128x8xf32>
    %cst_145 = arith.constant dense<0.000000e+00> : vector<8xf32>
    %91 = vector.multi_reduction <add>, %90, %cst_145 [0] : vector<128x8xf32> to vector<8xf32>
    %92 = vector.shape_cast %91 : vector<8xf32> to vector<1x8xf32>
    %cst_146 = arith.constant 7.812500e-03 : f32
    %93 = vector.broadcast %cst_146 : f32 to vector<1x8xf32>
    %94 = arith.mulf %92, %93 : vector<1x8xf32>
    %95 = arith.mulf %90, %90 : vector<128x8xf32>
    %cst_147 = arith.constant dense<0.000000e+00> : vector<8xf32>
    %96 = vector.multi_reduction <add>, %95, %cst_147 [0] : vector<128x8xf32> to vector<8xf32>
    %97 = vector.shape_cast %96 : vector<8xf32> to vector<1x8xf32>
    %cst_148 = arith.constant 7.812500e-03 : f32
    %98 = vector.broadcast %cst_148 : f32 to vector<1x8xf32>
    %99 = arith.mulf %97, %98 : vector<1x8xf32>
    %100 = arith.mulf %94, %94 : vector<1x8xf32>
    %101 = arith.subf %99, %100 : vector<1x8xf32>
    %cst_149 = arith.constant 0.000000e+00 : f32
    %102 = vector.broadcast %cst_149 : f32 to vector<1x8xf32>
    %103 = arith.maximumf %101, %102 : vector<1x8xf32>
    %c0_150 = arith.constant 0 : index
    %c0_151 = arith.constant 0 : index
    %104 = vector.load %arg7[%c0_150, %c0_151] : memref<1x8xf32, #tpu.memory_space<vmem>>, vector<1x8xf32>
    %cst_152 = arith.constant 9.99999974E-6 : f32
    %105 = vector.broadcast %cst_152 : f32 to vector<1x8xf32>
    %106 = arith.addf %103, %105 : vector<1x8xf32>
    %107 = math.rsqrt %106 : vector<1x8xf32>
    %108 = arith.mulf %104, %107 : vector<1x8xf32>
    %109 = vector.broadcast %108 : vector<1x8xf32> to vector<128x8xf32>
    %110 = arith.mulf %90, %109 : vector<128x8xf32>
    %c0_153 = arith.constant 0 : index
    %c0_154 = arith.constant 0 : index
    %111 = vector.load %arg8[%c0_153, %c0_154] : memref<1x8xf32, #tpu.memory_space<vmem>>, vector<1x8xf32>
    %112 = arith.mulf %94, %108 : vector<1x8xf32>
    %113 = arith.subf %111, %112 : vector<1x8xf32>
    %114 = vector.broadcast %113 : vector<1x8xf32> to vector<128x8xf32>
    %115 = arith.addf %110, %114 : vector<128x8xf32>
    %116 = vector.shape_cast %115 : vector<128x8xf32> to vector<2x8x8x8xf32>
    %c0_155 = arith.constant 0 : index
    %c0_156 = arith.constant 0 : index
    %c0_157 = arith.constant 0 : index
    %c0_158 = arith.constant 0 : index
    %117 = vector.load %arg9[%c0_155, %c0_156, %c0_157, %c0_158] : memref<2x8x8x8xf32, #tpu.memory_space<vmem>>, vector<2x8x8x8xf32>
    tpu.vector_store %arg9[%c0_155, %c0_156, %c0_157, %c0_158], %116 {strides = array<i32>} : memref<2x8x8x8xf32, #tpu.memory_space<vmem>>, vector<2x8x8x8xf32>,
    return
  }
}

</mosaic_0001>

<bundles_post_ra>
// kernel: tpu_custom_call.1
= control target key start
LH: loop header
LB: loop body
LE: loop exit
PB: predicated region body
PF: predicated region fallthrough
CT: control target
= control target key end

     0   :  { %vm209_vm0 = vcmask 31744   ;;  %vm211_vm1 = vcmask 25600   ;;  %v3459_v6 = vmov 0.0   ;;  %vm221_vm2 = vcmask 24576   ;;  %s3460_s16 = smov 8   ;;  %s3461_s17 = smov 4   ;;  %s4877_s0 = inlined_call_operand.vmem [shape: f32[2,16,16,4], index: 0, kind: input, shape index: {}]   ;;  %s4878_s1 = inlined_call_operand.vmem [shape: bf16[36,8], index: 1, kind: input, shape index: {}]   ;;  %s4879_s2 = inlined_call_operand.vmem [shape: f32[1,8], index: 2, kind: input, shape index: {}]   ;;  %s4880_s3 = inlined_call_operand.vmem [shape: f32[1,8], index: 3, kind: input, shape index: {}]   ;;  %s4881_s4 = inlined_call_operand.vmem [shape: f32[1,8], index: 4, kind: input, shape index: {}]   ;;  %s4882_s5 = inlined_call_operand.vmem [shape: bf16[72,8], index: 5, kind: input, shape index: {}]   ;;  %s4883_s6 = inlined_call_operand.vmem [shape: f32[1,8], index: 6, kind: input, shape index: {}]   ;;  %s4884_s7 = inlined_call_operand.vmem [shape: f32[1,8], index: 7, kind: input, shape index: {}]   ;;  %s4885_s8 = inlined_call_operand.vmem [shape: f32[1,8], index: 8, kind: input, shape index: {}]   ;;  %s4886_s9 = inlined_call_operand.hbm [shape: f32[2,8,8,8], index: 9, kind: output, shape index: {}]  }
   0x1   :  { %v34_v0 = vld [vmem:[%s4877_s0] ss:$2 sm:$0xff]  ;;  %v2605_v1 = vld [vmem:[%s4877_s0 + $0x10] ss:$2 sm:$0xff]  ;;  %v2636_v2 = vld [vmem:[%s4877_s0 + $0x1] ss:$2 sm:$0xff] }
   0x2   :  { %v2637_v3 = vld [vmem:[%s4877_s0 + $0x11] ss:$2 sm:$0xff]  ;;  %v161_v4 = vmax.f32 %v34_v0, %v2636_v2  ;;  %210 = vst.msk [vmem:[#allocation2] sm:$0xff] %vm209_vm0, %v3459_v6  ;;  %213 = vst.msk [vmem:[#allocation2 + $0xa0] sm:$0xff] %vm209_vm0, %v3459_v6  ;;  %v2606_v7 = vld [vmem:[%s4877_s0 + $0x20] ss:$2 sm:$0xff] }
   0x3   :  { %v162_v5 = vmax.f32 %v2605_v1, %v2637_v3  ;;  %212 = vst.msk [vmem:[#allocation2 + $0x8] sm:$0x3] %vm211_vm1, %v3459_v6  ;;  %214 = vst.msk [vmem:[#allocation2 + $0xa8] sm:$0x3] %vm211_vm1, %v3459_v6  ;;  %v2607_v8 = vld [vmem:[%s4877_s0 + $0x30] ss:$2 sm:$0xff] }
   0x4   :  { %216 = vst.msk [vmem:[#allocation2 + $0x90] sm:$0xff] %vm209_vm0, %v3459_v6  ;;  %218 = vst.msk [vmem:[#allocation2 + $0x130] sm:$0xff] %vm209_vm0, %v3459_v6  ;;  %v2608_v9 = vld [vmem:[%s4877_s0 + $0x40] ss:$2 sm:$0xff]  ;;  %v2609_v10 = vld [vmem:[%s4877_s0 + $0x50] ss:$2 sm:$0xff] }
   0x5   :  { %217 = vst.msk [vmem:[#allocation2 + $0x98] sm:$0x3] %vm211_vm1, %v3459_v6  ;;  %219 = vst.msk [vmem:[#allocation2 + $0x138] sm:$0x3] %vm211_vm1, %v3459_v6  ;;  %v2638_v11 = vld [vmem:[%s4877_s0 + $0x21] ss:$2 sm:$0xff]  ;;  %v193_v12 = vmax.f32 %v161_v4, %v162_v5 }
   0x6   :  { %238 = vst.msk [vmem:[#allocation2 + $0x19] sm:$0x1] %vm221_vm2, %v3459_v6  ;;  %222 = vst.msk [vmem:[#allocation2 + $0x10] sm:$0x1] %vm221_vm2, %v3459_v6  ;;  %v2639_v13 = vld [vmem:[%s4877_s0 + $0x31] ss:$2 sm:$0xff]  ;;  %v163_v16 = vmax.f32 %v2606_v7, %v2638_v11 }
   0x7   :  { %223 = vst.msk [vmem:[#allocation2 + $0x20] sm:$0x1] %vm221_vm2, %v3459_v6  ;;  %224 = vst.msk [vmem:[#allocation2 + $0x30] sm:$0x1] %vm221_vm2, %v3459_v6  ;;  %v2640_v14 = vld [vmem:[%s4877_s0 + $0x41] ss:$2 sm:$0xff]  ;;  %v164_v17 = vmax.f32 %v2607_v8, %v2639_v13 }
   0x8   :  { %225 = vst.msk [vmem:[#allocation2 + $0x40] sm:$0x1] %vm221_vm2, %v3459_v6  ;;  %226 = vst.msk [vmem:[#allocation2 + $0x50] sm:$0x1] %vm221_vm2, %v3459_v6  ;;  %v2641_v15 = vld [vmem:[%s4877_s0 + $0x51] ss:$2 sm:$0xff]  ;;  %v165_v18 = vmax.f32 %v2608_v9, %v2640_v14 }
   0x9   :  { %227 = vst.msk [vmem:[#allocation2 + $0x60] sm:$0x1] %vm221_vm2, %v3459_v6  ;;  %228 = vst.msk [vmem:[#allocation2 + $0x70] sm:$0x1] %vm221_vm2, %v3459_v6  ;;  %v166_v19 = vmax.f32 %v2609_v10, %v2641_v15  ;;  %v2610_v20 = vld [vmem:[%s4877_s0 + $0x60] ss:$2 sm:$0xff]  ;;  %v194_v26 = vmax.f32 %v163_v16, %v164_v17 }
   0xa   :  { %229 = vst.msk [vmem:[#allocation2 + $0x80] sm:$0x1] %vm221_vm2, %v3459_v6  ;;  %230 = vst.msk [vmem:[#allocation2 + $0xb0] sm:$0x1] %vm221_vm2, %v3459_v6  ;;  %v2611_v21 = vld [vmem:[%s4877_s0 + $0x70] ss:$2 sm:$0xff] }
   0xb   :  { %231 = vst.msk [vmem:[#allocation2 + $0xc0] sm:$0x1] %vm221_vm2, %v3459_v6  ;;  %232 = vst.msk [vmem:[#allocation2 + $0xd0] sm:$0x1] %vm221_vm2, %v3459_v6  ;;  %v2642_v22 = vld [vmem:[%s4877_s0 + $0x61] ss:$2 sm:$0xff]  ;;  %v195_v27 = vmax.f32 %v165_v18, %v166_v19 }
   0xc   :  { %233 = vst.msk [vmem:[#allocation2 + $0xe0] sm:$0x1] %vm221_vm2, %v3459_v6  ;;  %234 = vst.msk [vmem:[#allocation2 + $0xf0] sm:$0x1] %vm221_vm2, %v3459_v6  ;;  %v2643_v23 = vld [vmem:[%s4877_s0 + $0x71] ss:$2 sm:$0xff]  ;;  %v167_v24 = vmax.f32 %v2610_v20, %v2642_v22 }
   0xd   :  { %235 = vst.msk [vmem:[#allocation2 + $0x100] sm:$0x1] %vm221_vm2, %v3459_v6  ;;  %236 = vst.msk [vmem:[#allocation2 + $0x110] sm:$0x1] %vm221_vm2, %v3459_v6  ;;  %v2612_v25 = vld [vmem:[%s4877_s0 + $0x80] ss:$2 sm:$0xff]  ;;  %v168_v28 = vmax.f32 %v2611_v21, %v2643_v23 }
   0xe   :  { %237 = vst.msk [vmem:[#allocation2 + $0x120] sm:$0x1] %vm221_vm2, %v3459_v6  ;;  %239 = vst.msk [vmem:[#allocation2 + $0x29] sm:$0x1] %vm221_vm2, %v3459_v6  ;;  %v2613_v29 = vld [vmem:[%s4877_s0 + $0x90] ss:$2 sm:$0xff] }
   0xf   :  { %240 = vst.msk [vmem:[#allocation2 + $0x39] sm:$0x1] %vm221_vm2, %v3459_v6  ;;  %241 = vst.msk [vmem:[#allocation2 + $0x49] sm:$0x1] %vm221_vm2, %v3459_v6  ;;  %v2644_v30 = vld [vmem:[%s4877_s0 + $0x81] ss:$2 sm:$0xff]  ;;  %v196_v36 = vmax.f32 %v167_v24, %v168_v28 }
  0x10   :  { %242 = vst.msk [vmem:[#allocation2 + $0x59] sm:$0x1] %vm221_vm2, %v3459_v6  ;;  %243 = vst.msk [vmem:[#allocation2 + $0x69] sm:$0x1] %vm221_vm2, %v3459_v6  ;;  %v2645_v31 = vld [vmem:[%s4877_s0 + $0x91] ss:$2 sm:$0xff]  ;;  %v169_v32 = vmax.f32 %v2612_v25, %v2644_v30 }
  0x11   :  { %244 = vst.msk [vmem:[#allocation2 + $0x79] sm:$0x1] %vm221_vm2, %v3459_v6  ;;  %245 = vst.msk [vmem:[#allocation2 + $0x89] sm:$0x1] %vm221_vm2, %v3459_v6  ;;  %v2614_v33 = vld [vmem:[%s4877_s0 + $0xa0] ss:$2 sm:$0xff]  ;;  %v170_v37 = vmax.f32 %v2613_v29, %v2645_v31 }
  0x12   :  { %246 = vst.msk [vmem:[#allocation2 + $0xb9] sm:$0x1] %vm221_vm2, %v3459_v6  ;;  %247 = vst.msk [vmem:[#allocation2 + $0xc9] sm:$0x1] %vm221_vm2, %v3459_v6  ;;  %v302_v34 = vld [vmem:[#allocation2 + $0x2] sm:$0xff]  ;;  %vm943_vm3 = vcmask 64512  }
  0x13   :  { %248 = vst.msk [vmem:[#allocation2 + $0xd9] sm:$0x1] %vm221_vm2, %v3459_v6  ;;  %249 = vst.msk [vmem:[#allocation2 + $0xe9] sm:$0x1] %vm221_vm2, %v3459_v6  ;;  %v286_v35 = vld [vmem:[#allocation2 + $0x1] sm:$0xff]  ;;  %v197_v42 = vmax.f32 %v169_v32, %v170_v37  ;;  %s3462_s13 = smov 12  }
  0x14   :  { %250 = vst.msk [vmem:[#allocation2 + $0xf9] sm:$0x1] %vm221_vm2, %v3459_v6  ;;  %251 = vst.msk [vmem:[#allocation2 + $0x109] sm:$0x1] %vm221_vm2, %v3459_v6  ;;  %v2615_v38 = vld [vmem:[%s4877_s0 + $0xb0] ss:$2 sm:$0xff] }
  0x15   :  { %252 = vst.msk [vmem:[#allocation2 + $0x119] sm:$0x1] %vm221_vm2, %v3459_v6  ;;  %253 = vst.msk [vmem:[#allocation2 + $0x129] sm:$0x1] %vm221_vm2, %v3459_v6  ;;  %v2616_v39 = vld [vmem:[%s4877_s0 + $0xc0] ss:$2 sm:$0xff] }
  0x16   :  { %254 = vst.msk [vmem:[#allocation2 + $0x11] sm:$0xff] %vm209_vm0, %v193_v12  ;;  %255 = vst.msk [vmem:[#allocation2 + $0x21] sm:$0xff] %vm209_vm0, %v194_v26  ;;  %v2617_v40 = vld [vmem:[%s4877_s0 + $0xd0] ss:$2 sm:$0xff]  ;;  %v2646_v41 = vld [vmem:[%s4877_s0 + $0xa1] ss:$2 sm:$0xff] }
  0x17   :  { %256 = vst.msk [vmem:[#allocation2 + $0x31] sm:$0xff] %vm209_vm0, %v195_v27  ;;  %257 = vst.msk [vmem:[#allocation2 + $0x41] sm:$0xff] %vm209_vm0, %v196_v36  ;;  %v2647_v43 = vld [vmem:[%s4877_s0 + $0xb1] ss:$2 sm:$0xff]  ;;  %v2648_v44 = vld [vmem:[%s4877_s0 + $0xc1] ss:$2 sm:$0xff]  ;;  %v171_v46 = vmax.f32 %v2614_v33, %v2646_v41 }
  0x18   :  { %1385 = vst.msk [vmem:[#allocation3] sm:$0xff] %vm943_vm3, %v3459_v6  ;;  %1388 = vst.msk [vmem:[#allocation3 + $0xa0] sm:$0xff] %vm943_vm3, %v3459_v6  ;;  %v2649_v45 = vld [vmem:[%s4877_s0 + $0xd1] ss:$2 sm:$0xff]  ;;  %v172_v47 = vmax.f32 %v2615_v38, %v2647_v43  ;;  %v173_v48 = vmax.f32 %v2616_v39, %v2648_v44  ;;  %v2618_v50 = vld [vmem:[%s4877_s0 + $0xe0] ss:$2 sm:$0xff] }
  0x19   :  { %1391 = vst.msk [vmem:[#allocation3 + $0x90] sm:$0xff] %vm943_vm3, %v3459_v6  ;;  %1393 = vst.msk [vmem:[#allocation3 + $0x130] sm:$0xff] %vm943_vm3, %v3459_v6  ;;  %v174_v49 = vmax.f32 %v2617_v40, %v2649_v45  ;;  %v2619_v51 = vld [vmem:[%s4877_s0 + $0xf0] ss:$2 sm:$0xff]  ;;  %v2650_v52 = vld [vmem:[%s4877_s0 + $0xe1] ss:$2 sm:$0xff] }
  0x1a   :  { %258 = vst.msk [vmem:[#allocation2 + $0x51] sm:$0xff] %vm209_vm0, %v197_v42  ;;  %v175_v55 = vmax.f32 %v2618_v50, %v2650_v52  ;;  %v198_v58 = vmax.f32 %v171_v46, %v172_v47  ;;  %v2651_v60 = vld [vmem:[%s4877_s0 + $0xf1] ss:$2 sm:$0xff]  ;;  %v2620_v63 = vld [vmem:[%s4877_s0 + $0x100] ss:$2 sm:$0xff]  ;;  %s3463_s24 = smov 16  }
  0x1b   :  { %v199_v59 = vmax.f32 %v173_v48, %v174_v49  ;;  %v176_v62 = vmax.f32 %v2619_v51, %v2651_v60  ;;  %v2621_v0 = vld [vmem:[%s4877_s0 + $0x110] ss:$2 sm:$0xff]  ;;  %v2652_v1 = vld [vmem:[%s4877_s0 + $0x101] ss:$2 sm:$0xff]  ;;  %v2653_v14 = vld [vmem:[%s4877_s0 + $0x111] ss:$2 sm:$0xff] }
  0x1c   :  { %259 = vst.msk [vmem:[#allocation2 + $0x61] sm:$0xff] %vm209_vm0, %v198_v58  ;;  %v177_v13 = vmax.f32 %v2620_v63, %v2652_v1  ;;  %v178_v17 = vmax.f32 %v2621_v0, %v2653_v14  ;;  %v2622_v18 = vld [vmem:[%s4877_s0 + $0x120] ss:$2 sm:$0xff]  ;;  %v2623_v20 = vld [vmem:[%s4877_s0 + $0x130] ss:$2 sm:$0xff]  ;;  %s3464_s23 = smov 20  }
  0x1d   :  { %v3705_v53 = vld [vmem:[#allocation2 + $0x12] sm:$0xff]  ;;  %v3728_v2 = vld [vmem:[#allocation2 + $0x22] sm:$0xff]  ;;  %260 = vst.msk [vmem:[#allocation2 + $0x71] sm:$0xff] %vm209_vm0, %v199_v59  ;;  %v200_v10 = vmax.f32 %v175_v55, %v176_v62  ;;  %s3465_s25 = smov 24   ;;  %s3466_s11 = smov 28   ;;  %vm1122_vm4 = vcmask 1041408  }
  0x1e   :  { %v3707_v54 = vld [vmem:[#allocation2 + $0x11] sm:$0xff]  ;;  %v2793_v56 = vpack.i.bf16 %v3705_v53, %v302_v34  ;;  %v288_v4 = vld [vmem:[#allocation2 + $0x21] sm:$0xff]  ;;  %v201_v22 = vmax.f32 %v177_v13, %v178_v17  ;;  %v2823_v40 = vpack.i.bf16 %v3728_v2, %v3705_v53  ;;  %s3467_s14 = smov 32  }
  0x1f   :  { %v2783_v57 = vpack.i.bf16 %v3707_v54, %v286_v35  ;;  %v3715_v61 = vld [vmem:[#allocation2 + $0x10] sm:$0xff]  ;;  %v3740_v9 = vld [vmem:[#allocation2 + $0x20] sm:$0xff]  ;;  %261 = vst.msk [vmem:[#allocation2 + $0x81] sm:$0xff] %vm209_vm0, %v200_v10  ;;  %v2813_v30 = vpack.i.bf16 %v288_v4, %v3707_v54 }
  0x20   :  { %2794 = vrot.lane.b32.xlu1 %v2793_v56, %s3460_s16  ;;  %v3730_v3 = vld [vmem:[#allocation2 + $0x32] sm:$0xff]  ;;  %v3744_v12 = vld [vmem:[#allocation2 + $0x40] sm:$0xff]  ;;  %v2803_v16 = vpack.i.bf16 %v3740_v9, %v3715_v61  ;;  %262 = vst.msk [vmem:[#allocation2 + $0xb1] sm:$0xff] %vm209_vm0, %v201_v22 }
  0x21   :  { %2784 = vrot.lane.b32.xlu0 %v2783_v57, %s3461_s17  ;;  %v3736_v5 = vpack.i.bf16 %v3730_v3, %v3728_v2  ;;  %v289_v7 = vld [vmem:[#allocation2 + $0x31] sm:$0xff]  ;;  %v3761_v19 = vld [vmem:[#allocation2 + $0x41] sm:$0xff] }
  0x22   :  { %v3738_v8 = vld [vmem:[#allocation2 + $0x30] sm:$0xff]  ;;  %v3742_v11 = vpack.i.bf16 %v289_v7, %v288_v4  ;;  %v2624_v21 = vld [vmem:[%s4877_s0 + $0x140] ss:$2 sm:$0xff]  ;;  %v2654_v23 = vld [vmem:[%s4877_s0 + $0x121] ss:$2 sm:$0xff]  ;;  %v2818_v29 = vpack.i.bf16 %v3761_v19, %v289_v7 }
  0x23   :  { %v2808_v15 = vpack.i.bf16 %v3744_v12, %v3738_v8  ;;  %v2655_v24 = vld [vmem:[%s4877_s0 + $0x131] ss:$2 sm:$0xff]  ;;  %v2656_v25 = vld [vmem:[%s4877_s0 + $0x141] ss:$2 sm:$0xff]  ;;  %v2625_v26 = vld [vmem:[%s4877_s0 + $0x150] ss:$2 sm:$0xff]  ;;  %v179_v27 = vmax.f32 %v2622_v18, %v2654_v23  ;;  %v2833_v57 = vpack.i.bf16 %v3738_v8, %v3740_v9 }
  0x24   :  { %2799 = vrot.lane.b32.xlu1 %v3736_v5, %s3460_s16  ;;  %v180_v28 = vmax.f32 %v2623_v20, %v2655_v24  ;;  %v181_v31 = vmax.f32 %v2624_v21, %v2656_v25  ;;  %v3786_v32 = vld [vmem:[#allocation2 + $0x42] sm:$0xff]  ;;  %v2657_v33 = vld [vmem:[%s4877_s0 + $0x151] ss:$2 sm:$0xff]  ;;  %v2627_v37 = vld [vmem:[%s4877_s0 + $0x170] ss:$2 sm:$0xff] }
  0x25   :  { %2789 = vrot.lane.b32.xlu0 %v3742_v11, %s3461_s17  ;;  %v182_v35 = vmax.f32 %v2625_v26, %v2657_v33  ;;  %v2626_v36 = vld [vmem:[%s4877_s0 + $0x160] ss:$2 sm:$0xff]  ;;  %v2658_v38 = vld [vmem:[%s4877_s0 + $0x161] ss:$2 sm:$0xff]  ;;  %v2828_v39 = vpack.i.bf16 %v3786_v32, %v3730_v3  ;;  %v3807_v41 = vld [vmem:[#allocation2 + $0x50] sm:$0xff] }
  0x26   :  { %v202_v34 = vmax.f32 %v179_v27, %v180_v28  ;;  %v2659_v43 = vld [vmem:[%s4877_s0 + $0x171] ss:$2 sm:$0xff]  ;;  %v2628_v44 = vld [vmem:[%s4877_s0 + $0x180] ss:$2 sm:$0xff]  ;;  %v183_v45 = vmax.f32 %v2626_v36, %v2658_v38  ;;  %v2629_v47 = vld [vmem:[%s4877_s0 + $0x190] ss:$2 sm:$0xff]  ;;  %v2838_v56 = vpack.i.bf16 %v3807_v41, %v3744_v12 }
  0x27   :  { %v203_v42 = vmax.f32 %v181_v31, %v182_v35  ;;  %v184_v46 = vmax.f32 %v2627_v37, %v2659_v43  ;;  %v2660_v48 = vld [vmem:[%s4877_s0 + $0x181] ss:$2 sm:$0xff]  ;;  %v2661_v49 = vld [vmem:[%s4877_s0 + $0x191] ss:$2 sm:$0xff]  ;;  %v2630_v52 = vld [vmem:[%s4877_s0 + $0x1a0] ss:$2 sm:$0xff] }
  0x28   :  { %2809 = vrot.lane.b32.xlu1 %v2808_v15, %s3462_s13  ;;  %263 = vst.msk [vmem:[#allocation2 + $0xc1] sm:$0xff] %vm209_vm0, %v202_v34  ;;  %v185_v50 = vmax.f32 %v2628_v44, %v2660_v48  ;;  %v186_v51 = vmax.f32 %v2629_v47, %v2661_v49  ;;  %v2631_v54 = vld [vmem:[%s4877_s0 + $0x1b0] ss:$2 sm:$0xff]  ;;  %v2632_v55 = vld [vmem:[%s4877_s0 + $0x1c0] ss:$2 sm:$0xff] }
  0x29   :  { %2804 = vrot.lane.b32.xlu0 %v2803_v16, %s3462_s13  ;;  %264 = vst.msk [vmem:[#allocation2 + $0xd1] sm:$0xff] %vm209_vm0, %v203_v42  ;;  %v204_v53 = vmax.f32 %v183_v45, %v184_v46  ;;  %v3840_v58 = vld [vmem:[#allocation2 + $0x51] sm:$0xff]  ;;  %v2662_v62 = vld [vmem:[%s4877_s0 + $0x1a1] ss:$2 sm:$0xff]  ;;  %v2634_v13 = vld [vmem:[%s4877_s0 + $0x1e0] ss:$2 sm:$0xff] }
  0x2a   :  { %v205_v59 = vmax.f32 %v185_v50, %v186_v51  ;;  %v2633_v60 = vld [vmem:[%s4877_s0 + $0x1d0] ss:$2 sm:$0xff]  ;;  %v2663_v63 = vld [vmem:[%s4877_s0 + $0x1b1] ss:$2 sm:$0xff]  ;;  %v2664_v0 = vld [vmem:[%s4877_s0 + $0x1c1] ss:$2 sm:$0xff]  ;;  %v187_v2 = vmax.f32 %v2630_v52, %v2662_v62  ;;  %v2848_v10 = vpack.i.bf16 %v3840_v58, %v3761_v19 }
  0x2b   :  { %265 = vst.msk [vmem:[#allocation2 + $0xe1] sm:$0xff] %vm209_vm0, %v204_v53  ;;  %v2665_v1 = vld [vmem:[%s4877_s0 + $0x1d1] ss:$2 sm:$0xff]  ;;  %v188_v3 = vmax.f32 %v2631_v54, %v2663_v63  ;;  %v189_v4 = vmax.f32 %v2632_v55, %v2664_v0  ;;  %v2635_v14 = vld [vmem:[%s4877_s0 + $0x1f0] ss:$2 sm:$0xff]  ;;  %v3423_v21 = vld [vmem:[%s4878_s1] sm:$0xff]  }
  0x2c   :  { %2819 = vrot.lane.b32.xlu1 %v2818_v29, %s3463_s24  ;;  %266 = vst.msk [vmem:[#allocation2 + $0xf1] sm:$0xff] %vm209_vm0, %v205_v59  ;;  %v190_v7 = vmax.f32 %v2633_v60, %v2665_v1  ;;  %v2666_v15 = vld [vmem:[%s4877_s0 + $0x1e1] ss:$2 sm:$0xff]  ;;  %v2667_v18 = vld [vmem:[%s4877_s0 + $0x1f1] ss:$2 sm:$0xff]  ;;  %2718 = vmatprep.subr.bf16.mxu0 %v3423_v21 }
  0x2d   :  { %2814 = vrot.lane.b32.xlu0 %v2813_v30, %s3463_s24  ;;  %v206_v16 = vmax.f32 %v187_v2, %v188_v3  ;;  %v191_v19 = vmax.f32 %v2634_v13, %v2666_v15  ;;  %v192_v20 = vmax.f32 %v2635_v14, %v2667_v18  ;;  %v3424_v23 = vld [vmem:[%s4878_s1 + $0x8] sm:$0xff]   ;;  %v293_v25 = vld [vmem:[#allocation2 + $0x71] sm:$0xff]  ;;  %2719 = vmatpush3.bf16.msra.mxu0 %v3423_v21  ;;  %v3425_v27 = vld [vmem:[%s4878_s1 + $0x10] ss:$0 sps:$4 sm:$0x33]  }
  0x2e   :  { %v207_v17 = vmax.f32 %v189_v4, %v190_v7  ;;  %v292_v24 = vld [vmem:[#allocation2 + $0x61] sm:$0xff]  ;;  %v402_v26 = vld [vmem:[#allocation2 + $0x52] sm:$0xff]  ;;  %2720 = vmatprep.subr.bf16.mxu0 %v3424_v23  ;;  %v1124_v31 = vsel %vm1122_vm4, %v3425_v27, 0 }
  0x2f   :  { %267 = vst.msk [vmem:[#allocation2 + $0x101] sm:$0xff] %vm209_vm0, %v206_v16  ;;  %v208_v22 = vmax.f32 %v191_v19, %v192_v20  ;;  %v2863_v28 = vpack.i.bf16 %v402_v26, %v3786_v32  ;;  %v308_v29 = vld [vmem:[#allocation2 + $0x62] sm:$0xff]  ;;  %v309_v30 = vld [vmem:[#allocation2 + $0x72] sm:$0xff] }
  0x30   :  { %2829 = vrot.lane.b32.xlu1 %v2828_v39, %s3464_s23  ;;  %268 = vst.msk [vmem:[#allocation2 + $0x111] sm:$0xff] %vm209_vm0, %v207_v17  ;;  %v2878_v33 = vpack.i.bf16 %v309_v30, %v308_v29  ;;  %v3896_v34 = vld [vmem:[#allocation2 + $0x70] sm:$0xff]  ;;  %v3898_v35 = vld [vmem:[#allocation2 + $0x60] sm:$0xff] }
  0x31   :  { %2824 = vrot.lane.b32.xlu0 %v2823_v40, %s3464_s23  ;;  %269 = vst.msk [vmem:[#allocation2 + $0x121] sm:$0xff] %vm209_vm0, %v208_v22  ;;  %2721 = vmatpush3.bf16.msra.mxu0 %v3424_v23  ;;  %v325_v36 = vld [vmem:[#allocation2 + $0x80] sm:$0xff] }
  0x32   :  { %2766 = vmatprep.subr.msk.bf16.mxu0 %vm1122_vm4, %v3425_v27 }
  0x34   :  { %2839 = vrot.lane.b32.xlu1 %v2838_v56, %s3465_s25 }
  0x35   :  { %2834 = vrot.lane.b32.xlu0 %v2833_v57, %s3465_s25 }
  0x38   :  { %2849 = vrot.lane.b32.xlu1 %v2848_v10, %s3466_s11 }
  0x39   :  { %2844 = vrot.lane.b32.xlu0 %v3742_v11, %s3466_s11  ;;  %v2868_v11 = vpack.i.bf16 %v293_v25, %v292_v24 }
  0x3c   :  { %2859 = vrot.lane.b32.xlu1 %v2848_v10, %s3461_s17 }
  0x3d   :  { %2854 = vrot.lane.b32.xlu0 %v3736_v5, %s3467_s14 }
  0x40   :  { %2869 = vrot.lane.b32.xlu1 %v2868_v11, %s3461_s17 }
  0x41   :  { %2864 = vrot.lane.b32.xlu0 %v2863_v28, %s3467_s14 }
  0x42   :  { %14 = vsyncpa [#allocation5], 0  ;;  %2723 = vmatpush3.bf16.msra.mxu0 %v1124_v31  ;;  %v2888_v5 = vpack.i.bf16 %v325_v36, %v3896_v34  ;;  %v2883_v32 = vpack.i.bf16 %v3898_v35, %v3807_v41  ;;  %v341_v37 = vld [vmem:[#allocation2 + $0x81] sm:$0xff]  ;;  %v2893_v39 = vpack.i.bf16 %v292_v24, %v3840_v58  ;;  %v2903_v43 = vpack.i.bf16 %v308_v29, %v402_v26  ;;  %v374_v44 = vld [vmem:[#allocation2 + $0x90] sm:$0xff]  ;;  %s3468_s20 = smov 40   ;;  %s3469_s26 = smov 48  }
  0x43   :  { %v2898_v38 = vpack.i.bf16 %v341_v37, %v293_v25  ;;  %v357_v40 = vld [vmem:[#allocation2 + $0x82] sm:$0xff]  ;;  %v2918_v45 = vpack.i.bf16 %v374_v44, %v325_v36  ;;  %v2913_v46 = vpack.i.bf16 %v3896_v34, %v3898_v35  ;;  %v390_v47 = vld [vmem:[#allocation2 + $0x91] sm:$0xff]  ;;  %vm960_vm5 = vcmask 97280   ;;  %s3470_s29 = smov 56  }
  0x44   :  { %2879 = vrot.lane.b32.xlu1 %v2878_v33, %s3460_s16  ;;  %v2908_v42 = vpack.i.bf16 %v357_v40, %v309_v30  ;;  %v2928_v48 = vpack.i.bf16 %v390_v47, %v341_v37  ;;  %v294_v49 = vld [vmem:[#allocation2 + $0xa1] sm:$0xff]  ;;  %v295_v50 = vld [vmem:[#allocation2 + $0xb1] sm:$0xff]  ;;  %vm977_vm6 = vcmask 130048   ;;  %vm994_vm7 = vcmask 162816  }
  0x45   :  { %2874 = vrot.lane.b32.xlu0 %v2863_v28, %s3460_s16  ;;  %v2938_v51 = vpack.i.bf16 %v295_v50, %v294_v49  ;;  %v296_v52 = vld [vmem:[#allocation2 + $0xc1] sm:$0xff]  ;;  %v297_v53 = vld [vmem:[#allocation2 + $0xd1] sm:$0xff]  ;;  %vm1011_vm8 = vcmask 195584   ;;  %vm1028_vm9 = vcmask 228352   ;;  %vm1045_vm10 = vcmask 261120  }
  0x46   :  { %v406_v54 = vld [vmem:[#allocation2 + $0x92] sm:$0xff]  ;;  %v2948_v55 = vpack.i.bf16 %v297_v53, %v296_v52  ;;  %v310_v57 = vld [vmem:[#allocation2 + $0xa2] sm:$0xff]  ;;  %v2973_v14 = vpack.i.bf16 %v296_v52, %v295_v50  ;;  %vm1097_vm11 = vcmask 293888   ;;  %vm1386_vm12 = vcmask 58368  }
  0x47   :  { %v2943_v56 = vpack.i.bf16 %v406_v54, %v357_v40  ;;  %v312_v58 = vld [vmem:[#allocation2 + $0xc2] sm:$0xff]  ;;  %v313_v59 = vld [vmem:[#allocation2 + $0xd2] sm:$0xff]  ;;  %vm1396_vm13 = vcmask 57344   ;;  %1387 = vst.msk [vmem:[#allocation3 + $0x8] sm:$0x3] %vm1386_vm12, %v3459_v6  ;;  %vm2310_vm14 = vcmask 1043456  }
  0x48   :  { %2889 = vrot.lane.b32.xlu1 %v2888_v5, %s3462_s13  ;;  %v311_v60 = vld [vmem:[#allocation2 + $0xb2] sm:$0xff]  ;;  %v2958_v62 = vpack.i.bf16 %v313_v59, %v312_v58  ;;  %v3926_v2 = vld [vmem:[#allocation2 + $0xe0] sm:$0xff]  ;;  %1389 = vst.msk [vmem:[#allocation3 + $0xa8] sm:$0x3] %vm1386_vm12, %v3459_v6  ;;  %1392 = vst.msk [vmem:[#allocation3 + $0x98] sm:$0x3] %vm1386_vm12, %v3459_v6 }
  0x49   :  { %2884 = vrot.lane.b32.xlu0 %v2883_v32, %s3462_s13  ;;  %v2953_v63 = vpack.i.bf16 %v311_v60, %v310_v57  ;;  %v3922_v0 = vld [vmem:[#allocation2 + $0xb0] sm:$0xff]  ;;  %v3928_v3 = vld [vmem:[#allocation2 + $0xc0] sm:$0xff]  ;;  %v2983_v17 = vpack.i.bf16 %v312_v58, %v311_v60  ;;  %1394 = vst.msk [vmem:[#allocation3 + $0x138] sm:$0x3] %vm1386_vm12, %v3459_v6  ;;  %vm2166_vm15 = vcmask 326656   ;;  %vm2200_vm1 = vcmask 457728  }
  0x4a   :  { %v3924_v1 = vld [vmem:[#allocation2 + $0xd0] sm:$0xff]  ;;  %v2963_v7 = vpack.i.bf16 %v3928_v3, %v3922_v0  ;;  %v345_v10 = vld [vmem:[#allocation2 + $0xe1] sm:$0xff]  ;;  %1414 = vst.msk [vmem:[#allocation3 + $0x29] sm:$0x1] %vm1396_vm13, %v3459_v6  ;;  %1415 = vst.msk [vmem:[#allocation3 + $0x39] sm:$0x1] %vm1396_vm13, %v3459_v6 }
  0x4b   :  { %v2968_v4 = vpack.i.bf16 %v3926_v2, %v3924_v1  ;;  %v2978_v13 = vpack.i.bf16 %v345_v10, %v297_v53  ;;  %v361_v15 = vld [vmem:[#allocation2 + $0xe2] sm:$0xff]  ;;  %v3940_v18 = vld [vmem:[#allocation2 + $0xf0] sm:$0xff]  ;;  %v2993_v20 = vpack.i.bf16 %v3924_v1, %v3928_v3  ;;  %1397 = vst.msk [vmem:[#allocation3 + $0x10] sm:$0x1] %vm1396_vm13, %v3459_v6  ;;  %1398 = vst.msk [vmem:[#allocation3 + $0x20] sm:$0x1] %vm1396_vm13, %v3459_v6 }
  0x4c   :  { %2899 = vrot.lane.b32.xlu1 %v2898_v38, %s3463_s24  ;;  %v2988_v16 = vpack.i.bf16 %v361_v15, %v313_v59  ;;  %v2998_v19 = vpack.i.bf16 %v3940_v18, %v3926_v2  ;;  %v394_v21 = vld [vmem:[#allocation2 + $0xf1] sm:$0xff]  ;;  %v300_v23 = vld [vmem:[#allocation2 + $0x101] sm:$0xff]  ;;  %1399 = vst.msk [vmem:[#allocation3 + $0x30] sm:$0x1] %vm1396_vm13, %v3459_v6  ;;  %1400 = vst.msk [vmem:[#allocation3 + $0x40] sm:$0x1] %vm1396_vm13, %v3459_v6 }
  0x4d   :  { %2894 = vrot.lane.b32.xlu0 %v2893_v39, %s3463_s24  ;;  %v3008_v22 = vpack.i.bf16 %v394_v21, %v345_v10  ;;  %v301_v24 = vld [vmem:[#allocation2 + $0x111] sm:$0xff]  ;;  %v333_v31 = vld [vmem:[#allocation2 + $0x120] sm:$0xff]  ;;  %v3053_v38 = vpack.i.bf16 %v300_v23, %v394_v21  ;;  %1401 = vst.msk [vmem:[#allocation3 + $0x50] sm:$0x1] %vm1396_vm13, %v3459_v6  ;;  %1402 = vst.msk [vmem:[#allocation3 + $0x60] sm:$0x1] %vm1396_vm13, %v3459_v6 }
  0x4e   :  { %v410_v25 = vld [vmem:[#allocation2 + $0xf2] sm:$0xff]  ;;  %v3028_v26 = vpack.i.bf16 %v301_v24, %v300_v23  ;;  %v349_v32 = vld [vmem:[#allocation2 + $0x121] sm:$0xff]  ;;  %1403 = vst.msk [vmem:[#allocation3 + $0x70] sm:$0x1] %vm1396_vm13, %v3459_v6  ;;  %1404 = vst.msk [vmem:[#allocation3 + $0x80] sm:$0x1] %vm1396_vm13, %v3459_v6 }
  0x4f   :  { %v3023_v27 = vpack.i.bf16 %v410_v25, %v361_v15  ;;  %v317_v28 = vld [vmem:[#allocation2 + $0x112] sm:$0xff]  ;;  %v3058_v37 = vpack.i.bf16 %v349_v32, %v301_v24  ;;  %v365_v39 = vld [vmem:[#allocation2 + $0x122] sm:$0xff]  ;;  %1405 = vst.msk [vmem:[#allocation3 + $0xb0] sm:$0x1] %vm1396_vm13, %v3459_v6  ;;  %1406 = vst.msk [vmem:[#allocation3 + $0xc0] sm:$0x1] %vm1396_vm13, %v3459_v6 }
  0x50   :  { %2909 = vrot.lane.b32.xlu1 %v2908_v42, %s3464_s23  ;;  %v3956_v30 = vld [vmem:[#allocation2 + $0x110] sm:$0xff]  ;;  %v3068_v40 = vpack.i.bf16 %v365_v39, %v317_v28  ;;  %v270_v60 = vld [vmem:[#allocation2] sm:$0xff]  ;;  %1407 = vst.msk [vmem:[#allocation3 + $0xd0] sm:$0x1] %vm1396_vm13, %v3459_v6  ;;  %1408 = vst.msk [vmem:[#allocation3 + $0xe0] sm:$0x1] %vm1396_vm13, %v3459_v6 }
  0x51   :  { %2904 = vrot.lane.b32.xlu0 %v2903_v43, %s3464_s23  ;;  %v3048_v36 = vpack.i.bf16 %v333_v31, %v3956_v30  ;;  %v382_v43 = vld [vmem:[#allocation2 + $0x130] sm:$0xff]  ;;  %1409 = vst.msk [vmem:[#allocation3 + $0xf0] sm:$0x1] %vm1396_vm13, %v3459_v6  ;;  %1410 = vst.msk [vmem:[#allocation3 + $0x100] sm:$0x1] %vm1396_vm13, %v3459_v6  ;;  %vm2217_vm2 = vcmask 523264  }
  0x52   :  { %v3078_v44 = vpack.i.bf16 %v382_v43, %v333_v31  ;;  %v414_v50 = vld [vmem:[#allocation2 + $0x132] sm:$0xff]  ;;  %1411 = vst.msk [vmem:[#allocation3 + $0x110] sm:$0x1] %vm1396_vm13, %v3459_v6  ;;  %1412 = vst.msk [vmem:[#allocation3 + $0x120] sm:$0x1] %vm1396_vm13, %v3459_v6  ;;  %vm2285_vm4 = vcmask 588800  }
  0x53   :  { %v3098_v53 = vpack.i.bf16 %v414_v50, %v365_v39  ;;  %1413 = vst.msk [vmem:[#allocation3 + $0x19] sm:$0x1] %vm1396_vm13, %v3459_v6  ;;  %1416 = vst.msk [vmem:[#allocation3 + $0x49] sm:$0x1] %vm1396_vm13, %v3459_v6 }
  0x54   :  { %2919 = vrot.lane.b32.xlu1 %v2918_v45, %s3465_s25  ;;  %1417 = vst.msk [vmem:[#allocation3 + $0x59] sm:$0x1] %vm1396_vm13, %v3459_v6  ;;  %1418 = vst.msk [vmem:[#allocation3 + $0x69] sm:$0x1] %vm1396_vm13, %v3459_v6 }
  0x55   :  { %2914 = vrot.lane.b32.xlu0 %v2913_v46, %s3465_s25  ;;  %v398_v46 = vld [vmem:[#allocation2 + $0x131] sm:$0xff]  ;;  %1419 = vst.msk [vmem:[#allocation3 + $0x79] sm:$0x1] %vm1396_vm13, %v3459_v6  ;;  %1420 = vst.msk [vmem:[#allocation3 + $0x89] sm:$0x1] %vm1396_vm13, %v3459_v6 }
  0x56   :  { %v3088_v49 = vpack.i.bf16 %v398_v46, %v349_v32  ;;  %1421 = vst.msk [vmem:[#allocation3 + $0xb9] sm:$0x1] %vm1396_vm13, %v3459_v6  ;;  %1422 = vst.msk [vmem:[#allocation3 + $0xc9] sm:$0x1] %vm1396_vm13, %v3459_v6 }
  0x57   :  { %1423 = vst.msk [vmem:[#allocation3 + $0xd9] sm:$0x1] %vm1396_vm13, %v3459_v6  ;;  %1424 = vst.msk [vmem:[#allocation3 + $0xe9] sm:$0x1] %vm1396_vm13, %v3459_v6 }
  0x58   :  { %2929 = vrot.lane.b32.xlu1 %v2928_v48, %s3466_s11  ;;  %1425 = vst.msk [vmem:[#allocation3 + $0xf9] sm:$0x1] %vm1396_vm13, %v3459_v6  ;;  %1426 = vst.msk [vmem:[#allocation3 + $0x109] sm:$0x1] %vm1396_vm13, %v3459_v6 }
  0x59   :  { %2924 = vrot.lane.b32.xlu0 %v2868_v11, %s3466_s11  ;;  %v316_v11 = vld [vmem:[#allocation2 + $0x102] sm:$0xff]  ;;  %1427 = vst.msk [vmem:[#allocation3 + $0x119] sm:$0x1] %vm1396_vm13, %v3459_v6  ;;  %1428 = vst.msk [vmem:[#allocation3 + $0x129] sm:$0x1] %vm1396_vm13, %v3459_v6 }
  0x5a   :  { %v3038_v29 = vpack.i.bf16 %v317_v28, %v316_v11  ;;  %v3063_v42 = vpack.i.bf16 %v316_v11, %v410_v25 }
  0x5c   :  { %2939 = vrot.lane.b32.xlu1 %v2938_v51, %s3461_s17 }
  0x5d   :  { %2934 = vrot.lane.b32.xlu0 %v2878_v33, %s3467_s14  ;;  %v3958_v33 = vld [vmem:[#allocation2 + $0x100] sm:$0xff] }
  0x5e   :  { %v3043_v5 = vpack.i.bf16 %v3958_v33, %v3940_v18  ;;  %v3073_v45 = vpack.i.bf16 %v3956_v30, %v3958_v33 }
  0x60   :  { %2949 = vrot.lane.b32.xlu1 %v2948_v55, %s3461_s17 }
  0x61   :  { %2944 = vrot.lane.b32.xlu0 %v2943_v56, %s3467_s14 }
  0x64   :  { %2959 = vrot.lane.b32.xlu1 %v2958_v62, %s3460_s16 }
  0x65   :  { %2954 = vrot.lane.b32.xlu0 %v2953_v63, %s3460_s16 }
  0x68   :  { %2969 = vrot.lane.b32.xlu1 %v2968_v4, %s3462_s13 }
  0x69   :  { %2964 = vrot.lane.b32.xlu0 %v2963_v7, %s3462_s13 }
  0x6c   :  { %2979 = vrot.lane.b32.xlu1 %v2978_v13, %s3463_s24 }
  0x6d   :  { %2974 = vrot.lane.b32.xlu0 %v2973_v14, %s3463_s24 }
  0x70   :  { %2989 = vrot.lane.b32.xlu1 %v2988_v16, %s3464_s23 }
  0x71   :  { %2984 = vrot.lane.b32.xlu0 %v2983_v17, %s3464_s23 }
  0x74   :  { %2999 = vrot.lane.b32.xlu1 %v2998_v19, %s3465_s25 }
  0x75   :  { %2994 = vrot.lane.b32.xlu0 %v2993_v20, %s3465_s25 }
  0x78   :  { %3009 = vrot.lane.b32.xlu1 %v3008_v22, %s3466_s11 }
  0x79   :  { %3004 = vrot.lane.b32.xlu0 %v2948_v55, %s3466_s11 }
  0x7c   :  { %3019 = vrot.lane.b32.xlu1 %v3008_v22, %s3461_s17 }
  0x7d   :  { %3014 = vrot.lane.b32.xlu0 %v2958_v62, %s3467_s14 }
  0x80   :  { %3029 = vrot.lane.b32.xlu1 %v3028_v26, %s3461_s17 }
  0x81   :  { %3024 = vrot.lane.b32.xlu0 %v3023_v27, %s3467_s14 }
  0x84   :  { %3039 = vrot.lane.b32.xlu1 %v3038_v29, %s3460_s16 }
  0x85   :  { %3034 = vrot.lane.b32.xlu0 %v3023_v27, %s3460_s16 }
  0x88   :  { %3049 = vrot.lane.b32.xlu1 %v3048_v36, %s3462_s13 }
  0x89   :  { %3044 = vrot.lane.b32.xlu0 %v3043_v5, %s3462_s13 }
  0x8c   :  { %3059 = vrot.lane.b32.xlu1 %v3058_v37, %s3463_s24 }
  0x8d   :  { %3054 = vrot.lane.b32.xlu0 %v3053_v38, %s3463_s24 }
  0x90   :  { %3069 = vrot.lane.b32.xlu1 %v3068_v40, %s3464_s23 }
  0x91   :  { %3064 = vrot.lane.b32.xlu0 %v3063_v42, %s3464_s23 }
  0x92   :  { %v2795_v47 = vpop.permute.xlu1 %2794 }
  0x93   :  { %v2785_v48 = vpop.permute.xlu0 %2784  ;;  %v2797_v10 = vunpack.i.h.bf16 %v2795_v47  ;;  %v2796_v13 = vunpack.i.l.bf16 %v2795_v47 }
  0x94   :  { %3079 = vrot.lane.b32.xlu1 %v3078_v44, %s3465_s25  ;;  %v2787_v58 = vunpack.i.h.bf16 %v2785_v48  ;;  %v2786_v59 = vunpack.i.l.bf16 %v2785_v48 }
  0x95   :  { %3074 = vrot.lane.b32.xlu0 %v3073_v45, %s3465_s25 }
  0x96   :  { %v2800_v51 = vpop.permute.xlu1 %2799  ;;  %v927_v14 = vsel %vm209_vm0, %v270_v60, %v2786_v59  ;;  %v928_v15 = vsel %vm209_vm0, %v3715_v61, %v2787_v58 }
  0x97   :  { %v2790_v52 = vpop.permute.xlu0 %2789  ;;  %v2802_v16 = vunpack.i.h.bf16 %v2800_v51  ;;  %v2801_v17 = vunpack.i.l.bf16 %v2800_v51  ;;  %v944_v27 = vsel %vm943_vm3, %v927_v14, %v2796_v13  ;;  %v945_v61 = vsel %vm943_vm3, %v928_v15, %v2797_v10 }
  0x98   :  { %3089 = vrot.lane.b32.xlu1 %v3088_v49, %s3466_s11  ;;  %v2792_v62 = vunpack.i.h.bf16 %v2790_v52  ;;  %v2791_v63 = vunpack.i.l.bf16 %v2790_v52 }
  0x99   :  { %3084 = vrot.lane.b32.xlu0 %v3028_v26, %s3466_s11  ;;  %s3471_s11 = smov 64  }
  0x9a   :  { %v2810_v54 = vpop.permute.xlu1 %2809  ;;  %v930_v19 = vsel %vm209_vm0, %v3738_v8, %v2792_v62  ;;  %v929_v20 = vsel %vm209_vm0, %v3740_v9, %v2791_v63 }
  0x9b   :  { %v2805_v55 = vpop.permute.xlu0 %2804  ;;  %v2812_v21 = vunpack.i.h.bf16 %v2810_v54  ;;  %v2811_v22 = vunpack.i.l.bf16 %v2810_v54  ;;  %v946_v11 = vsel %vm943_vm3, %v929_v20, %v2801_v17  ;;  %v947_v8 = vsel %vm943_vm3, %v930_v19, %v2802_v16 }
  0x9c   :  { %3099 = vrot.lane.b32.xlu1 %v3098_v53, %s3467_s14  ;;  %v2807_v25 = vunpack.i.h.bf16 %v2805_v55  ;;  %v2806_v26 = vunpack.i.l.bf16 %v2805_v55 }
  0x9d   :  { %3094 = vrot.lane.b32.xlu0 %v3038_v29, %s3467_s14  ;;  %v963_v29 = vsel %vm960_vm5, %v946_v11, %v2811_v22  ;;  %v964_v31 = vsel %vm960_vm5, %v947_v8, %v2812_v21 }
  0x9e   :  { %v3979_v56 = vpop.permute.xlu1 %2819  ;;  %v961_v38 = vsel %vm960_vm5, %v944_v27, %v2806_v26  ;;  %v962_v39 = vsel %vm960_vm5, %v945_v61, %v2807_v25 }
  0x9f   :  { %v2815_v57 = vpop.permute.xlu0 %2814  ;;  %v2822_v43 = vunpack.i.h.bf16 %v3979_v56  ;;  %v2821_v44 = vunpack.i.l.bf16 %v3979_v56 }
  0xa0   :  { %v2817_v28 = vunpack.i.h.bf16 %v2815_v57  ;;  %v2816_v9 = vunpack.i.l.bf16 %v2815_v57 }
  0xa1   :  { %v980_v10 = vsel %vm977_vm6, %v963_v29, %v2821_v44  ;;  %v981_v13 = vsel %vm977_vm6, %v964_v31, %v2822_v43 }
  0xa2   :  { %v3981_v4 = vpop.permute.xlu1 %2829  ;;  %v978_v47 = vsel %vm977_vm6, %v961_v38, %v2816_v9  ;;  %v979_v48 = vsel %vm977_vm6, %v962_v39, %v2817_v28 }
  0xa3   :  { %v2825_v7 = vpop.permute.xlu0 %2824  ;;  %v2832_v49 = vunpack.i.h.bf16 %v3981_v4  ;;  %v2831_v50 = vunpack.i.l.bf16 %v3981_v4 }
  0xa4   :  { %v2827_v36 = vunpack.i.h.bf16 %v2825_v7  ;;  %v2826_v5 = vunpack.i.l.bf16 %v2825_v7 }
  0xa5   :  { %v997_v16 = vsel %vm994_vm7, %v980_v10, %v2831_v50  ;;  %v998_v17 = vsel %vm994_vm7, %v981_v13, %v2832_v49 }
  0xa6   :  { %v2840_v23 = vpop.permute.xlu1 %2839  ;;  %v995_v51 = vsel %vm994_vm7, %v978_v47, %v2826_v5  ;;  %v996_v52 = vsel %vm994_vm7, %v979_v48, %v2827_v36 }
  0xa7   :  { %v2835_v24 = vpop.permute.xlu0 %2834  ;;  %v2842_v53 = vunpack.i.h.bf16 %v2840_v23  ;;  %v2841_v54 = vunpack.i.l.bf16 %v2840_v23 }
  0xa8   :  { %v2837_v40 = vunpack.i.h.bf16 %v2835_v24  ;;  %v2836_v42 = vunpack.i.l.bf16 %v2835_v24 }
  0xa9   :  { %v1014_v22 = vsel %vm1011_vm8, %v997_v16, %v2841_v54  ;;  %v1015_v23 = vsel %vm1011_vm8, %v998_v17, %v2842_v53 }
  0xaa   :  { %v2850_v32 = vpop.permute.xlu1 %2849  ;;  %v1012_v59 = vsel %vm1011_vm8, %v995_v51, %v2836_v42  ;;  %v1013_v60 = vsel %vm1011_vm8, %v996_v52, %v2837_v40 }
  0xab   :  { %v2845_v37 = vpop.permute.xlu0 %2844  ;;  %v2852_v62 = vunpack.i.h.bf16 %v2850_v32  ;;  %v2851_v63 = vunpack.i.l.bf16 %v2850_v32 }
  0xac   :  { %v2847_v45 = vunpack.i.h.bf16 %v2845_v37  ;;  %v2846_v46 = vunpack.i.l.bf16 %v2845_v37 }
  0xad   :  { %v1031_v26 = vsel %vm1028_vm9, %v1014_v22, %v2851_v63  ;;  %v1032_v27 = vsel %vm1028_vm9, %v1015_v23, %v2852_v62 }
  0xae   :  { %v2860_v55 = vpop.permute.xlu1 %2859  ;;  %v1029_v7 = vsel %vm1028_vm9, %v1012_v59, %v2846_v46  ;;  %v1030_v4 = vsel %vm1028_vm9, %v1013_v60, %v2847_v45 }
  0xaf   :  { %v2855_v57 = vpop.permute.xlu0 %2854  ;;  %v2862_v40 = vunpack.i.h.bf16 %v2860_v55  ;;  %v2861_v42 = vunpack.i.l.bf16 %v2860_v55 }
  0xb0   :  { %v2857_v58 = vunpack.i.h.bf16 %v2855_v57  ;;  %v2856_v56 = vunpack.i.l.bf16 %v2855_v57 }
  0xb1   :  { %v932_v57 = vsel %vm209_vm0, %v3807_v41, %v2862_v40  ;;  %v931_v55 = vsel %vm209_vm0, %v3744_v12, %v2861_v42 }
  0xb2   :  { %v1046_v14 = vsel %vm1045_vm10, %v1029_v7, %v2856_v56  ;;  %v1047_v15 = vsel %vm1045_vm10, %v1030_v4, %v2857_v58  ;;  %v2870_v19 = vpop.permute.xlu1 %2869 }
  0xb3   :  { %v2865_v20 = vpop.permute.xlu0 %2864  ;;  %v1062_v21 = vpack.c.bf16 %v1047_v15, %v1046_v14  ;;  %v2872_v38 = vunpack.i.h.bf16 %v2870_v19  ;;  %v2871_v39 = vunpack.i.l.bf16 %v2870_v19 }
  0xb4   :  { %v2867_v24 = vunpack.i.h.bf16 %v2865_v20  ;;  %v2866_v25 = vunpack.i.l.bf16 %v2865_v20 }
  0xb5   :  { %2724 = vmatprep.mubr.msk.bf16.mxu0 %vm1097_vm11, %v1062_v21  ;;  %v934_v51 = vsel %vm209_vm0, %v3896_v34, %v2872_v38  ;;  %v933_v52 = vsel %vm209_vm0, %v3898_v35, %v2871_v39 }
  0xb6   :  { %v1048_v61 = vsel %vm1045_vm10, %v1031_v26, %v2866_v25  ;;  %v1049_v11 = vsel %vm1045_vm10, %v1032_v27, %v2867_v24  ;;  %v2880_v8 = vpop.permute.xlu1 %2879 }
  0xb7   :  { %v2875_v28 = vpop.permute.xlu0 %2874  ;;  %v1063_v9 = vpack.c.bf16 %v1049_v11, %v1048_v61  ;;  %v2882_v43 = vunpack.i.h.bf16 %v2880_v8  ;;  %v2881_v44 = vunpack.i.l.bf16 %v2880_v8 }
  0xb8   :  { %v2877_v45 = vunpack.i.h.bf16 %v2875_v28  ;;  %v2876_v46 = vunpack.i.l.bf16 %v2875_v28 }
  0xb9   :  { %2725 = vmatmul.mubr.msk.bf16.vlgmr.msra.gmra.mrb[0].mxu0 %vm1097_vm11, %v1063_v9  ;;  %v950_v58 = vsel %vm943_vm3, %v933_v52, %v2881_v44  ;;  %v951_v56 = vsel %vm943_vm3, %v934_v51, %v2882_v43 }
  0xba   :  { %v2890_v29 = vpop.permute.xlu1 %2889  ;;  %v949_v59 = vsel %vm943_vm3, %v932_v57, %v2877_v45  ;;  %v948_v60 = vsel %vm943_vm3, %v931_v55, %v2876_v46 }
  0xbb   :  { %v2885_v31 = vpop.permute.xlu0 %2884  ;;  %v2892_v47 = vunpack.i.h.bf16 %v2890_v29  ;;  %v2891_v48 = vunpack.i.l.bf16 %v2890_v29 }
  0xbc   :  { %v2887_v53 = vunpack.i.h.bf16 %v2885_v31  ;;  %v2886_v54 = vunpack.i.l.bf16 %v2885_v31 }
  0xbd   :  { %v967_v35 = vsel %vm960_vm5, %v950_v58, %v2891_v48  ;;  %v968_v63 = vsel %vm960_vm5, %v951_v56, %v2892_v47 }
  0xbe   :  { %v4024_v36 = vpop.permute.xlu1 %2899  ;;  %v965_v12 = vsel %vm960_vm5, %v948_v60, %v2886_v54  ;;  %v966_v13 = vsel %vm960_vm5, %v949_v59, %v2887_v53 }
  0xbf   :  { %v2895_v5 = vpop.permute.xlu0 %2894  ;;  %v2902_v16 = vunpack.i.h.bf16 %v4024_v36  ;;  %v2901_v17 = vunpack.i.l.bf16 %v4024_v36 }
  0xc0   :  { %v2897_v34 = vunpack.i.h.bf16 %v2895_v5  ;;  %v2896_v62 = vunpack.i.l.bf16 %v2895_v5 }
  0xc1   :  { %v984_v38 = vsel %vm977_vm6, %v967_v35, %v2901_v17  ;;  %v985_v39 = vsel %vm977_vm6, %v968_v63, %v2902_v16 }
  0xc2   :  { %v4026_v32 = vpop.permute.xlu1 %2909  ;;  %v982_v21 = vsel %vm977_vm6, %v965_v12, %v2896_v62  ;;  %v983_v22 = vsel %vm977_vm6, %v966_v13, %v2897_v34 }
  0xc3   :  { %v2905_v37 = vpop.permute.xlu0 %2904  ;;  %v2912_v23 = vunpack.i.h.bf16 %v4026_v32  ;;  %v2911_v24 = vunpack.i.l.bf16 %v4026_v32 }
  0xc4   :  { %v2907_v7 = vunpack.i.h.bf16 %v2905_v37  ;;  %v2906_v4 = vunpack.i.l.bf16 %v2905_v37 }
  0xc5   :  { %v1001_v43 = vsel %vm994_vm7, %v984_v38, %v2911_v24  ;;  %v1002_v44 = vsel %vm994_vm7, %v985_v39, %v2912_v23 }
  0xc6   :  { %v2920_v49 = vpop.permute.xlu1 %2919  ;;  %v999_v25 = vsel %vm994_vm7, %v982_v21, %v2906_v4  ;;  %v1000_v26 = vsel %vm994_vm7, %v983_v22, %v2907_v7 }
  0xc7   :  { %v2915_v50 = vpop.permute.xlu0 %2914  ;;  %v2922_v27 = vunpack.i.h.bf16 %v2920_v49  ;;  %v2921_v61 = vunpack.i.l.bf16 %v2920_v49 }
  0xc8   :  { %v2917_v14 = vunpack.i.h.bf16 %v2915_v50  ;;  %v2916_v15 = vunpack.i.l.bf16 %v2915_v50 }
  0xc9   :  { %v1018_v48 = vsel %vm1011_vm8, %v1001_v43, %v2921_v61  ;;  %v1019_v49 = vsel %vm1011_vm8, %v1002_v44, %v2922_v27 }
  0xca   :  { %v2930_v41 = vpop.permute.xlu1 %2929  ;;  %v1016_v28 = vsel %vm1011_vm8, %v999_v25, %v2916_v15  ;;  %v1017_v9 = vsel %vm1011_vm8, %v1000_v26, %v2917_v14  ;;  %v278_v14 = vld [vmem:[#allocation2 + $0xa0] sm:$0xff] }
  0xcb   :  { %v2925_v10 = vpop.permute.xlu0 %2924  ;;  %v2932_v36 = vunpack.i.h.bf16 %v2930_v41  ;;  %v2931_v5 = vunpack.i.l.bf16 %v2930_v41 }
  0xcc   :  { %v2927_v19 = vunpack.i.h.bf16 %v2925_v10  ;;  %v2926_v20 = vunpack.i.l.bf16 %v2925_v10 }
  0xcd   :  { %v1035_v52 = vsel %vm1028_vm9, %v1018_v48, %v2931_v5  ;;  %v1036_v53 = vsel %vm1028_vm9, %v1019_v49, %v2932_v36 }
  0xce   :  { %v2940_v11 = vpop.permute.xlu1 %2939  ;;  %v1033_v37 = vsel %vm1028_vm9, %v1016_v28, %v2926_v20  ;;  %v1034_v32 = vsel %vm1028_vm9, %v1017_v9, %v2927_v19 }
  0xcf   :  { %v2935_v8 = vpop.permute.xlu0 %2934  ;;  %v2942_v41 = vunpack.i.h.bf16 %v2940_v11  ;;  %v2941_v10 = vunpack.i.l.bf16 %v2940_v11 }
  0xd0   :  { %v2937_v29 = vunpack.i.h.bf16 %v2935_v8  ;;  %v2936_v31 = vunpack.i.l.bf16 %v2935_v8 }
  0xd1   :  { %v936_v26 = vsel %vm209_vm0, %v3922_v0, %v2942_v41  ;;  %v935_v27 = vsel %vm209_vm0, %v278_v14, %v2941_v10 }
  0xd2   :  { %v1050_v40 = vsel %vm1045_vm10, %v1033_v37, %v2936_v31  ;;  %v1051_v42 = vsel %vm1045_vm10, %v1034_v32, %v2937_v29  ;;  %v2950_v46 = vpop.permute.xlu1 %2949 }
  0xd3   :  { %v1064_v45 = vpack.c.bf16 %v1051_v42, %v1050_v40  ;;  %v2945_v47 = vpop.permute.xlu0 %2944  ;;  %v2952_v7 = vunpack.i.h.bf16 %v2950_v46  ;;  %v2951_v4 = vunpack.i.l.bf16 %v2950_v46 }
  0xd4   :  { %v2947_v50 = vunpack.i.h.bf16 %v2945_v47  ;;  %v2946_v51 = vunpack.i.l.bf16 %v2945_v47 }
  0xd5   :  { %2728 = vmatprep.mubr.msk.bf16.mxu0 %vm1097_vm11, %v1064_v45  ;;  %v938_v22 = vsel %vm209_vm0, %v3924_v1, %v2952_v7  ;;  %v937_v23 = vsel %vm209_vm0, %v3928_v3, %v2951_v4 }
  0xd6   :  { %v1053_v54 = vsel %vm1045_vm10, %v1036_v53, %v2947_v50  ;;  %v1052_v57 = vsel %vm1045_vm10, %v1035_v52, %v2946_v51  ;;  %v2960_v58 = vpop.permute.xlu1 %2959 }
  0xd7   :  { %v1065_v55 = vpack.c.bf16 %v1053_v54, %v1052_v57  ;;  %v2955_v56 = vpop.permute.xlu0 %2954  ;;  %v2962_v12 = vunpack.i.h.bf16 %v2960_v58  ;;  %v2961_v13 = vunpack.i.l.bf16 %v2960_v58 }
  0xd8   :  { %v2957_v15 = vunpack.i.h.bf16 %v2955_v56  ;;  %v2956_v16 = vunpack.i.l.bf16 %v2955_v56 }
  0xd9   :  { %2729 = vmatmul.mubr.msk.bf16.gmra.mrb[4].mxu0 %vm1097_vm11, %v1065_v55  ;;  %v954_v61 = vsel %vm943_vm3, %v937_v23, %v2961_v13  ;;  %v955_v11 = vsel %vm943_vm3, %v938_v22, %v2962_v12 }
  0xda   :  { %v2970_v59 = vpop.permute.xlu1 %2969  ;;  %v953_v8 = vsel %vm943_vm3, %v936_v26, %v2957_v15  ;;  %v952_v28 = vsel %vm943_vm3, %v935_v27, %v2956_v16 }
  0xdb   :  { %v2965_v60 = vpop.permute.xlu0 %2964  ;;  %v2972_v17 = vunpack.i.h.bf16 %v2970_v59  ;;  %v2971_v19 = vunpack.i.l.bf16 %v2970_v59 }
  0xdc   :  { %v2967_v24 = vunpack.i.h.bf16 %v2965_v60  ;;  %v2966_v25 = vunpack.i.l.bf16 %v2965_v60 }
  0xdd   :  { %v971_v29 = vsel %vm960_vm5, %v954_v61, %v2971_v19  ;;  %v972_v3 = vsel %vm960_vm5, %v955_v11, %v2972_v17 }
  0xde   :  { %v4070_v34 = vpop.permute.xlu1 %2979  ;;  %v969_v37 = vsel %vm960_vm5, %v952_v28, %v2966_v25  ;;  %v970_v32 = vsel %vm960_vm5, %v953_v8, %v2967_v24 }
  0xdf   :  { %v2975_v62 = vpop.permute.xlu0 %2974  ;;  %v2982_v40 = vunpack.i.h.bf16 %v4070_v34  ;;  %v2981_v42 = vunpack.i.l.bf16 %v4070_v34 }
  0xe0   :  { %v2977_v9 = vunpack.i.h.bf16 %v2975_v62  ;;  %v2976_v1 = vunpack.i.l.bf16 %v2975_v62 }
  0xe2   :  { %v4072_v35 = vpop.permute.xlu1 %2989  ;;  %v986_v45 = vsel %vm977_vm6, %v969_v37, %v2976_v1  ;;  %v987_v46 = vsel %vm977_vm6, %v970_v32, %v2977_v9 }
  0xe3   :  { %v2985_v63 = vpop.permute.xlu0 %2984  ;;  %v2992_v47 = vunpack.i.h.bf16 %v4072_v35  ;;  %v2991_v48 = vunpack.i.l.bf16 %v4072_v35  ;;  %v988_v35 = vsel %vm977_vm6, %v971_v29, %v2981_v42 }
  0xe4   :  { %v2987_v31 = vunpack.i.h.bf16 %v2985_v63  ;;  %v2986_v36 = vunpack.i.l.bf16 %v2985_v63  ;;  %v989_v63 = vsel %vm977_vm6, %v972_v3, %v2982_v40 }
  0xe5   :  { %v1005_v41 = vsel %vm994_vm7, %v988_v35, %v2991_v48  ;;  %v1006_v10 = vsel %vm994_vm7, %v989_v63, %v2992_v47 }
  0xe6   :  { %v3000_v20 = vpop.permute.xlu1 %2999  ;;  %v1003_v49 = vsel %vm994_vm7, %v986_v45, %v2986_v36  ;;  %v1004_v50 = vsel %vm994_vm7, %v987_v46, %v2987_v31 }
  0xe7   :  { %v2995_v21 = vpop.permute.xlu0 %2994  ;;  %v3002_v51 = vunpack.i.h.bf16 %v3000_v20  ;;  %v3001_v52 = vunpack.i.l.bf16 %v3000_v20 }
  0xe8   :  { %v2997_v38 = vunpack.i.h.bf16 %v2995_v21  ;;  %v2996_v39 = vunpack.i.l.bf16 %v2995_v21 }
  0xe9   :  { %v1022_v15 = vsel %vm1011_vm8, %v1005_v41, %v3001_v52  ;;  %v1023_v16 = vsel %vm1011_vm8, %v1006_v10, %v3002_v51 }
  0xea   :  { %v3010_v5 = vpop.permute.xlu1 %3009  ;;  %v1020_v57 = vsel %vm1011_vm8, %v1003_v49, %v2996_v39  ;;  %v1021_v55 = vsel %vm1011_vm8, %v1004_v50, %v2997_v38 }
  0xeb   :  { %v3005_v0 = vpop.permute.xlu0 %3004  ;;  %v3012_v59 = vunpack.i.h.bf16 %v3010_v5  ;;  %v3011_v60 = vunpack.i.l.bf16 %v3010_v5 }
  0xec   :  { %v3007_v43 = vunpack.i.h.bf16 %v3005_v0  ;;  %v3006_v44 = vunpack.i.l.bf16 %v3005_v0 }
  0xed   :  { %v1039_v20 = vsel %vm1028_vm9, %v1022_v15, %v3011_v60  ;;  %v1040_v21 = vsel %vm1028_vm9, %v1023_v16, %v3012_v59 }
  0xee   :  { %v3020_v53 = vpop.permute.xlu1 %3019  ;;  %v1037_v34 = vsel %vm1028_vm9, %v1020_v57, %v3006_v44  ;;  %v1038_v62 = vsel %vm1028_vm9, %v1021_v55, %v3007_v43 }
  0xef   :  { %v3015_v54 = vpop.permute.xlu0 %3014  ;;  %v3022_v28 = vunpack.i.h.bf16 %v3020_v53  ;;  %v3021_v9 = vunpack.i.l.bf16 %v3020_v53 }
  0xf0   :  { %v3017_v58 = vunpack.i.h.bf16 %v3015_v54  ;;  %v3016_v56 = vunpack.i.l.bf16 %v3015_v54 }
  0xf1   :  { %v940_v42 = vsel %vm209_vm0, %v3940_v18, %v3022_v28  ;;  %v939_v43 = vsel %vm209_vm0, %v3926_v2, %v3021_v9 }
  0xf2   :  { %v1054_v7 = vsel %vm1045_vm10, %v1037_v34, %v3016_v56  ;;  %v1055_v4 = vsel %vm1045_vm10, %v1038_v62, %v3017_v58  ;;  %v3030_v13 = vpop.permute.xlu1 %3029 }
  0xf3   :  { %v1066_v12 = vpack.c.bf16 %v1055_v4, %v1054_v7  ;;  %v3025_v14 = vpop.permute.xlu0 %3024  ;;  %v3032_v1 = vunpack.i.h.bf16 %v3030_v13  ;;  %v3031_v29 = vunpack.i.l.bf16 %v3030_v13 }
  0xf4   :  { %v3027_v17 = vunpack.i.h.bf16 %v3025_v14  ;;  %v3026_v19 = vunpack.i.l.bf16 %v3025_v14 }
  0xf5   :  { %2732 = vmatprep.mubr.msk.bf16.mxu0 %vm1097_vm11, %v1066_v12  ;;  %v942_v44 = vsel %vm209_vm0, %v3956_v30, %v3032_v1  ;;  %v941_v45 = vsel %vm209_vm0, %v3958_v33, %v3031_v29  ;;  %vm2183_vm0 = vcmask 392192  }
  0xf6   :  { %v1057_v22 = vsel %vm1045_vm10, %v1040_v21, %v3027_v17  ;;  %v1056_v23 = vsel %vm1045_vm10, %v1039_v20, %v3026_v19  ;;  %v3040_v25 = vpop.permute.xlu1 %3039 }
  0xf7   :  { %v1067_v24 = vpack.c.bf16 %v1057_v22, %v1056_v23  ;;  %v3035_v26 = vpop.permute.xlu0 %3034  ;;  %v3042_v3 = vunpack.i.h.bf16 %v3040_v25  ;;  %v3041_v31 = vunpack.i.l.bf16 %v3040_v25 }
  0xf8   :  { %v3037_v36 = vunpack.i.h.bf16 %v3035_v26  ;;  %v3036_v5 = vunpack.i.l.bf16 %v3035_v26 }
  0xf9   :  { %2733 = vmatmul.mubr.msk.bf16.gmra.mrb[8].mxu0 %vm1097_vm11, %v1067_v24  ;;  %v958_v46 = vsel %vm943_vm3, %v941_v45, %v3041_v31  ;;  %v959_v47 = vsel %vm943_vm3, %v942_v44, %v3042_v3 }
  0xfa   :  { %v3050_v27 = vpop.permute.xlu1 %3049  ;;  %v957_v48 = vsel %vm943_vm3, %v940_v42, %v3037_v36  ;;  %v956_v49 = vsel %vm943_vm3, %v939_v43, %v3036_v5  ;;  %v4156_v43 = vld [vmem:[%s4879_s2] ss:$0 sm:$0xff] }
  0xfb   :  { %v3045_v61 = vpop.permute.xlu0 %3044  ;;  %v3052_v32 = vunpack.i.h.bf16 %v3050_v27  ;;  %v3051_v38 = vunpack.i.l.bf16 %v3050_v27 }
  0xfc   :  { %v3047_v39 = vunpack.i.h.bf16 %v3045_v61  ;;  %v3046_v40 = vunpack.i.l.bf16 %v3045_v61 }
  0xfd   :  { %v975_v54 = vsel %vm960_vm5, %v958_v46, %v3051_v38  ;;  %v976_v30 = vsel %vm960_vm5, %v959_v47, %v3052_v32 }
  0xfe   :  { %v3060_v11 = vpop.permute.xlu1 %3059  ;;  %v973_v33 = vsel %vm960_vm5, %v956_v49, %v3046_v40  ;;  %v974_v57 = vsel %vm960_vm5, %v957_v48, %v3047_v39 }
  0xff   :  { %v3055_v8 = vpop.permute.xlu0 %3054  ;;  %v3062_v18 = vunpack.i.h.bf16 %v3060_v11  ;;  %v3061_v52 = vunpack.i.l.bf16 %v3060_v11 }
 0x100   :  { %v3057_v53 = vunpack.i.h.bf16 %v3055_v8  ;;  %v3056_v2 = vunpack.i.l.bf16 %v3055_v8 }
 0x101   :  { %v992_v4 = vsel %vm977_vm6, %v975_v54, %v3061_v52  ;;  %v993_v41 = vsel %vm977_vm6, %v976_v30, %v3062_v18 }
 0x102   :  { %v3070_v0 = vpop.permute.xlu1 %3069  ;;  %v990_v10 = vsel %vm977_vm6, %v973_v33, %v3056_v2  ;;  %v991_v12 = vsel %vm977_vm6, %v974_v57, %v3057_v53 }
 0x103   :  { %v3065_v37 = vpop.permute.xlu0 %3064  ;;  %v3072_v55 = vunpack.i.h.bf16 %v3070_v0  ;;  %v3071_v58 = vunpack.i.l.bf16 %v3070_v0 }
 0x104   :  { %v3067_v56 = vunpack.i.h.bf16 %v3065_v37  ;;  %v3066_v59 = vunpack.i.l.bf16 %v3065_v37 }
 0x105   :  { %v1009_v17 = vsel %vm994_vm7, %v992_v4, %v3071_v58  ;;  %v1010_v19 = vsel %vm994_vm7, %v993_v41, %v3072_v55 }
 0x106   :  { %v3080_v50 = vpop.permute.xlu1 %3079  ;;  %v1007_v20 = vsel %vm994_vm7, %v990_v10, %v3066_v59  ;;  %v1008_v21 = vsel %vm994_vm7, %v991_v12, %v3067_v56 }
 0x107   :  { %v3075_v51 = vpop.permute.xlu0 %3074  ;;  %v3082_v60 = vunpack.i.h.bf16 %v3080_v50  ;;  %v3081_v34 = vunpack.i.l.bf16 %v3080_v50 }
 0x108   :  { %v3077_v62 = vunpack.i.h.bf16 %v3075_v51  ;;  %v3076_v35 = vunpack.i.l.bf16 %v3075_v51 }
 0x109   :  { %v1026_v22 = vsel %vm1011_vm8, %v1009_v17, %v3081_v34  ;;  %v1027_v23 = vsel %vm1011_vm8, %v1010_v19, %v3082_v60 }
 0x10a   :  { %v3090_v63 = vpop.permute.xlu1 %3089  ;;  %v1024_v24 = vsel %vm1011_vm8, %v1007_v20, %v3076_v35  ;;  %v1025_v25 = vsel %vm1011_vm8, %v1008_v21, %v3077_v62 }
 0x10b   :  { %v3085_v7 = vpop.permute.xlu0 %3084  ;;  %v3092_v13 = vunpack.i.h.bf16 %v3090_v63  ;;  %v3091_v14 = vunpack.i.l.bf16 %v3090_v63 }
 0x10c   :  { %v3087_v15 = vunpack.i.h.bf16 %v3085_v7  ;;  %v3086_v16 = vunpack.i.l.bf16 %v3085_v7 }
 0x10d   :  { %v1043_v9 = vsel %vm1028_vm9, %v1026_v22, %v3091_v14  ;;  %v1044_v1 = vsel %vm1028_vm9, %v1027_v23, %v3092_v13 }
 0x10e   :  { %v3100_v26 = vpop.permute.xlu1 %3099  ;;  %v1041_v29 = vsel %vm1028_vm9, %v1024_v24, %v3086_v16  ;;  %v1042_v3 = vsel %vm1028_vm9, %v1025_v25, %v3087_v15 }
 0x10f   :  { %v3095_v27 = vpop.permute.xlu0 %3094  ;;  %v3102_v61 = vunpack.i.h.bf16 %v3100_v26  ;;  %v3101_v11 = vunpack.i.l.bf16 %v3100_v26 }
 0x110   :  { %v3097_v8 = vunpack.i.h.bf16 %v3095_v27  ;;  %v3096_v28 = vunpack.i.l.bf16 %v3095_v27 }
 0x111   :  { %v1060_v31 = vsel %vm1045_vm10, %v1043_v9, %v3101_v11  ;;  %v1061_v36 = vsel %vm1045_vm10, %v1044_v1, %v3102_v61 }
 0x112   :  { %v1058_v5 = vsel %vm1045_vm10, %v1041_v29, %v3096_v28  ;;  %v1059_v0 = vsel %vm1045_vm10, %v1042_v3, %v3097_v8  ;;  %v1069_v37 = vpack.c.bf16 %v1061_v36, %v1060_v31 }
 0x113   :  { %v1068_v32 = vpack.c.bf16 %v1059_v0, %v1058_v5 }
 0x115   :  { %2736 = vmatprep.mubr.msk.bf16.mxu0 %vm1097_vm11, %v1068_v32 }
 0x116   :  { %2737 = vmatmul.mubr.msk.bf16.gmra.mrb[12].mxu0 %vm1097_vm11, %v1069_v37 }
 0x18c   :  { %v2726_v38 = vpop.f32.mrb[0].mxu0 }
 0x18d   :  { %v1160_v39 = vpop.f32.mrb[1].mxu0  ;;  %v1169_v47 = vadd.f32 %v2726_v38, %v4156_v43 }
 0x18e   :  { %v2727_v40 = vpop.f32.mrb[2].mxu0  ;;  %v1161_v45 = vadd.f32 %v4156_v43, %v1160_v39 }
 0x18f   :  { %v1163_v42 = vpop.f32.mrb[3].mxu0  ;;  %v1172_v50 = vadd.f32 %v2727_v40, %v4156_v43  ;;  %v4236_v51 = vmax.f32 %v1169_v47, 0.0 }
 0x190   :  { %v1164_v44 = vadd.f32 %v4156_v43, %v1163_v42  ;;  %v4163_v48 = vmax.f32 %v1161_v45, 0.0 }
 0x191   :  { %v4245_v54 = vmax.f32 %v1172_v50, 0.0  ;;  %v1279_v6 = vmul.f32 %v4236_v51, %v4236_v51  ;;  %v1242_v55 = vsel %vm943_vm3, %v4236_v51, 0.0 }
 0x192   :  { %v4160_v46 = vmax.f32 %v1164_v44, 0.0  ;;  %v1277_v18 = vmul.f32 %v4163_v48, %v4163_v48  ;;  %v1239_v53 = vsel %vm943_vm3, %v4163_v48, 0.0 }
 0x193   :  { %v1280_v56 = vmul.f32 %v4245_v54, %v4245_v54  ;;  %v1296_v62 = vsel %vm943_vm3, %v1279_v6, 0.0  ;;  %v1244_v10 = vsel %vm943_vm3, %v4245_v54, 0.0 }
 0x194   :  { %v1278_v49 = vmul.f32 %v4160_v46, %v4160_v46  ;;  %v1240_v52 = vsel %vm943_vm3, %v4160_v46, 0.0  ;;  %v1293_v33 = vsel %vm943_vm3, %v1277_v18, 0.0 }
 0x195   :  { %v1241_v30 = vadd.f32 %v1240_v52, %v1239_v53  ;;  %v1298_v15 = vsel %vm943_vm3, %v1280_v56, 0.0 }
 0x196   :  { %v1294_v2 = vsel %vm943_vm3, %v1278_v49, 0.0 }
 0x197   :  { %v1295_v57 = vadd.f32 %v1294_v2, %v1293_v33  ;;  %v1243_v59 = vadd.f32 %v1242_v55, %v1241_v30 }
 0x199   :  { %v1297_v7 = vadd.f32 %v1296_v62, %v1295_v57  ;;  %v1245_v16 = vadd.f32 %v1244_v10, %v1243_v59 }
 0x19b   :  { %v1299_v23 = vadd.f32 %v1298_v15, %v1297_v7 }
 0x1ac   :  { %v2730_v58 = vpop.f32.mrb[4].mxu0 }
 0x1ad   :  { %v1185_v60 = vadd.f32 %v2730_v58, %v4156_v43  ;;  %v1176_v34 = vpop.f32.mrb[5].mxu0 }
 0x1ae   :  { %v1177_v35 = vadd.f32 %v4156_v43, %v1176_v34  ;;  %v2731_v63 = vpop.f32.mrb[6].mxu0 }
 0x1af   :  { %v1188_v4 = vadd.f32 %v2731_v63, %v4156_v43  ;;  %v1179_v41 = vpop.f32.mrb[7].mxu0  ;;  %v4260_v12 = vmax.f32 %v1185_v60, 0.0 }
 0x1b0   :  { %v4262_v13 = vmax.f32 %v1177_v35, 0.0  ;;  %v1180_v14 = vadd.f32 %v4156_v43, %v1179_v41 }
 0x1b1   :  { %v4270_v20 = vmax.f32 %v1188_v4, 0.0  ;;  %v1283_v24 = vmul.f32 %v4260_v12, %v4260_v12  ;;  %v1250_v8 = vsel %vm943_vm3, %v4260_v12, 0.0 }
 0x1b2   :  { %v1246_v17 = vsel %vm943_vm3, %v4262_v13, 0.0  ;;  %v1281_v19 = vmul.f32 %v4262_v13, %v4262_v13  ;;  %v4272_v21 = vmax.f32 %v1180_v14, 0.0 }
 0x1b3   :  { %v1247_v22 = vadd.f32 %v1246_v17, %v1245_v16  ;;  %v1284_v28 = vmul.f32 %v4270_v20, %v4270_v20  ;;  %v1304_v3 = vsel %vm943_vm3, %v1283_v24, 0.0  ;;  %v1252_v31 = vsel %vm943_vm3, %v4270_v20, 0.0 }
 0x1b4   :  { %v1300_v25 = vsel %vm943_vm3, %v1281_v19, 0.0  ;;  %v1248_v26 = vsel %vm943_vm3, %v4272_v21, 0.0  ;;  %v1282_v27 = vmul.f32 %v4272_v21, %v4272_v21 }
 0x1b5   :  { %v1301_v61 = vadd.f32 %v1300_v25, %v1299_v23  ;;  %v1249_v11 = vadd.f32 %v1248_v26, %v1247_v22  ;;  %v1306_v0 = vsel %vm943_vm3, %v1284_v28, 0.0 }
 0x1b6   :  { %v1302_v9 = vsel %vm943_vm3, %v1282_v27, 0.0 }
 0x1b7   :  { %v1251_v1 = vadd.f32 %v1250_v8, %v1249_v11  ;;  %v1303_v29 = vadd.f32 %v1302_v9, %v1301_v61 }
 0x1b9   :  { %v1305_v36 = vadd.f32 %v1304_v3, %v1303_v29  ;;  %v1253_v5 = vadd.f32 %v1252_v31, %v1251_v1 }
 0x1bb   :  { %v1307_v37 = vadd.f32 %v1306_v0, %v1305_v36 }
 0x1cc   :  { %v2734_v32 = vpop.f32.mrb[8].mxu0 }
 0x1cd   :  { %v1201_v38 = vadd.f32 %v2734_v32, %v4156_v43  ;;  %v1192_v39 = vpop.f32.mrb[9].mxu0 }
 0x1ce   :  { %v1193_v40 = vadd.f32 %v4156_v43, %v1192_v39  ;;  %v2735_v42 = vpop.f32.mrb[10].mxu0 }
 0x1cf   :  { %v1204_v44 = vadd.f32 %v2735_v42, %v4156_v43  ;;  %v1195_v45 = vpop.f32.mrb[11].mxu0  ;;  %v4293_v47 = vmax.f32 %v1201_v38, 0.0 }
 0x1d0   :  { %v4295_v49 = vmax.f32 %v1193_v40, 0.0  ;;  %v1196_v50 = vadd.f32 %v4156_v43, %v1195_v45 }
 0x1d1   :  { %v4302_v53 = vmax.f32 %v1204_v44, 0.0  ;;  %v1287_v6 = vmul.f32 %v4293_v47, %v4293_v47  ;;  %v1258_v59 = vsel %vm943_vm3, %v4293_v47, 0.0 }
 0x1d2   :  { %v1254_v18 = vsel %vm943_vm3, %v4295_v49, 0.0  ;;  %v1285_v52 = vmul.f32 %v4295_v49, %v4295_v49  ;;  %v4304_v2 = vmax.f32 %v1196_v50, 0.0 }
 0x1d3   :  { %v1255_v30 = vadd.f32 %v1254_v18, %v1253_v5  ;;  %v1288_v60 = vmul.f32 %v4302_v53, %v4302_v53  ;;  %v1312_v63 = vsel %vm943_vm3, %v1287_v6, 0.0  ;;  %v1260_v7 = vsel %vm943_vm3, %v4302_v53, 0.0 }
 0x1d4   :  { %v1308_v33 = vsel %vm943_vm3, %v1285_v52, 0.0  ;;  %v1256_v57 = vsel %vm943_vm3, %v4304_v2, 0.0  ;;  %v1286_v55 = vmul.f32 %v4304_v2, %v4304_v2 }
 0x1d5   :  { %v1309_v58 = vadd.f32 %v1308_v33, %v1307_v37  ;;  %v1257_v56 = vadd.f32 %v1256_v57, %v1255_v30  ;;  %v1314_v10 = vsel %vm943_vm3, %v1288_v60, 0.0 }
 0x1d6   :  { %v1310_v34 = vsel %vm943_vm3, %v1286_v55, 0.0 }
 0x1d7   :  { %v1259_v62 = vadd.f32 %v1258_v59, %v1257_v56  ;;  %v1311_v35 = vadd.f32 %v1310_v34, %v1309_v58 }
 0x1d9   :  { %v1313_v4 = vadd.f32 %v1312_v63, %v1311_v35  ;;  %v1261_v41 = vadd.f32 %v1260_v7, %v1259_v62 }
 0x1db   :  { %v1315_v14 = vadd.f32 %v1314_v10, %v1313_v4  ;;  %v1339_v10 = vlaneseq }
 0x1e9   :  { %v2738_v15 = vpop.f32.mrb[12].mxu0 }
 0x1ea   :  { %v1217_v16 = vadd.f32 %v2738_v15, %v4156_v43  ;;  %v1208_v17 = vpop.f32.mrb[13].mxu0  ;;  %v1334_v15 = vld [vmem:[%s4880_s3] sm:$0x1] }
 0x1eb   :  { %v1209_v19 = vadd.f32 %v4156_v43, %v1208_v17  ;;  %v2739_v22 = vpop.f32.mrb[14].mxu0 }
 0x1ec   :  { %v1220_v23 = vadd.f32 %v2739_v22, %v4156_v43  ;;  %v1211_v24 = vpop.f32.mrb[15].mxu0  ;;  %v4325_v25 = vmax.f32 %v1217_v16, 0.0  ;;  %v1360_v22 = vld [vmem:[%s4881_s4] sm:$0x1] }
 0x1ed   :  { %v4327_v26 = vmax.f32 %v1209_v19, 0.0  ;;  %v1212_v27 = vadd.f32 %v4156_v43, %v1211_v24 }
 0x1ee   :  { %v4334_v8 = vmax.f32 %v1220_v23, 0.0  ;;  %v1291_v1 = vmul.f32 %v4325_v25, %v4325_v25  ;;  %v1266_v5 = vsel %vm943_vm3, %v4325_v25, 0.0 }
 0x1ef   :  { %v1262_v61 = vsel %vm943_vm3, %v4327_v26, 0.0  ;;  %v1289_v11 = vmul.f32 %v4327_v26, %v4327_v26  ;;  %v1236_v28 = vmax.f32 %v1212_v27, 0.0 }
 0x1f0   :  { %v1263_v9 = vadd.f32 %v1262_v61, %v1261_v41  ;;  %v1292_v0 = vmul.f32 %v4334_v8, %v4334_v8  ;;  %v1320_v39 = vsel %vm943_vm3, %v1291_v1, 0.0  ;;  %v1268_v40 = vsel %vm943_vm3, %v4334_v8, 0.0 }
 0x1f1   :  { %v1316_v29 = vsel %vm943_vm3, %v1289_v11, 0.0  ;;  %v1264_v3 = vsel %vm943_vm3, %v1236_v28, 0.0  ;;  %v1290_v31 = vmul.f32 %v1236_v28, %v1236_v28 }
 0x1f2   :  { %v1317_v36 = vadd.f32 %v1316_v29, %v1315_v14  ;;  %v1265_v43 = vadd.f32 %v1264_v3, %v1263_v9  ;;  %v1322_v45 = vsel %vm943_vm3, %v1292_v0, 0.0  ;;  %v1340_v14 = vshrl.u32 %v1339_v10, 7 }
 0x1f3   :  { %v1318_v37 = vsel %vm943_vm3, %v1290_v31, 0.0 }
 0x1f4   :  { %v1267_v32 = vadd.f32 %v1266_v5, %v1265_v43  ;;  %v1319_v38 = vadd.f32 %v1318_v37, %v1317_v36  ;;  %v4352_v16 = vsub.s32 0, %v1340_v14  ;;  %v3426_v14 = vld [vmem:[%s4882_s5] sm:$0xff]  }
 0x1f5   :  { %2740 = vmatprep.subr.bf16.mxu1 %v3426_v14 }
 0x1f6   :  { %v1269_v42 = vadd.f32 %v1268_v40, %v1267_v32  ;;  %v1321_v44 = vadd.f32 %v1320_v39, %v1319_v38  ;;  %2741 = vmatpush3.bf16.msra.mxu1 %v3426_v14 }
 0x1f8   :  { %v1270_v50 = vrot.slane %v1269_v42, 4  ;;  %v1323_v18 = vadd.f32 %v1322_v45, %v1321_v44 }
 0x1fa   :  { %v1271_v52 = vadd.f32 %v1270_v50, %v1269_v42  ;;  %v1324_v30 = vrot.slane %v1323_v18, 4  ;;  %v1461_v50 = vld [vmem:[#allocation3 + $0x1] sm:$0xff] }
 0x1fc   :  { %v1272_v6 = vrot.slane %v1271_v52, 2  ;;  %v1325_v33 = vadd.f32 %v1324_v30, %v1323_v18 }
 0x1fe   :  { %v1273_v57 = vadd.f32 %v1272_v6, %v1271_v52  ;;  %v1326_v55 = vrot.slane %v1325_v33, 2  ;;  %v1477_v6 = vld [vmem:[#allocation3 + $0x2] sm:$0xff] }
 0x200   :  { %v1274_v58 = vrot.slane %v1273_v57, 1  ;;  %v1327_v56 = vadd.f32 %v1326_v55, %v1325_v33 }
 0x202   :  { %v1275_v59 = vadd.f32 %v1274_v58, %v1273_v57  ;;  %v1328_v60 = vrot.slane %v1327_v56, 1 }
 0x204   :  { %v1276_v34 = vmul.f32 0.0078125, %v1275_v59  ;;  %v1329_v62 = vadd.f32 %v1328_v60, %v1327_v56 }
 0x206   :  { %v1330_v35 = vmul.f32 0.0078125, %v1329_v62  ;;  %v1331_v63 = vmul.f32 %v1276_v34, %v1276_v34 }
 0x208   :  { %v1332_v7 = vsub.f32 %v1330_v35, %v1331_v63 }
 0x20a   :  { %v1333_v4 = vmax.f32 %v1332_v7, 0.0 }
 0x20c   :  { %v1335_v41 = vadd.f32 1e-05, %v1333_v4 }
 0x20e   :  { %3431 = vrsqrt.f32 %v1335_v41 }
 0x218   :  { %v3432_v17 = vpop.eup %3431 }
 0x219   :  { %v1337_v19 = vmul.f32 %v3432_v17, %v1334_v15 }
 0x21b   :  { %v1342_v23 = vrot.slane %v1337_v19, %v4352_v16  ;;  %v1361_v24 = vmul.f32 %v1337_v19, %v1276_v34  ;;  %v3427_v19 = vld [vmem:[%s4882_s5 + $0x8] sm:$0xff]  }
 0x21c   :  { %2742 = vmatprep.subr.bf16.mxu1 %v3427_v19 }
 0x21d   :  { %v1357_v27 = vmul.f32 %v1342_v23, %v1236_v28  ;;  %v1362_v61 = vsub.f32 %v1360_v22, %v1361_v24  ;;  %v1345_v11 = vmul.f32 %v1342_v23, %v4160_v46  ;;  %v1346_v9 = vmul.f32 %v1342_v23, %v4236_v51  ;;  %2743 = vmatpush3.bf16.msra.mxu1 %v3427_v19 }
 0x21e   :  { %v1344_v1 = vmul.f32 %v1342_v23, %v4163_v48  ;;  %v1347_v29 = vmul.f32 %v1342_v23, %v4245_v54  ;;  %v1348_v3 = vmul.f32 %v1342_v23, %v4262_v13  ;;  %v1349_v31 = vmul.f32 %v1342_v23, %v4272_v21 }
 0x21f   :  { %v1367_v36 = vrot.slane %v1362_v61, %v4352_v16  ;;  %v1350_v43 = vmul.f32 %v1342_v23, %v4260_v12  ;;  %v1351_v5 = vmul.f32 %v1342_v23, %v4270_v20  ;;  %v1352_v28 = vmul.f32 %v1342_v23, %v4295_v49 }
 0x220   :  { %v1353_v46 = vmul.f32 %v1342_v23, %v4304_v2  ;;  %v1354_v51 = vmul.f32 %v1342_v23, %v4293_v47  ;;  %v1355_v48 = vmul.f32 %v1342_v23, %v4302_v53  ;;  %v1356_v54 = vmul.f32 %v1342_v23, %v4327_v26 }
 0x221   :  { %v1382_v0 = vadd.f32 %v1367_v36, %v1357_v27  ;;  %v1370_v13 = vadd.f32 %v1367_v36, %v1345_v11  ;;  %v1371_v37 = vadd.f32 %v1367_v36, %v1346_v9  ;;  %v1369_v21 = vadd.f32 %v1367_v36, %v1344_v1  ;;  %v3428_v27 = vld [vmem:[%s4882_s5 + $0x10] sm:$0xff]   ;;  %v3429_v9 = vld [vmem:[%s4882_s5 + $0x18] sm:$0xff]   ;;  %v3430_v1 = vld [vmem:[%s4882_s5 + $0x20] ss:$0 sps:$4 sm:$0xff]  }
 0x222   :  { %v1372_v32 = vadd.f32 %v1367_v36, %v1347_v29  ;;  %v1373_v38 = vadd.f32 %v1367_v36, %v1348_v3  ;;  %v1374_v39 = vadd.f32 %v1367_v36, %v1349_v31  ;;  %v1375_v12 = vadd.f32 %v1367_v36, %v1350_v43  ;;  %2744 = vmatprep.subr.bf16.mxu1 %v3428_v27 }
 0x223   :  { %1442 = vst.msk [vmem:[#allocation3 + $0x101] sm:$0xff] %vm943_vm3, %v1382_v0  ;;  %1430 = vst.msk [vmem:[#allocation3 + $0x21] sm:$0xff] %vm943_vm3, %v1370_v13  ;;  %v1376_v20 = vadd.f32 %v1367_v36, %v1351_v5  ;;  %v1377_v47 = vadd.f32 %v1367_v36, %v1352_v28  ;;  %v1378_v49 = vadd.f32 %v1367_v36, %v1353_v46  ;;  %2745 = vmatpush3.bf16.msra.mxu1 %v3428_v27 }
 0x224   :  { %1431 = vst.msk [vmem:[#allocation3 + $0x31] sm:$0xff] %vm943_vm3, %v1371_v37  ;;  %1429 = vst.msk [vmem:[#allocation3 + $0x11] sm:$0xff] %vm943_vm3, %v1369_v21  ;;  %v1379_v53 = vadd.f32 %v1367_v36, %v1354_v51  ;;  %v1380_v2 = vadd.f32 %v1367_v36, %v1355_v48  ;;  %v1381_v26 = vadd.f32 %v1367_v36, %v1356_v54  ;;  %2746 = vmatprep.subr.bf16.mxu1 %v3429_v9 }
 0x225   :  { %1432 = vst.msk [vmem:[#allocation3 + $0x41] sm:$0xff] %vm943_vm3, %v1372_v32  ;;  %1433 = vst.msk [vmem:[#allocation3 + $0x51] sm:$0xff] %vm943_vm3, %v1373_v38  ;;  %v1358_v40 = vmul.f32 %v1342_v23, %v4325_v25  ;;  %v1359_v42 = vmul.f32 %v1342_v23, %v4334_v8  ;;  %v2312_v5 = vsel %vm2310_vm14, %v3430_v1, 0 }
 0x226   :  { %1434 = vst.msk [vmem:[#allocation3 + $0x61] sm:$0xff] %vm943_vm3, %v1374_v39  ;;  %1435 = vst.msk [vmem:[#allocation3 + $0x71] sm:$0xff] %vm943_vm3, %v1375_v12 }
 0x227   :  { %1436 = vst.msk [vmem:[#allocation3 + $0x81] sm:$0xff] %vm943_vm3, %v1376_v20  ;;  %1437 = vst.msk [vmem:[#allocation3 + $0xb1] sm:$0xff] %vm943_vm3, %v1377_v47  ;;  %v1383_v44 = vadd.f32 %v1367_v36, %v1358_v40  ;;  %v1384_v45 = vadd.f32 %v1367_v36, %v1359_v42  ;;  %2747 = vmatpush3.bf16.msra.mxu1 %v3429_v9  ;;  %v1549_v47 = vld [vmem:[#allocation3 + $0x90] sm:$0xff]  ;;  %v1469_v40 = vld [vmem:[#allocation3 + $0xa1] sm:$0xff] }
 0x228   :  { %1438 = vst.msk [vmem:[#allocation3 + $0xc1] sm:$0xff] %vm943_vm3, %v1378_v49  ;;  %1439 = vst.msk [vmem:[#allocation3 + $0xd1] sm:$0xff] %vm943_vm3, %v1379_v53  ;;  %2767 = vmatprep.subr.msk.bf16.mxu1 %vm2310_vm14, %v3430_v1 }
 0x229   :  { %1440 = vst.msk [vmem:[#allocation3 + $0xe1] sm:$0xff] %vm943_vm3, %v1380_v2  ;;  %1441 = vst.msk [vmem:[#allocation3 + $0xf1] sm:$0xff] %vm943_vm3, %v1381_v26  ;;  %v1565_v2 = vld [vmem:[#allocation3 + $0x91] sm:$0xff] }
 0x22a   :  { %1443 = vst.msk [vmem:[#allocation3 + $0x111] sm:$0xff] %vm943_vm3, %v1383_v44  ;;  %1444 = vst.msk [vmem:[#allocation3 + $0x121] sm:$0xff] %vm943_vm3, %v1384_v45  ;;  %v1463_v25 = vld [vmem:[#allocation3 + $0x21] sm:$0xff] }
 0x22b   :  { %v1464_v8 = vld [vmem:[#allocation3 + $0x31] sm:$0xff]  ;;  %v1479_v33 = vld [vmem:[#allocation3 + $0x22] sm:$0xff]  ;;  %2749 = vmatpush3.bf16.msra.mxu1 %v2312_v5 }
 0x22c   :  { %v1462_v18 = vld [vmem:[#allocation3 + $0x11] sm:$0xff]  ;;  %v3108_v52 = vpack.i.bf16 %v1464_v8, %v1463_v25  ;;  %v4394_v60 = vld [vmem:[#allocation3 + $0x40] sm:$0xff] }
 0x22d   :  { %v3103_v30 = vpack.i.bf16 %v1462_v18, %v1461_v50  ;;  %v1480_v57 = vld [vmem:[#allocation3 + $0x32] sm:$0xff]  ;;  %v4398_v62 = vld [vmem:[#allocation3 + $0x20] sm:$0xff]  ;;  %v3133_v41 = vpack.i.bf16 %v1463_v25, %v1462_v18 }
 0x22e   :  { %v1478_v55 = vld [vmem:[#allocation3 + $0x12] sm:$0xff]  ;;  %3109 = vrot.lane.b32.xlu1 %v3108_v52, %s3460_s16  ;;  %v3118_v58 = vpack.i.bf16 %v1480_v57, %v1479_v33  ;;  %v1512_v7 = vld [vmem:[#allocation3 + $0x41] sm:$0xff] }
 0x22f   :  { %3104 = vrot.lane.b32.xlu0 %v3103_v30, %s3460_s16  ;;  %v3113_v56 = vpack.i.bf16 %v1478_v55, %v1477_v6  ;;  %v4392_v59 = vld [vmem:[#allocation3 + $0x30] sm:$0xff]  ;;  %v3138_v4 = vpack.i.bf16 %v1512_v7, %v1464_v8  ;;  %v1528_v10 = vld [vmem:[#allocation3 + $0x42] sm:$0xff]  ;;  %v3143_v17 = vpack.i.bf16 %v1479_v33, %v1478_v55 }
 0x230   :  { %v4396_v34 = vld [vmem:[#allocation3 + $0x10] sm:$0xff]  ;;  %v3128_v35 = vpack.i.bf16 %v4394_v60, %v4392_v59  ;;  %v3148_v15 = vpack.i.bf16 %v1528_v10, %v1480_v57  ;;  %v3153_v24 = vpack.i.bf16 %v4392_v59, %v4398_v62  ;;  %v1467_v29 = vld [vmem:[#allocation3 + $0x61] sm:$0xff] }
 0x231   :  { %v3123_v63 = vpack.i.bf16 %v4398_v62, %v4396_v34  ;;  %v4416_v22 = vld [vmem:[#allocation3 + $0x50] sm:$0xff]  ;;  %v1483_v28 = vld [vmem:[#allocation3 + $0x62] sm:$0xff] }
 0x232   :  { %3119 = vrot.lane.b32.xlu1 %v3118_v58, %s3463_s24  ;;  %v3158_v23 = vpack.i.bf16 %v4416_v22, %v4394_v60  ;;  %v1561_v61 = vld [vmem:[#allocation3 + $0x51] sm:$0xff]  ;;  %v1500_v54 = vld [vmem:[#allocation3 + $0x80] sm:$0xff] }
 0x233   :  { %3114 = vrot.lane.b32.xlu0 %v3113_v56, %s3463_s24  ;;  %v3168_v11 = vpack.i.bf16 %v1561_v61, %v1512_v7  ;;  %v1468_v3 = vld [vmem:[#allocation3 + $0x71] sm:$0xff]  ;;  %v4443_v0 = vld [vmem:[#allocation3 + $0x60] sm:$0xff]  ;;  %v3213_v38 = vpack.i.bf16 %v1467_v29, %v1561_v61  ;;  %v3238_v49 = vpack.i.bf16 %v1549_v47, %v1500_v54 }
 0x234   :  { %v1577_v31 = vld [vmem:[#allocation3 + $0x52] sm:$0xff]  ;;  %v3188_v36 = vpack.i.bf16 %v1468_v3, %v1467_v29  ;;  %v3203_v37 = vpack.i.bf16 %v4443_v0, %v4416_v22  ;;  %v1516_v21 = vld [vmem:[#allocation3 + $0x81] sm:$0xff] }
 0x235   :  { %v3183_v43 = vpack.i.bf16 %v1577_v31, %v1528_v10  ;;  %v1484_v46 = vld [vmem:[#allocation3 + $0x72] sm:$0xff]  ;;  %v3218_v32 = vpack.i.bf16 %v1516_v21, %v1468_v3  ;;  %v1532_v39 = vld [vmem:[#allocation3 + $0x82] sm:$0xff]  ;;  %v3223_v20 = vpack.i.bf16 %v1483_v28, %v1577_v31  ;;  %v3248_v26 = vpack.i.bf16 %v1565_v2, %v1516_v21 }
 0x236   :  { %3129 = vrot.lane.b32.xlu1 %v3128_v35, %s3465_s25  ;;  %v3198_v51 = vpack.i.bf16 %v1484_v46, %v1483_v28  ;;  %v4441_v48 = vld [vmem:[#allocation3 + $0x70] sm:$0xff]  ;;  %v3228_v12 = vpack.i.bf16 %v1532_v39, %v1484_v46  ;;  %v1471_v45 = vld [vmem:[#allocation3 + $0xc1] sm:$0xff] }
 0x237   :  { %3124 = vrot.lane.b32.xlu0 %v3123_v63, %s3465_s25  ;;  %v3208_v13 = vpack.i.bf16 %v1500_v54, %v4441_v48  ;;  %v3233_v53 = vpack.i.bf16 %v4441_v48, %v4443_v0  ;;  %v1470_v42 = vld [vmem:[#allocation3 + $0xb1] sm:$0xff]  ;;  %v1487_v30 = vld [vmem:[#allocation3 + $0xc2] sm:$0xff] }
 0x238   :  { %v3258_v44 = vpack.i.bf16 %v1470_v42, %v1469_v40  ;;  %v1472_v50 = vld [vmem:[#allocation3 + $0xd1] sm:$0xff]  ;;  %v4468_v56 = vld [vmem:[#allocation3 + $0xe0] sm:$0xff]  ;;  %v3293_v14 = vpack.i.bf16 %v1471_v45, %v1470_v42 }
 0x239   :  { %v1581_v25 = vld [vmem:[#allocation3 + $0x92] sm:$0xff]  ;;  %v3268_v8 = vpack.i.bf16 %v1472_v50, %v1471_v45  ;;  %v4472_v63 = vld [vmem:[#allocation3 + $0xc0] sm:$0xff] }
 0x23a   :  { %3139 = vrot.lane.b32.xlu1 %v3138_v4, %s3467_s14  ;;  %v3263_v18 = vpack.i.bf16 %v1581_v25, %v1532_v39  ;;  %v1488_v6 = vld [vmem:[#allocation3 + $0xd2] sm:$0xff]  ;;  %v1475_v9 = vld [vmem:[#allocation3 + $0x101] sm:$0xff] }
 0x23b   :  { %3134 = vrot.lane.b32.xlu0 %v3133_v41, %s3467_s14  ;;  %v1486_v33 = vld [vmem:[#allocation3 + $0xb2] sm:$0xff]  ;;  %v3278_v57 = vpack.i.bf16 %v1488_v6, %v1487_v30  ;;  %v1520_v41 = vld [vmem:[#allocation3 + $0xe1] sm:$0xff] }
 0x23c   :  { %v4470_v35 = vld [vmem:[#allocation3 + $0xb0] sm:$0xff]  ;;  %v3298_v10 = vpack.i.bf16 %v1520_v41, %v1472_v50  ;;  %v3303_v19 = vpack.i.bf16 %v1487_v30, %v1486_v33  ;;  %v1508_v46 = vld [vmem:[#allocation3 + $0x120] sm:$0xff] }
 0x23d   :  { %v3283_v4 = vpack.i.bf16 %v4472_v63, %v4470_v35  ;;  %v1569_v61 = vld [vmem:[#allocation3 + $0xf1] sm:$0xff] }
 0x23e   :  { %3149 = vrot.lane.b32.xlu1 %v3148_v15, %s3468_s20  ;;  %v1536_v15 = vld [vmem:[#allocation3 + $0xe2] sm:$0xff]  ;;  %v1476_v1 = vld [vmem:[#allocation3 + $0x111] sm:$0xff] }
 0x23f   :  { %3144 = vrot.lane.b32.xlu0 %v3143_v17, %s3468_s20  ;;  %v3308_v17 = vpack.i.bf16 %v1536_v15, %v1488_v6  ;;  %v1585_v29 = vld [vmem:[#allocation3 + $0xf2] sm:$0xff]  ;;  %v3348_v3 = vpack.i.bf16 %v1476_v1, %v1475_v9 }
 0x240   :  { %v3343_v31 = vpack.i.bf16 %v1585_v29, %v1536_v15  ;;  %v4500_v28 = vld [vmem:[#allocation3 + $0x110] sm:$0xff] }
 0x241   :  { %v3368_v54 = vpack.i.bf16 %v1508_v46, %v4500_v28  ;;  %v1589_v45 = vld [vmem:[#allocation3 + $0x132] sm:$0xff] }
 0x242   :  { %3159 = vrot.lane.b32.xlu1 %v3158_v23, %s3469_s26  ;;  %v4484_v23 = vld [vmem:[#allocation3 + $0xf0] sm:$0xff] }
 0x243   :  { %3154 = vrot.lane.b32.xlu0 %v3153_v24, %s3469_s26  ;;  %v3318_v24 = vpack.i.bf16 %v4484_v23, %v4468_v56 }
 0x246   :  { %3169 = vrot.lane.b32.xlu1 %v3168_v11, %s3470_s29 }
 0x247   :  { %3164 = vrot.lane.b32.xlu0 %v3108_v52, %s3470_s29  ;;  %v1485_v52 = vld [vmem:[#allocation3 + $0xa2] sm:$0xff] }
 0x248   :  { %v3273_v55 = vpack.i.bf16 %v1486_v33, %v1485_v52 }
 0x24a   :  { %3179 = vrot.lane.b32.xlu1 %v3168_v11, %s3460_s16  ;;  %v3328_v11 = vpack.i.bf16 %v1569_v61, %v1520_v41 }
 0x24b   :  { %3174 = vrot.lane.b32.xlu0 %v3118_v58, %s3471_s11  ;;  %v4466_v58 = vld [vmem:[#allocation3 + $0xd0] sm:$0xff] }
 0x24c   :  { %v3288_v7 = vpack.i.bf16 %v4468_v56, %v4466_v58  ;;  %v3313_v27 = vpack.i.bf16 %v4466_v58, %v4472_v63 }
 0x24e   :  { %3189 = vrot.lane.b32.xlu1 %v3188_v36, %s3460_s16 }
 0x24f   :  { %3184 = vrot.lane.b32.xlu0 %v3183_v43, %s3471_s11 }
 0x252   :  { %3199 = vrot.lane.b32.xlu1 %v3198_v51, %s3463_s24 }
 0x253   :  { %3194 = vrot.lane.b32.xlu0 %v3183_v43, %s3463_s24  ;;  %v1492_v43 = vld [vmem:[#allocation3 + $0x112] sm:$0xff] }
 0x256   :  { %3209 = vrot.lane.b32.xlu1 %v3208_v13, %s3465_s25 }
 0x257   :  { %3204 = vrot.lane.b32.xlu0 %v3203_v37, %s3465_s25  ;;  %v1524_v37 = vld [vmem:[#allocation3 + $0x121] sm:$0xff] }
 0x258   :  { %v3378_v21 = vpack.i.bf16 %v1524_v37, %v1476_v1 }
 0x25a   :  { %3219 = vrot.lane.b32.xlu1 %v3218_v32, %s3467_s14  ;;  %v3373_v32 = vpack.i.bf16 %v1475_v9, %v1569_v61 }
 0x25b   :  { %3214 = vrot.lane.b32.xlu0 %v3213_v38, %s3467_s14  ;;  %v1540_v38 = vld [vmem:[#allocation3 + $0x122] sm:$0xff] }
 0x25c   :  { %v3388_v39 = vpack.i.bf16 %v1540_v38, %v1492_v43 }
 0x25e   :  { %3229 = vrot.lane.b32.xlu1 %v3228_v12, %s3468_s20 }
 0x25f   :  { %3224 = vrot.lane.b32.xlu0 %v3223_v20, %s3468_s20  ;;  %v1557_v20 = vld [vmem:[#allocation3 + $0x130] sm:$0xff] }
 0x262   :  { %3239 = vrot.lane.b32.xlu1 %v3238_v49, %s3469_s26 }
 0x263   :  { %3234 = vrot.lane.b32.xlu0 %v3233_v53, %s3469_s26  ;;  %v3398_v53 = vpack.i.bf16 %v1557_v20, %v1508_v46 }
 0x266   :  { %3249 = vrot.lane.b32.xlu1 %v3248_v26, %s3470_s29  ;;  %v1573_v26 = vld [vmem:[#allocation3 + $0x131] sm:$0xff] }
 0x267   :  { %3244 = vrot.lane.b32.xlu0 %v3188_v36, %s3470_s29  ;;  %v1491_v36 = vld [vmem:[#allocation3 + $0x102] sm:$0xff] }
 0x268   :  { %v3358_v5 = vpack.i.bf16 %v1492_v43, %v1491_v36  ;;  %v3383_v12 = vpack.i.bf16 %v1491_v36, %v1585_v29 }
 0x26a   :  { %3259 = vrot.lane.b32.xlu1 %v3258_v44, %s3460_s16  ;;  %v3408_v44 = vpack.i.bf16 %v1573_v26, %v1524_v37 }
 0x26b   :  { %3254 = vrot.lane.b32.xlu0 %v3198_v51, %s3471_s11  ;;  %v4502_v51 = vld [vmem:[#allocation3 + $0x100] sm:$0xff] }
 0x26c   :  { %v3363_v13 = vpack.i.bf16 %v4502_v51, %v4484_v23  ;;  %v3393_v2 = vpack.i.bf16 %v4500_v28, %v4502_v51 }
 0x26e   :  { %3269 = vrot.lane.b32.xlu1 %v3268_v8, %s3460_s16 }
 0x26f   :  { %3264 = vrot.lane.b32.xlu0 %v3263_v18, %s3471_s11 }
 0x272   :  { %3279 = vrot.lane.b32.xlu1 %v3278_v57, %s3463_s24 }
 0x273   :  { %3274 = vrot.lane.b32.xlu0 %v3273_v55, %s3463_s24 }
 0x276   :  { %3289 = vrot.lane.b32.xlu1 %v3288_v7, %s3465_s25 }
 0x277   :  { %3284 = vrot.lane.b32.xlu0 %v3283_v4, %s3465_s25 }
 0x27a   :  { %3299 = vrot.lane.b32.xlu1 %v3298_v10, %s3467_s14  ;;  %v1445_v10 = vld [vmem:[#allocation3] sm:$0xff] }
 0x27b   :  { %3294 = vrot.lane.b32.xlu0 %v3293_v14, %s3467_s14 }
 0x27e   :  { %3309 = vrot.lane.b32.xlu1 %v3308_v17, %s3468_s20 }
 0x27f   :  { %3304 = vrot.lane.b32.xlu0 %v3303_v19, %s3468_s20 }
 0x282   :  { %3319 = vrot.lane.b32.xlu1 %v3318_v24, %s3469_s26 }
 0x283   :  { %3314 = vrot.lane.b32.xlu0 %v3313_v27, %s3469_s26 }
 0x286   :  { %3329 = vrot.lane.b32.xlu1 %v3328_v11, %s3470_s29 }
 0x287   :  { %3324 = vrot.lane.b32.xlu0 %v3268_v8, %s3470_s29  ;;  %v3418_v8 = vpack.i.bf16 %v1589_v45, %v1540_v38 }
 0x28a   :  { %3339 = vrot.lane.b32.xlu1 %v3328_v11, %s3460_s16 }
 0x28b   :  { %3334 = vrot.lane.b32.xlu0 %v3278_v57, %s3471_s11 }
 0x28e   :  { %3349 = vrot.lane.b32.xlu1 %v3348_v3, %s3460_s16 }
 0x28f   :  { %3344 = vrot.lane.b32.xlu0 %v3343_v31, %s3471_s11 }
 0x292   :  { %3359 = vrot.lane.b32.xlu1 %v3358_v5, %s3463_s24 }
 0x293   :  { %3354 = vrot.lane.b32.xlu0 %v3343_v31, %s3463_s24 }
 0x296   :  { %3369 = vrot.lane.b32.xlu1 %v3368_v54, %s3465_s25 }
 0x297   :  { %3364 = vrot.lane.b32.xlu0 %v3363_v13, %s3465_s25 }
 0x29a   :  { %3379 = vrot.lane.b32.xlu1 %v3378_v21, %s3467_s14 }
 0x29b   :  { %3374 = vrot.lane.b32.xlu0 %v3373_v32, %s3467_s14 }
 0x29e   :  { %3389 = vrot.lane.b32.xlu1 %v3388_v39, %s3468_s20 }
 0x29f   :  { %3384 = vrot.lane.b32.xlu0 %v3383_v12, %s3468_s20 }
 0x2a0   :  { %v3110_v47 = vpop.permute.xlu1 %3109 }
 0x2a1   :  { %v3105_v49 = vpop.permute.xlu0 %3104  ;;  %v3112_v33 = vunpack.i.h.bf16 %v3110_v47  ;;  %v3111_v57 = vunpack.i.l.bf16 %v3110_v47 }
 0x2a2   :  { %3399 = vrot.lane.b32.xlu1 %v3398_v53, %s3469_s26  ;;  %v3107_v55 = vunpack.i.h.bf16 %v3105_v49  ;;  %v3106_v7 = vunpack.i.l.bf16 %v3105_v49 }
 0x2a3   :  { %3394 = vrot.lane.b32.xlu0 %v3393_v2, %s3469_s26  ;;  %v2105_v61 = vsel %vm943_vm3, %v4392_v59, %v3112_v33  ;;  %v2104_v11 = vsel %vm943_vm3, %v4398_v62, %v3111_v57 }
 0x2a4   :  { %v3120_v40 = vpop.permute.xlu1 %3119  ;;  %v2102_v29 = vsel %vm943_vm3, %v1445_v10, %v3106_v7 }
 0x2a5   :  { %v3115_v42 = vpop.permute.xlu0 %3114  ;;  %v3122_v4 = vunpack.i.h.bf16 %v3120_v40  ;;  %v3121_v41 = vunpack.i.l.bf16 %v3120_v40 }
 0x2a6   :  { %3409 = vrot.lane.b32.xlu1 %v3408_v44, %s3470_s29  ;;  %v3117_v14 = vunpack.i.h.bf16 %v3115_v42  ;;  %v3116_v15 = vunpack.i.l.bf16 %v3115_v42 }
 0x2a7   :  { %3404 = vrot.lane.b32.xlu0 %v3348_v3, %s3470_s29  ;;  %v2103_v3 = vsel %vm943_vm3, %v4396_v34, %v3107_v55  ;;  %v2120_v31 = vsel %vm977_vm6, %v2104_v11, %v3121_v41  ;;  %v2121_v36 = vsel %vm977_vm6, %v2105_v61, %v3122_v4 }
 0x2a8   :  { %v3130_v50 = vpop.permute.xlu1 %3129  ;;  %v2118_v43 = vsel %vm977_vm6, %v2102_v29, %v3116_v15 }
 0x2a9   :  { %v3125_v25 = vpop.permute.xlu0 %3124  ;;  %v3132_v17 = vunpack.i.h.bf16 %v3130_v50  ;;  %v3131_v19 = vunpack.i.l.bf16 %v3130_v50 }
 0x2aa   :  { %3419 = vrot.lane.b32.xlu1 %v3418_v8, %s3471_s11  ;;  %v3127_v9 = vunpack.i.h.bf16 %v3125_v25  ;;  %v3126_v1 = vunpack.i.l.bf16 %v3125_v25 }
 0x2ab   :  { %3414 = vrot.lane.b32.xlu0 %v3358_v5, %s3471_s11  ;;  %v2119_v5 = vsel %vm977_vm6, %v2103_v3, %v3117_v14  ;;  %v2136_v62 = vsel %vm1011_vm8, %v2120_v31, %v3131_v19  ;;  %v2137_v54 = vsel %vm1011_vm8, %v2121_v36, %v3132_v17 }
 0x2ac   :  { %v4523_v18 = vpop.permute.xlu1 %3139  ;;  %v2134_v34 = vsel %vm1011_vm8, %v2118_v43, %v3126_v1  ;;  %v2135_v38 = vsel %vm1011_vm8, %v2119_v5, %v3127_v9 }
 0x2ad   :  { %v3135_v52 = vpop.permute.xlu0 %3134  ;;  %v3142_v20 = vunpack.i.h.bf16 %v4523_v18  ;;  %v3141_v47 = vunpack.i.l.bf16 %v4523_v18 }
 0x2ae   :  { %v3137_v46 = vunpack.i.h.bf16 %v3135_v52  ;;  %v3136_v59 = vunpack.i.l.bf16 %v3135_v52 }
 0x2af   :  { %v2152_v41 = vsel %vm1045_vm10, %v2136_v62, %v3141_v47  ;;  %v2153_v10 = vsel %vm1045_vm10, %v2137_v54, %v3142_v20 }
 0x2b0   :  { %v4525_v30 = vpop.permute.xlu1 %3149  ;;  %v2150_v2 = vsel %vm1045_vm10, %v2134_v34, %v3136_v59  ;;  %v2151_v26 = vsel %vm1045_vm10, %v2135_v38, %v3137_v46 }
 0x2b1   :  { %v3145_v6 = vpop.permute.xlu0 %3144  ;;  %v3152_v40 = vunpack.i.h.bf16 %v4525_v30  ;;  %v3151_v42 = vunpack.i.l.bf16 %v4525_v30 }
 0x2b2   :  { %v3147_v13 = vunpack.i.h.bf16 %v3145_v6  ;;  %v3146_v37 = vunpack.i.l.bf16 %v3145_v6 }
 0x2b3   :  { %v2169_v17 = vsel %vm2166_vm15, %v2152_v41, %v3151_v42  ;;  %v2170_v19 = vsel %vm2166_vm15, %v2153_v10, %v3152_v40 }
 0x2b4   :  { %v3160_v24 = vpop.permute.xlu1 %3159  ;;  %v2167_v44 = vsel %vm2166_vm15, %v2150_v2, %v3146_v37  ;;  %v2168_v45 = vsel %vm2166_vm15, %v2151_v26, %v3147_v13 }
 0x2b5   :  { %v3155_v27 = vpop.permute.xlu0 %3154  ;;  %v3162_v50 = vunpack.i.h.bf16 %v3160_v24  ;;  %v3161_v25 = vunpack.i.l.bf16 %v3160_v24 }
 0x2b6   :  { %v3157_v39 = vunpack.i.h.bf16 %v3155_v27  ;;  %v3156_v12 = vunpack.i.l.bf16 %v3155_v27 }
 0x2b7   :  { %v2186_v11 = vsel %vm2183_vm0, %v2169_v17, %v3161_v25  ;;  %v2187_v9 = vsel %vm2183_vm0, %v2170_v19, %v3162_v50 }
 0x2b8   :  { %v3170_v21 = vpop.permute.xlu1 %3169  ;;  %v2184_v18 = vsel %vm2183_vm0, %v2167_v44, %v3156_v12  ;;  %v2185_v6 = vsel %vm2183_vm0, %v2168_v45, %v3157_v39 }
 0x2b9   :  { %v3165_v32 = vpop.permute.xlu0 %3164  ;;  %v3172_v55 = vunpack.i.h.bf16 %v3170_v21  ;;  %v3171_v7 = vunpack.i.l.bf16 %v3170_v21 }
 0x2ba   :  { %v3167_v49 = vunpack.i.h.bf16 %v3165_v32  ;;  %v3166_v53 = vunpack.i.l.bf16 %v3165_v32 }
 0x2bb   :  { %v2203_v3 = vsel %vm2200_vm1, %v2186_v11, %v3171_v7  ;;  %v2204_v31 = vsel %vm2200_vm1, %v2187_v9, %v3172_v55 }
 0x2bc   :  { %v3180_v8 = vpop.permute.xlu1 %3179  ;;  %v2201_v4 = vsel %vm2200_vm1, %v2184_v18, %v3166_v53  ;;  %v2202_v30 = vsel %vm2200_vm1, %v2185_v6, %v3167_v49 }
 0x2bd   :  { %v3175_v52 = vpop.permute.xlu0 %3174  ;;  %v3182_v39 = vunpack.i.h.bf16 %v3180_v8  ;;  %v3181_v12 = vunpack.i.l.bf16 %v3180_v8 }
 0x2be   :  { %v3177_v33 = vunpack.i.h.bf16 %v3175_v52  ;;  %v3176_v57 = vunpack.i.l.bf16 %v3175_v52 }
 0x2bf   :  { %v2107_v52 = vsel %vm943_vm3, %v4416_v22, %v3182_v39  ;;  %v2106_v8 = vsel %vm943_vm3, %v4394_v60, %v3181_v12 }
 0x2c0   :  { %v2218_v14 = vsel %vm2217_vm2, %v2201_v4, %v3176_v57  ;;  %v2219_v15 = vsel %vm2217_vm2, %v2202_v30, %v3177_v33  ;;  %v3190_v24 = vpop.permute.xlu1 %3189 }
 0x2c1   :  { %v3185_v27 = vpop.permute.xlu0 %3184  ;;  %v2234_v61 = vpack.c.bf16 %v2219_v15, %v2218_v14  ;;  %v3192_v34 = vunpack.i.h.bf16 %v3190_v24  ;;  %v3191_v38 = vunpack.i.l.bf16 %v3190_v24 }
 0x2c2   :  { %v3187_v1 = vunpack.i.h.bf16 %v3185_v27  ;;  %v3186_v29 = vunpack.i.l.bf16 %v3185_v27 }
 0x2c3   :  { %2750 = vmatprep.mubr.msk.bf16.mxu1 %vm2285_vm4, %v2234_v61  ;;  %v2109_v44 = vsel %vm943_vm3, %v4441_v48, %v3192_v34  ;;  %v2108_v45 = vsel %vm943_vm3, %v4443_v0, %v3191_v38 }
 0x2c4   :  { %v2221_v36 = vsel %vm2217_vm2, %v2204_v31, %v3187_v1  ;;  %v2220_v43 = vsel %vm2217_vm2, %v2203_v3, %v3186_v29  ;;  %v3200_v46 = vpop.permute.xlu1 %3199 }
 0x2c5   :  { %v2235_v5 = vpack.c.bf16 %v2221_v36, %v2220_v43  ;;  %v3195_v59 = vpop.permute.xlu0 %3194  ;;  %v3202_v20 = vunpack.i.h.bf16 %v3200_v46  ;;  %v3201_v47 = vunpack.i.l.bf16 %v3200_v46 }
 0x2c6   :  { %v3197_v49 = vunpack.i.h.bf16 %v3195_v59  ;;  %v3196_v53 = vunpack.i.l.bf16 %v3195_v59 }
 0x2c7   :  { %2751 = vmatmul.mubr.msk.bf16.vlgmr.msra.gmra.mrb[0].mxu1 %vm2285_vm4, %v2235_v5  ;;  %v2124_v18 = vsel %vm977_vm6, %v2108_v45, %v3201_v47  ;;  %v2125_v6 = vsel %vm977_vm6, %v2109_v44, %v3202_v20 }
 0x2c8   :  { %v3210_v62 = vpop.permute.xlu1 %3209  ;;  %v2123_v33 = vsel %vm977_vm6, %v2107_v52, %v3197_v49  ;;  %v2122_v57 = vsel %vm977_vm6, %v2106_v8, %v3196_v53 }
 0x2c9   :  { %v3205_v54 = vpop.permute.xlu0 %3204  ;;  %v3212_v2 = vunpack.i.h.bf16 %v3210_v62  ;;  %v3211_v26 = vunpack.i.l.bf16 %v3210_v62 }
 0x2ca   :  { %v3207_v50 = vunpack.i.h.bf16 %v3205_v54  ;;  %v3206_v25 = vunpack.i.l.bf16 %v3205_v54 }
 0x2cb   :  { %v2140_v0 = vsel %vm1011_vm8, %v2124_v18, %v3211_v26  ;;  %v2141_v7 = vsel %vm1011_vm8, %v2125_v6, %v3212_v2 }
 0x2cc   :  { %v4568_v13 = vpop.permute.xlu1 %3219  ;;  %v2138_v60 = vsel %vm1011_vm8, %v2122_v57, %v3206_v25  ;;  %v2139_v10 = vsel %vm1011_vm8, %v2123_v33, %v3207_v50 }
 0x2cd   :  { %v3215_v37 = vpop.permute.xlu0 %3214  ;;  %v3222_v17 = vunpack.i.h.bf16 %v4568_v13  ;;  %v3221_v19 = vunpack.i.l.bf16 %v4568_v13 }
 0x2ce   :  { %v3217_v48 = vunpack.i.h.bf16 %v3215_v37  ;;  %v3216_v55 = vunpack.i.l.bf16 %v3215_v37 }
 0x2cf   :  { %v2156_v34 = vsel %vm1045_vm10, %v2140_v0, %v3221_v19  ;;  %v2157_v38 = vsel %vm1045_vm10, %v2141_v7, %v3222_v17 }
 0x2d0   :  { %v4570_v21 = vpop.permute.xlu1 %3229  ;;  %v2154_v61 = vsel %vm1045_vm10, %v2138_v60, %v3216_v55  ;;  %v2155_v11 = vsel %vm1045_vm10, %v2139_v10, %v3217_v48 }
 0x2d1   :  { %v3225_v32 = vpop.permute.xlu0 %3224  ;;  %v3232_v9 = vunpack.i.h.bf16 %v4570_v21  ;;  %v3231_v1 = vunpack.i.l.bf16 %v4570_v21 }
 0x2d2   :  { %v3227_v4 = vunpack.i.h.bf16 %v3225_v32  ;;  %v3226_v30 = vunpack.i.l.bf16 %v3225_v32 }
 0x2d3   :  { %v2173_v20 = vsel %vm2166_vm15, %v2156_v34, %v3231_v1  ;;  %v2174_v47 = vsel %vm2166_vm15, %v2157_v38, %v3232_v9 }
 0x2d4   :  { %v3240_v40 = vpop.permute.xlu1 %3239  ;;  %v2171_v29 = vsel %vm2166_vm15, %v2154_v61, %v3226_v30  ;;  %v2172_v3 = vsel %vm2166_vm15, %v2155_v11, %v3227_v4 }
 0x2d5   :  { %v3235_v42 = vpop.permute.xlu0 %3234  ;;  %v3242_v31 = vunpack.i.h.bf16 %v3240_v40  ;;  %v3241_v36 = vunpack.i.l.bf16 %v3240_v40 }
 0x2d6   :  { %v3237_v14 = vunpack.i.h.bf16 %v3235_v42  ;;  %v3236_v15 = vunpack.i.l.bf16 %v3235_v42 }
 0x2d7   :  { %v2190_v26 = vsel %vm2183_vm0, %v2173_v20, %v3241_v36  ;;  %v2191_v40 = vsel %vm2183_vm0, %v2174_v47, %v3242_v31 }
 0x2d8   :  { %v3250_v22 = vpop.permute.xlu1 %3249  ;;  %v2188_v46 = vsel %vm2183_vm0, %v2171_v29, %v3236_v15  ;;  %v2189_v59 = vsel %vm2183_vm0, %v2172_v3, %v3237_v14  ;;  %v1453_v14 = vld [vmem:[#allocation3 + $0xa0] sm:$0xff] }
 0x2d9   :  { %v3245_v41 = vpop.permute.xlu0 %3244  ;;  %v3252_v13 = vunpack.i.h.bf16 %v3250_v22  ;;  %v3251_v37 = vunpack.i.l.bf16 %v3250_v22 }
 0x2da   :  { %v3247_v24 = vunpack.i.h.bf16 %v3245_v41  ;;  %v3246_v27 = vunpack.i.l.bf16 %v3245_v41 }
 0x2db   :  { %v2207_v45 = vsel %vm2200_vm1, %v2190_v26, %v3251_v37  ;;  %v2208_v50 = vsel %vm2200_vm1, %v2191_v40, %v3252_v13 }
 0x2dc   :  { %v3260_v43 = vpop.permute.xlu1 %3259  ;;  %v2205_v32 = vsel %vm2200_vm1, %v2188_v46, %v3246_v27  ;;  %v2206_v21 = vsel %vm2200_vm1, %v2189_v59, %v3247_v24 }
 0x2dd   :  { %v3255_v5 = vpop.permute.xlu0 %3254  ;;  %v3262_v22 = vunpack.i.h.bf16 %v3260_v43  ;;  %v3261_v41 = vunpack.i.l.bf16 %v3260_v43 }
 0x2de   :  { %v3257_v62 = vunpack.i.h.bf16 %v3255_v5  ;;  %v3256_v54 = vunpack.i.l.bf16 %v3255_v5 }
 0x2df   :  { %v2111_v3 = vsel %vm943_vm3, %v4470_v35, %v3262_v22  ;;  %v2110_v31 = vsel %vm943_vm3, %v1453_v14, %v3261_v41 }
 0x2e0   :  { %v2222_v39 = vsel %vm2217_vm2, %v2205_v32, %v3256_v54  ;;  %v2223_v12 = vsel %vm2217_vm2, %v2206_v21, %v3257_v62  ;;  %v3270_v53 = vpop.permute.xlu1 %3269 }
 0x2e1   :  { %v2236_v49 = vpack.c.bf16 %v2223_v12, %v2222_v39  ;;  %v3265_v2 = vpop.permute.xlu0 %3264  ;;  %v3272_v4 = vunpack.i.h.bf16 %v3270_v53  ;;  %v3271_v30 = vunpack.i.l.bf16 %v3270_v53 }
 0x2e2   :  { %v3267_v42 = vunpack.i.h.bf16 %v3265_v2  ;;  %v3266_v44 = vunpack.i.l.bf16 %v3265_v2 }
 0x2e3   :  { %2754 = vmatprep.mubr.msk.bf16.mxu1 %vm2285_vm4, %v2236_v49  ;;  %v2113_v11 = vsel %vm943_vm3, %v4466_v58, %v3272_v4  ;;  %v2112_v9 = vsel %vm943_vm3, %v4472_v63, %v3271_v30 }
 0x2e4   :  { %v2225_v25 = vsel %vm2217_vm2, %v2208_v50, %v3267_v42  ;;  %v2224_v52 = vsel %vm2217_vm2, %v2207_v45, %v3266_v44  ;;  %v3280_v18 = vpop.permute.xlu1 %3279 }
 0x2e5   :  { %v2237_v8 = vpack.c.bf16 %v2225_v25, %v2224_v52  ;;  %v3275_v6 = vpop.permute.xlu0 %3274  ;;  %v3282_v60 = vunpack.i.h.bf16 %v3280_v18  ;;  %v3281_v10 = vunpack.i.l.bf16 %v3280_v18 }
 0x2e6   :  { %v3277_v15 = vunpack.i.h.bf16 %v3275_v6  ;;  %v3276_v17 = vunpack.i.l.bf16 %v3275_v6 }
 0x2e7   :  { %2755 = vmatmul.mubr.msk.bf16.gmra.mrb[4].mxu1 %vm2285_vm4, %v2237_v8  ;;  %v2128_v36 = vsel %vm977_vm6, %v2112_v9, %v3281_v10  ;;  %v2129_v43 = vsel %vm977_vm6, %v2113_v11, %v3282_v60 }
 0x2e8   :  { %v3290_v33 = vpop.permute.xlu1 %3289  ;;  %v2127_v5 = vsel %vm977_vm6, %v2111_v3, %v3277_v15  ;;  %v2126_v46 = vsel %vm977_vm6, %v2110_v31, %v3276_v17 }
 0x2e9   :  { %v3285_v57 = vpop.permute.xlu0 %3284  ;;  %v3292_v19 = vunpack.i.h.bf16 %v3290_v33  ;;  %v3291_v24 = vunpack.i.l.bf16 %v3290_v33 }
 0x2ea   :  { %v3287_v1 = vunpack.i.h.bf16 %v3285_v57  ;;  %v3286_v29 = vunpack.i.l.bf16 %v3285_v57 }
 0x2eb   :  { %v2144_v62 = vsel %vm1011_vm8, %v2128_v36, %v3291_v24  ;;  %v2145_v63 = vsel %vm1011_vm8, %v2129_v43, %v3292_v19 }
 0x2ec   :  { %v4614_v48 = vpop.permute.xlu1 %3299  ;;  %v2142_v32 = vsel %vm1011_vm8, %v2126_v46, %v3286_v29  ;;  %v2143_v21 = vsel %vm1011_vm8, %v2127_v5, %v3287_v1 }
 0x2ed   :  { %v3295_v55 = vpop.permute.xlu0 %3294  ;;  %v3302_v39 = vunpack.i.h.bf16 %v4614_v48  ;;  %v3301_v12 = vunpack.i.l.bf16 %v4614_v48 }
 0x2ee   :  { %v3297_v59 = vunpack.i.h.bf16 %v3295_v55  ;;  %v3296_v58 = vunpack.i.l.bf16 %v3295_v55 }
 0x2f0   :  { %v4616_v0 = vpop.permute.xlu1 %3309  ;;  %v2158_v49 = vsel %vm1045_vm10, %v2142_v32, %v3296_v58  ;;  %v2159_v53 = vsel %vm1045_vm10, %v2143_v21, %v3297_v59 }
 0x2f1   :  { %v3305_v7 = vpop.permute.xlu0 %3304  ;;  %v3312_v2 = vunpack.i.h.bf16 %v4616_v0  ;;  %v3311_v26 = vunpack.i.l.bf16 %v4616_v0  ;;  %v2160_v0 = vsel %vm1045_vm10, %v2144_v62, %v3301_v12 }
 0x2f2   :  { %v3307_v54 = vunpack.i.h.bf16 %v3305_v7  ;;  %v3306_v13 = vunpack.i.l.bf16 %v3305_v7  ;;  %v2161_v7 = vsel %vm1045_vm10, %v2145_v63, %v3302_v39 }
 0x2f3   :  { %v2177_v22 = vsel %vm2166_vm15, %v2160_v0, %v3311_v26  ;;  %v2178_v41 = vsel %vm2166_vm15, %v2161_v7, %v3312_v2 }
 0x2f4   :  { %v3320_v27 = vpop.permute.xlu1 %3319  ;;  %v2175_v40 = vsel %vm2166_vm15, %v2158_v49, %v3306_v13  ;;  %v2176_v42 = vsel %vm2166_vm15, %v2159_v53, %v3307_v54 }
 0x2f5   :  { %v3315_v61 = vpop.permute.xlu0 %3314  ;;  %v3322_v44 = vunpack.i.h.bf16 %v3320_v27  ;;  %v3321_v45 = vunpack.i.l.bf16 %v3320_v27 }
 0x2f6   :  { %v3317_v34 = vunpack.i.h.bf16 %v3315_v61  ;;  %v3316_v38 = vunpack.i.l.bf16 %v3315_v61 }
 0x2f7   :  { %v2194_v15 = vsel %vm2183_vm0, %v2177_v22, %v3321_v45  ;;  %v2195_v17 = vsel %vm2183_vm0, %v2178_v41, %v3322_v44 }
 0x2f8   :  { %v3330_v37 = vpop.permute.xlu1 %3329  ;;  %v2192_v52 = vsel %vm2183_vm0, %v2175_v40, %v3316_v38  ;;  %v2193_v8 = vsel %vm2183_vm0, %v2176_v42, %v3317_v34 }
 0x2f9   :  { %v3325_v35 = vpop.permute.xlu0 %3324  ;;  %v3332_v33 = vunpack.i.h.bf16 %v3330_v37  ;;  %v3331_v57 = vunpack.i.l.bf16 %v3330_v37 }
 0x2fa   :  { %v3327_v20 = vunpack.i.h.bf16 %v3325_v35  ;;  %v3326_v47 = vunpack.i.l.bf16 %v3325_v35 }
 0x2fb   :  { %v2211_v27 = vsel %vm2200_vm1, %v2194_v15, %v3331_v57  ;;  %v2212_v61 = vsel %vm2200_vm1, %v2195_v17, %v3332_v33 }
 0x2fc   :  { %v3340_v50 = vpop.permute.xlu1 %3339  ;;  %v2209_v48 = vsel %vm2200_vm1, %v2192_v52, %v3326_v47  ;;  %v2210_v55 = vsel %vm2200_vm1, %v2193_v8, %v3327_v20 }
 0x2fd   :  { %v3335_v25 = vpop.permute.xlu0 %3334  ;;  %v3342_v46 = vunpack.i.h.bf16 %v3340_v50  ;;  %v3341_v59 = vunpack.i.l.bf16 %v3340_v50 }
 0x2fe   :  { %v3337_v18 = vunpack.i.h.bf16 %v3335_v25  ;;  %v3336_v6 = vunpack.i.l.bf16 %v3335_v25 }
 0x2ff   :  { %v2115_v12 = vsel %vm943_vm3, %v4484_v23, %v3342_v46  ;;  %v2114_v20 = vsel %vm943_vm3, %v4468_v56, %v3341_v59 }
 0x300   :  { %v2226_v4 = vsel %vm2217_vm2, %v2209_v48, %v3336_v6  ;;  %v2227_v30 = vsel %vm2217_vm2, %v2210_v55, %v3337_v18  ;;  %v3350_v10 = vpop.permute.xlu1 %3349 }
 0x301   :  { %v2238_v60 = vpack.c.bf16 %v2227_v30, %v2226_v4  ;;  %v3345_v14 = vpop.permute.xlu0 %3344  ;;  %v3352_v58 = vunpack.i.h.bf16 %v3350_v10  ;;  %v3351_v62 = vunpack.i.l.bf16 %v3350_v10 }
 0x302   :  { %v3347_v19 = vunpack.i.h.bf16 %v3345_v14  ;;  %v3346_v24 = vunpack.i.l.bf16 %v3345_v14 }
 0x303   :  { %2758 = vmatprep.mubr.msk.bf16.mxu1 %vm2285_vm4, %v2238_v60  ;;  %v2117_v47 = vsel %vm943_vm3, %v4500_v28, %v3352_v58  ;;  %v2116_v49 = vsel %vm943_vm3, %v4502_v51, %v3351_v62 }
 0x304   :  { %v2229_v11 = vsel %vm2217_vm2, %v2212_v61, %v3347_v19  ;;  %v2228_v9 = vsel %vm2217_vm2, %v2211_v27, %v3346_v24  ;;  %v3360_v29 = vpop.permute.xlu1 %3359 }
 0x305   :  { %v2239_v1 = vpack.c.bf16 %v2229_v11, %v2228_v9  ;;  %v3355_v3 = vpop.permute.xlu0 %3354  ;;  %v3362_v63 = vunpack.i.h.bf16 %v3360_v29  ;;  %v3361_v54 = vunpack.i.l.bf16 %v3360_v29 }
 0x306   :  { %v3357_v13 = vunpack.i.h.bf16 %v3355_v3  ;;  %v3356_v37 = vunpack.i.l.bf16 %v3355_v3 }
 0x307   :  { %2759 = vmatmul.mubr.msk.bf16.gmra.mrb[8].mxu1 %vm2285_vm4, %v2239_v1  ;;  %v2132_v53 = vsel %vm977_vm6, %v2116_v49, %v3361_v54  ;;  %v2133_v2 = vsel %vm977_vm6, %v2117_v47, %v3362_v63 }
 0x308   :  { %v3370_v31 = vpop.permute.xlu1 %3369  ;;  %v2131_v26 = vsel %vm977_vm6, %v2115_v12, %v3357_v13  ;;  %v2130_v40 = vsel %vm977_vm6, %v2114_v20, %v3356_v37  ;;  %v4700_v20 = vld [vmem:[%s4883_s6] ss:$0 sm:$0xff] }
 0x309   :  { %v3365_v36 = vpop.permute.xlu0 %3364  ;;  %v3372_v21 = vunpack.i.h.bf16 %v3370_v31  ;;  %v3371_v34 = vunpack.i.l.bf16 %v3370_v31 }
 0x30a   :  { %v3367_v38 = vunpack.i.h.bf16 %v3365_v36  ;;  %v3366_v39 = vunpack.i.l.bf16 %v3365_v36 }
 0x30b   :  { %v2148_v25 = vsel %vm1011_vm8, %v2132_v53, %v3371_v34  ;;  %v2149_v28 = vsel %vm1011_vm8, %v2133_v2, %v3372_v21 }
 0x30c   :  { %v3380_v43 = vpop.permute.xlu1 %3379  ;;  %v2146_v51 = vsel %vm1011_vm8, %v2130_v40, %v3366_v39  ;;  %v2147_v52 = vsel %vm1011_vm8, %v2131_v26, %v3367_v38 }
 0x30d   :  { %v3375_v5 = vpop.permute.xlu0 %3374  ;;  %v3382_v23 = vunpack.i.h.bf16 %v3380_v43  ;;  %v3381_v45 = vunpack.i.l.bf16 %v3380_v43 }
 0x30e   :  { %v3377_v50 = vunpack.i.h.bf16 %v3375_v5  ;;  %v3376_v56 = vunpack.i.l.bf16 %v3375_v5 }
 0x30f   :  { %v2164_v30 = vsel %vm1045_vm10, %v2148_v25, %v3381_v45  ;;  %v2165_v22 = vsel %vm1045_vm10, %v2149_v28, %v3382_v23 }
 0x310   :  { %v3390_v35 = vpop.permute.xlu1 %3389  ;;  %v2162_v41 = vsel %vm1045_vm10, %v2146_v51, %v3376_v56  ;;  %v2163_v60 = vsel %vm1045_vm10, %v2147_v52, %v3377_v50 }
 0x311   :  { %v3385_v32 = vpop.permute.xlu0 %3384  ;;  %v3392_v8 = vunpack.i.h.bf16 %v3390_v35  ;;  %v3391_v18 = vunpack.i.l.bf16 %v3390_v35 }
 0x312   :  { %v3387_v6 = vunpack.i.h.bf16 %v3385_v32  ;;  %v3386_v33 = vunpack.i.l.bf16 %v3385_v32 }
 0x313   :  { %v2181_v19 = vsel %vm2166_vm15, %v2164_v30, %v3391_v18  ;;  %v2182_v24 = vsel %vm2166_vm15, %v2165_v22, %v3392_v8 }
 0x314   :  { %v3400_v42 = vpop.permute.xlu1 %3399  ;;  %v2179_v27 = vsel %vm2166_vm15, %v2162_v41, %v3386_v33  ;;  %v2180_v61 = vsel %vm2166_vm15, %v2163_v60, %v3387_v6 }
 0x315   :  { %v3395_v44 = vpop.permute.xlu0 %3394  ;;  %v3402_v57 = vunpack.i.h.bf16 %v3400_v42  ;;  %v3401_v48 = vunpack.i.l.bf16 %v3400_v42 }
 0x316   :  { %v3397_v55 = vunpack.i.h.bf16 %v3395_v44  ;;  %v3396_v0 = vunpack.i.l.bf16 %v3395_v44 }
 0x317   :  { %v2198_v11 = vsel %vm2183_vm0, %v2181_v19, %v3401_v48  ;;  %v2199_v9 = vsel %vm2183_vm0, %v2182_v24, %v3402_v57 }
 0x318   :  { %v3410_v7 = vpop.permute.xlu1 %3409  ;;  %v2196_v1 = vsel %vm2183_vm0, %v2179_v27, %v3396_v0  ;;  %v2197_v29 = vsel %vm2183_vm0, %v2180_v61, %v3397_v55 }
 0x319   :  { %v3405_v4 = vpop.permute.xlu0 %3404  ;;  %v3412_v10 = vunpack.i.h.bf16 %v3410_v7  ;;  %v3411_v14 = vunpack.i.l.bf16 %v3410_v7 }
 0x31a   :  { %v3407_v15 = vunpack.i.h.bf16 %v3405_v4  ;;  %v3406_v17 = vunpack.i.l.bf16 %v3405_v4 }
 0x31b   :  { %v2215_v59 = vsel %vm2200_vm1, %v2198_v11, %v3411_v14  ;;  %v2216_v58 = vsel %vm2200_vm1, %v2199_v9, %v3412_v10 }
 0x31c   :  { %v3420_v3 = vpop.permute.xlu1 %3419  ;;  %v2213_v62 = vsel %vm2200_vm1, %v2196_v1, %v3406_v17  ;;  %v2214_v63 = vsel %vm2200_vm1, %v2197_v29, %v3407_v15 }
 0x31d   :  { %v3415_v31 = vpop.permute.xlu0 %3414  ;;  %v3422_v36 = vunpack.i.h.bf16 %v3420_v3  ;;  %v3421_v43 = vunpack.i.l.bf16 %v3420_v3 }
 0x31e   :  { %v3417_v5 = vunpack.i.h.bf16 %v3415_v31  ;;  %v3416_v46 = vunpack.i.l.bf16 %v3415_v31 }
 0x31f   :  { %v2232_v54 = vsel %vm2217_vm2, %v2215_v59, %v3421_v43  ;;  %v2233_v13 = vsel %vm2217_vm2, %v2216_v58, %v3422_v36 }
 0x320   :  { %v2230_v37 = vsel %vm2217_vm2, %v2213_v62, %v3416_v46  ;;  %v2231_v35 = vsel %vm2217_vm2, %v2214_v63, %v3417_v5  ;;  %v2241_v32 = vpack.c.bf16 %v2233_v13, %v2232_v54 }
 0x321   :  { %v2240_v21 = vpack.c.bf16 %v2231_v35, %v2230_v37 }
 0x323   :  { %2762 = vmatprep.mubr.msk.bf16.mxu1 %vm2285_vm4, %v2240_v21 }
 0x324   :  { %2763 = vmatmul.mubr.msk.bf16.gmra.mrb[12].mxu1 %vm2285_vm4, %v2241_v32 }
 0x39a   :  { %v2752_v34 = vpop.f32.mrb[0].mxu1 }
 0x39b   :  { %v2348_v38 = vpop.f32.mrb[1].mxu1  ;;  %v2357_v2 = vadd.f32 %v2752_v34, %v4700_v20 }
 0x39c   :  { %v2753_v39 = vpop.f32.mrb[2].mxu1  ;;  %v2349_v49 = vadd.f32 %v4700_v20, %v2348_v38 }
 0x39d   :  { %v2351_v12 = vpop.f32.mrb[3].mxu1  ;;  %v2360_v42 = vadd.f32 %v2753_v39, %v4700_v20  ;;  %v4712_v44 = vmax.f32 %v2357_v2, 0.0 }
 0x39e   :  { %v2352_v47 = vadd.f32 %v4700_v20, %v2351_v12  ;;  %v4707_v26 = vmax.f32 %v2349_v49, 0.0 }
 0x39f   :  { %v4721_v25 = vmax.f32 %v2360_v42, 0.0  ;;  %v2467_v51 = vmul.f32 %v4712_v44, %v4712_v44  ;;  %v2430_v18 = vsel %vm943_vm3, %v4712_v44, 0.0 }
 0x3a0   :  { %v4704_v53 = vmax.f32 %v2352_v47, 0.0  ;;  %v2465_v23 = vmul.f32 %v4707_v26, %v4707_v26  ;;  %v2427_v50 = vsel %vm943_vm3, %v4707_v26, 0.0 }
 0x3a1   :  { %v2468_v33 = vmul.f32 %v4721_v25, %v4721_v25  ;;  %v2484_v0 = vsel %vm943_vm3, %v2467_v51, 0.0  ;;  %v2432_v60 = vsel %vm943_vm3, %v4721_v25, 0.0 }
 0x3a2   :  { %v2466_v40 = vmul.f32 %v4704_v53, %v4704_v53  ;;  %v2428_v45 = vsel %vm943_vm3, %v4704_v53, 0.0  ;;  %v2481_v52 = vsel %vm943_vm3, %v2465_v23, 0.0 }
 0x3a3   :  { %v2429_v28 = vadd.f32 %v2428_v45, %v2427_v50  ;;  %v2486_v17 = vsel %vm943_vm3, %v2468_v33, 0.0 }
 0x3a4   :  { %v2482_v56 = vsel %vm943_vm3, %v2466_v40, 0.0 }
 0x3a5   :  { %v2483_v8 = vadd.f32 %v2482_v56, %v2481_v52  ;;  %v2431_v57 = vadd.f32 %v2430_v18, %v2429_v28 }
 0x3a7   :  { %v2485_v30 = vadd.f32 %v2484_v0, %v2483_v8  ;;  %v2433_v19 = vadd.f32 %v2432_v60, %v2431_v57 }
 0x3a9   :  { %v2487_v1 = vadd.f32 %v2486_v17, %v2485_v30 }
 0x3ba   :  { %v2756_v6 = vpop.f32.mrb[4].mxu1 }
 0x3bb   :  { %v2373_v48 = vadd.f32 %v2756_v6, %v4700_v20  ;;  %v2364_v55 = vpop.f32.mrb[5].mxu1 }
 0x3bc   :  { %v2365_v7 = vadd.f32 %v4700_v20, %v2364_v55  ;;  %v2757_v4 = vpop.f32.mrb[6].mxu1 }
 0x3bd   :  { %v2376_v22 = vadd.f32 %v2757_v4, %v4700_v20  ;;  %v2367_v41 = vpop.f32.mrb[7].mxu1  ;;  %v4736_v10 = vmax.f32 %v2373_v48, 0.0 }
 0x3be   :  { %v4738_v14 = vmax.f32 %v2365_v7, 0.0  ;;  %v2368_v15 = vadd.f32 %v4700_v20, %v2367_v41 }
 0x3bf   :  { %v4746_v61 = vmax.f32 %v2376_v22, 0.0  ;;  %v2471_v29 = vmul.f32 %v4736_v10, %v4736_v10  ;;  %v2438_v46 = vsel %vm943_vm3, %v4736_v10, 0.0 }
 0x3c0   :  { %v2434_v24 = vsel %vm943_vm3, %v4738_v14, 0.0  ;;  %v2469_v27 = vmul.f32 %v4738_v14, %v4738_v14  ;;  %v4748_v11 = vmax.f32 %v2368_v15, 0.0 }
 0x3c1   :  { %v2435_v9 = vadd.f32 %v2434_v24, %v2433_v19  ;;  %v2472_v59 = vmul.f32 %v4746_v61, %v4746_v61  ;;  %v2492_v54 = vsel %vm943_vm3, %v2471_v29, 0.0  ;;  %v2440_v13 = vsel %vm943_vm3, %v4746_v61, 0.0 }
 0x3c2   :  { %v2488_v3 = vsel %vm943_vm3, %v2469_v27, 0.0  ;;  %v2436_v31 = vsel %vm943_vm3, %v4748_v11, 0.0  ;;  %v2470_v36 = vmul.f32 %v4748_v11, %v4748_v11 }
 0x3c3   :  { %v2489_v43 = vadd.f32 %v2488_v3, %v2487_v1  ;;  %v2437_v5 = vadd.f32 %v2436_v31, %v2435_v9  ;;  %v2494_v32 = vsel %vm943_vm3, %v2472_v59, 0.0 }
 0x3c4   :  { %v2490_v58 = vsel %vm943_vm3, %v2470_v36, 0.0 }
 0x3c5   :  { %v2439_v62 = vadd.f32 %v2438_v46, %v2437_v5  ;;  %v2491_v63 = vadd.f32 %v2490_v58, %v2489_v43 }
 0x3c7   :  { %v2493_v37 = vadd.f32 %v2492_v54, %v2491_v63  ;;  %v2441_v35 = vadd.f32 %v2440_v13, %v2439_v62 }
 0x3c9   :  { %v2495_v21 = vadd.f32 %v2494_v32, %v2493_v37 }
 0x3da   :  { %v2760_v34 = vpop.f32.mrb[8].mxu1 }
 0x3db   :  { %v2389_v38 = vadd.f32 %v2760_v34, %v4700_v20  ;;  %v2380_v39 = vpop.f32.mrb[9].mxu1 }
 0x3dc   :  { %v2381_v12 = vadd.f32 %v4700_v20, %v2380_v39  ;;  %v2761_v47 = vpop.f32.mrb[10].mxu1 }
 0x3dd   :  { %v2392_v49 = vadd.f32 %v2761_v47, %v4700_v20  ;;  %v2383_v2 = vpop.f32.mrb[11].mxu1  ;;  %v4769_v40 = vmax.f32 %v2389_v38, 0.0 }
 0x3de   :  { %v4771_v42 = vmax.f32 %v2381_v12, 0.0  ;;  %v2384_v23 = vadd.f32 %v4700_v20, %v2383_v2 }
 0x3df   :  { %v4778_v56 = vmax.f32 %v2392_v49, 0.0  ;;  %v2475_v52 = vmul.f32 %v4769_v40, %v4769_v40  ;;  %v2446_v48 = vsel %vm943_vm3, %v4769_v40, 0.0 }
 0x3e0   :  { %v2442_v45 = vsel %vm943_vm3, %v4771_v42, 0.0  ;;  %v2473_v50 = vmul.f32 %v4771_v42, %v4771_v42  ;;  %v4780_v28 = vmax.f32 %v2384_v23, 0.0 }
 0x3e1   :  { %v2443_v51 = vadd.f32 %v2442_v45, %v2441_v35  ;;  %v2476_v55 = vmul.f32 %v4778_v56, %v4778_v56  ;;  %v2500_v30 = vsel %vm943_vm3, %v2475_v52, 0.0  ;;  %v2448_v22 = vsel %vm943_vm3, %v4778_v56, 0.0 }
 0x3e2   :  { %v2496_v8 = vsel %vm943_vm3, %v2473_v50, 0.0  ;;  %v2444_v18 = vsel %vm943_vm3, %v4780_v28, 0.0  ;;  %v2474_v6 = vmul.f32 %v4780_v28, %v4780_v28 }
 0x3e3   :  { %v2497_v33 = vadd.f32 %v2496_v8, %v2495_v21  ;;  %v2445_v57 = vadd.f32 %v2444_v18, %v2443_v51  ;;  %v2502_v15 = vsel %vm943_vm3, %v2476_v55, 0.0 }
 0x3e4   :  { %v2498_v0 = vsel %vm943_vm3, %v2474_v6, 0.0 }
 0x3e5   :  { %v2447_v7 = vadd.f32 %v2446_v48, %v2445_v57  ;;  %v2499_v4 = vadd.f32 %v2498_v0, %v2497_v33 }
 0x3e7   :  { %v2501_v41 = vadd.f32 %v2500_v30, %v2499_v4  ;;  %v2449_v60 = vadd.f32 %v2448_v22, %v2447_v7 }
 0x3e9   :  { %v2503_v17 = vadd.f32 %v2502_v15, %v2501_v41 }
 0x3f7   :  { %v2764_v19 = vpop.f32.mrb[12].mxu1 }
 0x3f8   :  { %v2405_v24 = vadd.f32 %v2764_v19, %v4700_v20  ;;  %v2396_v27 = vpop.f32.mrb[13].mxu1 }
 0x3f9   :  { %v2397_v9 = vadd.f32 %v4700_v20, %v2396_v27  ;;  %v2765_v1 = vpop.f32.mrb[14].mxu1  ;;  %v2548_v27 = vld [vmem:[%s4885_s8] sm:$0x1] }
 0x3fa   :  { %v2408_v29 = vadd.f32 %v2765_v1, %v4700_v20  ;;  %v2399_v3 = vpop.f32.mrb[15].mxu1  ;;  %v4801_v31 = vmax.f32 %v2405_v24, 0.0 }
 0x3fb   :  { %v4803_v36 = vmax.f32 %v2397_v9, 0.0  ;;  %v2400_v43 = vadd.f32 %v4700_v20, %v2399_v3 }
 0x3fc   :  { %v4810_v59 = vmax.f32 %v2408_v29, 0.0  ;;  %v2479_v63 = vmul.f32 %v4801_v31, %v4801_v31  ;;  %v2454_v32 = vsel %vm943_vm3, %v4801_v31, 0.0 }
 0x3fd   :  { %v2450_v5 = vsel %vm943_vm3, %v4803_v36, 0.0  ;;  %v2477_v46 = vmul.f32 %v4803_v36, %v4803_v36  ;;  %v2424_v58 = vmax.f32 %v2400_v43, 0.0 }
 0x3fe   :  { %v2451_v62 = vadd.f32 %v2450_v5, %v2449_v60  ;;  %v2480_v21 = vmul.f32 %v4810_v59, %v4810_v59  ;;  %v2508_v12 = vsel %vm943_vm3, %v2479_v63, 0.0  ;;  %v2456_v47 = vsel %vm943_vm3, %v4810_v59, 0.0 }
 0x3ff   :  { %v2504_v54 = vsel %vm943_vm3, %v2477_v46, 0.0  ;;  %v2452_v13 = vsel %vm943_vm3, %v2424_v58, 0.0  ;;  %v2478_v37 = vmul.f32 %v2424_v58, %v2424_v58 }
 0x400   :  { %v2505_v35 = vadd.f32 %v2504_v54, %v2503_v17  ;;  %v2453_v20 = vadd.f32 %v2452_v13, %v2451_v62  ;;  %v2510_v23 = vsel %vm943_vm3, %v2480_v21, 0.0  ;;  %v2522_v17 = vld [vmem:[%s4884_s7] sm:$0x1]  ;;  %s3472_s7 = smov [#allocation4]  }
 0x401   :  { %v2506_v34 = vsel %vm943_vm3, %v2478_v37, 0.0  ;;  %s2594_s8 = sshll.u32 %s3472_s7, 4  ;;  %s2595_s8 = int_to_ptr.vmem [resolvable:$true] %s2594_s8 }
 0x402   :  { %v2455_v38 = vadd.f32 %v2454_v32, %v2453_v20  ;;  %v2507_v39 = vadd.f32 %v2506_v34, %v2505_v35  ;;  %s3435_s14 = scalar_lea.vmem %s2595_s8, 2048  ;;  %p3440_p1 = scmp.lt.s32.totalorder %s2595_s8, %s2595_s8 }
 0x403   :  { %p3436_p0 = scmp.ne.s32.totalorder %s2595_s8, %s3435_s14  ;;  %p3441_p2 = scmp.lt.s32.totalorder %s3435_s14, %s3435_s14 }
 0x404   :  { %v2457_v49 = vadd.f32 %v2456_v47, %v2455_v38  ;;  %v2509_v2 = vadd.f32 %v2508_v12, %v2507_v39 }
 0x405   :  { %p3442_p3 = por %p3441_p2, %p3440_p1 }
 0x406   :  { %v2458_v45 = vrot.slane %v2457_v49, 4  ;;  %v2511_v50 = vadd.f32 %v2510_v23, %v2509_v2 }
 0x407   :  { %p3443_p4 = pnand %p3442_p3, %p3436_p0 }
 0x408   :  { %v2459_v51 = vadd.f32 %v2458_v45, %v2457_v49  ;;  %v2512_v52 = vrot.slane %v2511_v50, 4 }
 0x40a   :  { %v2460_v8 = vrot.slane %v2459_v51, 2  ;;  %v2513_v18 = vadd.f32 %v2512_v52, %v2511_v50 }
 0x40c   :  { %v2461_v6 = vadd.f32 %v2460_v8, %v2459_v51  ;;  %v2514_v33 = vrot.slane %v2513_v18, 2 }
 0x40e   :  { %v2462_v57 = vrot.slane %v2461_v6, 1  ;;  %v2515_v48 = vadd.f32 %v2514_v33, %v2513_v18 }
 0x410   :  { %v2463_v55 = vadd.f32 %v2462_v57, %v2461_v6  ;;  %v2516_v0 = vrot.slane %v2515_v48, 1 }
 0x412   :  { %v2464_v7 = vmul.f32 0.0078125, %v2463_v55  ;;  %v2517_v4 = vadd.f32 %v2516_v0, %v2515_v48 }
 0x414   :  { %v2518_v30 = vmul.f32 0.0078125, %v2517_v4  ;;  %v2519_v22 = vmul.f32 %v2464_v7, %v2464_v7 }
 0x416   :  { %v2520_v41 = vsub.f32 %v2518_v30, %v2519_v22 }
 0x418   :  { %v2521_v60 = vmax.f32 %v2520_v41, 0.0 }
 0x41a   :  { %v2523_v15 = vadd.f32 1e-05, %v2521_v60 }
 0x41c   :  { %3433 = vrsqrt.f32 %v2523_v15 }
 0x426   :  { %v3434_v19 = vpop.eup %3433 }
 0x427   :  { %v2525_v24 = vmul.f32 %v3434_v19, %v2522_v17 }
 0x429   :  { %v2530_v9 = vrot.slane %v2525_v24, %v4352_v16  ;;  %v2549_v1 = vmul.f32 %v2525_v24, %v2464_v7 }
 0x42b   :  { %v2545_v29 = vmul.f32 %v2530_v9, %v2424_v58  ;;  %v2550_v3 = vsub.f32 %v2548_v27, %v2549_v1  ;;  %v2532_v43 = vmul.f32 %v2530_v9, %v4707_v26  ;;  %v2533_v5 = vmul.f32 %v2530_v9, %v4704_v53 }
 0x42c   :  { %v2534_v46 = vmul.f32 %v2530_v9, %v4712_v44  ;;  %v2535_v62 = vmul.f32 %v2530_v9, %v4721_v25  ;;  %v2536_v63 = vmul.f32 %v2530_v9, %v4738_v14  ;;  %v2537_v54 = vmul.f32 %v2530_v9, %v4748_v11 }
 0x42d   :  { %v2555_v13 = vrot.slane %v2550_v3, %v4352_v16  ;;  %v2538_v37 = vmul.f32 %v2530_v9, %v4736_v10  ;;  %v2539_v35 = vmul.f32 %v2530_v9, %v4746_v61  ;;  %v2540_v58 = vmul.f32 %v2530_v9, %v4771_v42 }
 0x42e   :  { %v2541_v26 = vmul.f32 %v2530_v9, %v4780_v28  ;;  %v2542_v53 = vmul.f32 %v2530_v9, %v4769_v40  ;;  %v2543_v44 = vmul.f32 %v2530_v9, %v4778_v56  ;;  %v2544_v25 = vmul.f32 %v2530_v9, %v4803_v36 }
 0x42f   :  { %v2570_v20 = vadd.f32 %v2555_v13, %v2545_v29  ;;  %v2546_v14 = vmul.f32 %v2530_v9, %v4801_v31  ;;  %v2547_v11 = vmul.f32 %v2530_v9, %v4810_v59  ;;  %v2557_v16 = vadd.f32 %v2555_v13, %v2532_v43 }
 0x430   :  { %v2558_v32 = vadd.f32 %v2555_v13, %v2533_v5  ;;  %v2559_v10 = vadd.f32 %v2555_v13, %v2534_v46  ;;  %v2560_v21 = vadd.f32 %v2555_v13, %v2535_v62  ;;  %v2561_v61 = vadd.f32 %v2555_v13, %v2536_v63 }
 0x431   :  { %2586 = vst.msk [vmem:[#allocation4 + $0x68] sm:$0xff] %vm943_vm3, %v2570_v20  ;;  %v2562_v42 = vadd.f32 %v2555_v13, %v2537_v54  ;;  %v2563_v40 = vadd.f32 %v2555_v13, %v2538_v37  ;;  %v2564_v28 = vadd.f32 %v2555_v13, %v2539_v35  ;;  %v2565_v56 = vadd.f32 %v2555_v13, %v2540_v58 }
 0x432   :  { %2573 = vst.msk [vmem:[#allocation4] sm:$0xff] %vm943_vm3, %v2557_v16  ;;  %v2566_v36 = vadd.f32 %v2555_v13, %v2541_v26  ;;  %v2567_v34 = vadd.f32 %v2555_v13, %v2542_v53  ;;  %v2568_v31 = vadd.f32 %v2555_v13, %v2543_v44  ;;  %v2569_v38 = vadd.f32 %v2555_v13, %v2544_v25 }
 0x433   :  { %2574 = vst.msk [vmem:[#allocation4 + $0x8] sm:$0xff] %vm943_vm3, %v2558_v32  ;;  %2575 = vst.msk [vmem:[#allocation4 + $0x10] sm:$0xff] %vm943_vm3, %v2559_v10  ;;  %v2571_v59 = vadd.f32 %v2555_v13, %v2546_v14  ;;  %v2572_v39 = vadd.f32 %v2555_v13, %v2547_v11 }
 0x434   :  { %2576 = vst.msk [vmem:[#allocation4 + $0x18] sm:$0xff] %vm943_vm3, %v2560_v21  ;;  %2577 = vst.msk [vmem:[#allocation4 + $0x20] sm:$0xff] %vm943_vm3, %v2561_v61 }
 0x435   :  { %2578 = vst.msk [vmem:[#allocation4 + $0x28] sm:$0xff] %vm943_vm3, %v2562_v42  ;;  %2579 = vst.msk [vmem:[#allocation4 + $0x30] sm:$0xff] %vm943_vm3, %v2563_v40 }
 0x436   :  { %2580 = vst.msk [vmem:[#allocation4 + $0x38] sm:$0xff] %vm943_vm3, %v2564_v28  ;;  %2581 = vst.msk [vmem:[#allocation4 + $0x40] sm:$0xff] %vm943_vm3, %v2565_v56 }
 0x437   :  { %2582 = vst.msk [vmem:[#allocation4 + $0x48] sm:$0xff] %vm943_vm3, %v2566_v36  ;;  %2583 = vst.msk [vmem:[#allocation4 + $0x50] sm:$0xff] %vm943_vm3, %v2567_v34 }
 0x438   :  { %2584 = vst.msk [vmem:[#allocation4 + $0x58] sm:$0xff] %vm943_vm3, %v2568_v31  ;;  %2585 = vst.msk [vmem:[#allocation4 + $0x60] sm:$0xff] %vm943_vm3, %v2569_v38 }
 0x439   :  { %2587 = vst.msk [vmem:[#allocation4 + $0x70] sm:$0xff] %vm943_vm3, %v2571_v59  ;;  %2588 = vst.msk [vmem:[#allocation4 + $0x78] sm:$0xff] %vm943_vm3, %v2572_v39 }
 0x43a   :  { %3446 = shalt.err (!%p3443_p4)
}
 0x43b   :  { %s3447_s2 = scalar_lea.hbm %s4886_s9, 2048 }
 0x43c   :  { %p3448_p5 = scmp.ne.s32.totalorder %s4886_s9, %s3447_s2  ;;  %p3451_p6 = scmp.lt.u32.totalorder %s3447_s2, %s4886_s9 }
 0x43e   :  { %p3453_p7 = pnand %p3451_p6, %p3448_p5 }
 0x440   :  { %3456 = shalt.err (!%p3453_p7)
}
 0x441   :  { %s3473_s4 = smov 128  }
 0x442   :  { %2600 = dma.vmem_to_hbm [thread:$0]  %s2595_s8, 2048, %s4886_s9, [#allocation5], %s3473_s4, %s3473_s4, %s3460_s16  }
 0x443   :  { %3457 = dma.done.wait [#allocation5], 2048  }
 0x444   :  { %3458 = vsyncadd [#allocation5], 4294965248 }
 0x445   :  { %2604 = vsyncpa [#allocation5], 1 }

</bundles_post_ra>
